<compile_context>
chip_gen: v7x
topology: tpu7x:2x2x1
jax: 0.10.0
libtpu: 0.0.40
codegen_flags: <defaults>
</compile_context>

<pallas_src>
import functools

import jax
import jax.numpy as jnp
import numpy as np
from jax.experimental import pallas as pl
from jax.experimental.pallas import tpu as pltpu

# Hyper-parameters pinned by nn.Linear(nh*20*20, 100) in the PyTorch module.
_NH = 5                        # conv2 output channels
_C1 = 2 * _NH                  # conv1 output channels (10)
_C2 = _NH                      # conv2 output channels (5)
_IMG = 40                      # input spatial size (40x40)
_POOL = _IMG // 2              # after 2x2 maxpool (20)
_K = 5                         # conv kernel size
_PAD = _K // 2                 # SAME padding
_FLAT = _C2 * _POOL * _POOL    # 2000
_DENSE = 100
_BLN = 32

_VMEM = pl.BlockSpec(memory_space=pltpu.MemorySpace.VMEM)
_SMEM = pl.BlockSpec(memory_space=pltpu.MemorySpace.SMEM)


# ----------------------------------------------------------------------------
# Fused forward kernel: conv1+PReLU, pool+PReLU, conv2+PReLU, flatten, dense head.
# ----------------------------------------------------------------------------
def _fused_forward_kernel(slopes_ref, x_ref, a1_ref, t1_ref, b1_ref,
                          rsel_ref, wsel_ref, a2_ref, t2_ref, b2_ref,
                          wd_ref, bd_ref, wb_ref, bb_ref,
                          out_ref, flat_ref, *, n_batch):
    f32 = jnp.float32

    def prelu(v, a):
        return jnp.where(v >= 0, v, a * v)

    x = x_ref[...]                                             # (N*40, 40) rows=(n,h) lanes=w

    # conv1 (5x5, SAME) + bias + PReLU — sums of MXU matmuls -------------------
    acc1 = jnp.zeros((n_batch * _IMG, _IMG * _C1), f32)        # lanes = w*10 + cout
    for kh in range(_K):
        xs = jnp.dot(a1_ref[kh], x, preferred_element_type=f32)            # height tap + H-pad
        acc1 = acc1 + jnp.dot(xs, t1_ref[kh], preferred_element_type=f32)  # width band x W1
    c1 = prelu(acc1 + b1_ref[...], slopes_ref[0])              # (N*40, 400)

    # maxpool 2x2 + PReLU ------------------------------------------------------
    vmax = jnp.maximum(jnp.dot(rsel_ref[0], c1, preferred_element_type=f32),
                       jnp.dot(rsel_ref[1], c1, preferred_element_type=f32))    # (N*20, 400)
    pool = jnp.maximum(jnp.dot(vmax, wsel_ref[0], preferred_element_type=f32),
                       jnp.dot(vmax, wsel_ref[1], preferred_element_type=f32))  # (N*20, 200)
    pool = prelu(pool, slopes_ref[1])

    # conv2 (5x5, SAME) + bias + PReLU — Cin folded into the width-band matmul --
    acc2 = jnp.zeros((n_batch * _POOL, _POOL * _C2), f32)      # lanes = w*5 + cout
    for kh in range(_K):
        ps = jnp.dot(a2_ref[kh], pool, preferred_element_type=f32)
        acc2 = acc2 + jnp.dot(ps, t2_ref[kh], preferred_element_type=f32)
    h2 = prelu(acc2 + b2_ref[...], slopes_ref[2])              # (N*20, 100)

    # flatten into a lane-dense (N, 2000) scratch; lane order (h, w, cout).
    # The matching row permutation is pre-folded into wd, so no transpose is needed.
    blk = _POOL * _C2                                          # 100 lanes per image row
    for n in range(n_batch):
        for j in range(_POOL):
            flat_ref[n:n + 1, j * blk:(j + 1) * blk] = \
                h2[n * _POOL + j:n * _POOL + j + 1, :]
    flat = flat_ref[...]                                       # (N, 2000)

    # dense -> PReLU -> bottleneck --------------------------------------------
    hd = prelu(jnp.dot(flat, wd_ref[...], preferred_element_type=f32) + bd_ref[...],
               slopes_ref[3])
    out_ref[...] = jnp.dot(hd, wb_ref[...], preferred_element_type=f32) + bb_ref[...]


# ----------------------------------------------------------------------------
# One-time host-side parameter prep: fold conv taps / zero padding / pooling /
# NCHW-flatten order into constant matrices consumed by the fused kernel.
# ----------------------------------------------------------------------------
def prepare_kernel_operands(params, n_batch):
    w1 = np.asarray(params['w1'], np.float32)       # (5,5,1,10)  HWIO
    b1 = np.asarray(params['b1'], np.float32)
    w2 = np.asarray(params['w2'], np.float32)       # (5,5,10,5)  HWIO
    b2 = np.asarray(params['b2'], np.float32)
    wd = np.asarray(params['wd'], np.float32)       # (2000,100), rows in NCHW-flatten order
    wb = np.asarray(params['wb'], np.float32)       # (100,32)
    N = n_batch

    # conv1: height-tap row-shift matrices (zero rows == H padding).
    A1 = np.zeros((_K, N * _IMG, N * _IMG), np.float32)
    for kh in range(_K):
        for n in range(N):
            for h in range(_IMG):
                src = h + kh - _PAD
                if 0 <= src < _IMG:
                    A1[kh, n * _IMG + h, n * _IMG + src] = 1.0
    # conv1: width-band weight matrices (W padding handled by absent entries).
    T1 = np.zeros((_K, _IMG, _IMG * _C1), np.float32)
    for kh in range(_K):
        for kw in range(_K):
            for w in range(_IMG):
                wi = w + kw - _PAD
                if 0 <= wi < _IMG:
                    T1[kh, wi, w * _C1:(w + 1) * _C1] = w1[kh, kw, 0, :]
    b1row = np.tile(b1, _IMG)[None, :]                              # (1, 400)

    # maxpool 2x2: row / lane 0-1 selection matrices.
    Rsel = np.zeros((2, N * _POOL, N * _IMG), np.float32)
    for dh in range(2):
        for n in range(N):
            for j in range(_POOL):
                Rsel[dh, n * _POOL + j, n * _IMG + 2 * j + dh] = 1.0
    Wsel = np.zeros((2, _IMG * _C1, _POOL * _C1), np.float32)
    for dw in range(2):
        for i in range(_POOL):
            for c in range(_C1):
                Wsel[dw, (2 * i + dw) * _C1 + c, i * _C1 + c] = 1.0

    # conv2: same construction, Cin folded into the width-band contraction dim.
    A2 = np.zeros((_K, N * _POOL, N * _POOL), np.float32)
    for kh in range(_K):
        for n in range(N):
            for j in range(_POOL):
                src = j + kh - _PAD
                if 0 <= src < _POOL:
                    A2[kh, n * _POOL + j, n * _POOL + src] = 1.0
    T2 = np.zeros((_K, _POOL * _C1, _POOL * _C2), np.float32)
    for kh in range(_K):
        for kw in range(_K):
            for i in range(_POOL):
                wi = i + kw - _PAD
                if 0 <= wi < _POOL:
                    for ci in range(_C1):
                        T2[kh, wi * _C1 + ci, i * _C2:(i + 1) * _C2] = w2[kh, kw, ci, :]
    b2row = np.tile(b2, _POOL)[None, :]                             # (1, 100)

    # dense: absorb the NCHW flatten into a row permutation of wd.
    # kernel flat lane = j*100 + i*5 + co   <->   torch feature = co*400 + j*20 + i
    perm = np.zeros(_FLAT, np.int64)
    for j in range(_POOL):
        for i in range(_POOL):
            for co in range(_C2):
                perm[j * (_POOL * _C2) + i * _C2 + co] = co * (_POOL * _POOL) + j * _POOL + i
    wd_perm = wd[perm, :]                                           # (2000, 100)

    slopes = np.stack([np.float32(np.asarray(params[k]).reshape(()))
                       for k in ('a1', 'a2', 'a3', 'a4')])          # (4,)

    j = lambda a: jnp.asarray(a, jnp.float32)
    return dict(
        slopes=j(slopes),
        A1=j(A1), T1=j(T1), b1=j(b1row),
        Rsel=j(Rsel), Wsel=j(Wsel),
        A2=j(A2), T2=j(T2), b2=j(b2row),
        wd=j(wd_perm), bd=j(np.asarray(params['bd'], np.float32)[None, :]),
        wb=j(wb), bb=j(np.asarray(params['bb'], np.float32)[None, :]),
    )


# ----------------------------------------------------------------------------
# Fused Pallas forward and a plain-JAX reference for validation.
# ----------------------------------------------------------------------------
@jax.jit
def modconv_forward(x_nchw, ops):
    n = x_nchw.shape[0]
    x2d = x_nchw.reshape(n * _IMG, _IMG)        # (N,1,40,40) -> rows=(n,h), lanes=w
    kernel = functools.partial(_fused_forward_kernel, n_batch=n)
    return pl.pallas_call(
        kernel,
        out_shape=jax.ShapeDtypeStruct((n, _BLN), jnp.float32),
        in_specs=[_SMEM] + [_VMEM] * 13,
        out_specs=_VMEM,
        scratch_shapes=[pltpu.VMEM((n, _FLAT), jnp.float32)],
        # No grid: the whole forward fits in ~2.5 MiB of VMEM on all generations.
        # TODO(synk): for large batch, grid over batch with dimension_semantics=
        # ("parallel",) so v7x shards across its 2 TensorCores.
    )(ops['slopes'], x2d, ops['A1'], ops['T1'], ops['b1'], ops['Rsel'], ops['Wsel'],
      ops['A2'], ops['T2'], ops['b2'], ops['wd'], ops['bd'], ops['wb'], ops['bb'])


def reference_forward(x_nchw, params):
    def prelu(v, a):
        return jnp.where(v >= 0, v, a * v)
    x = jnp.transpose(x_nchw, (0, 2, 3, 1))
    h = jax.lax.conv_general_dilated(
        x, params['w1'], (1, 1), [(2, 2), (2, 2)],
        dimension_numbers=('NHWC', 'HWIO', 'NHWC'),
        precision=jax.lax.Precision.HIGHEST) + params['b1']
    h = prelu(h, params['a1'])
    h = jax.lax.reduce_window(h, -jnp.inf, jax.lax.max,
                              (1, 2, 2, 1), (1, 2, 2, 1), 'VALID')
    h = prelu(h, params['a2'])
    h = jax.lax.conv_general_dilated(
        h, params['w2'], (1, 1), [(2, 2), (2, 2)],
        dimension_numbers=('NHWC', 'HWIO', 'NHWC'),
        precision=jax.lax.Precision.HIGHEST) + params['b2']
    h = prelu(h, params['a3'])
    h = jnp.transpose(h, (0, 3, 1, 2)).reshape(h.shape[0], -1)     # PyTorch NCHW flatten
    h = jnp.dot(h, params['wd'], precision=jax.lax.Precision.HIGHEST) + params['bd']
    h = prelu(h, params['a4'])
    return jnp.dot(h, params['wb'], precision=jax.lax.Precision.HIGHEST) + params['bb']


if __name__ == "__main__":
    in_chan, nh, nh_bln = 1, _NH, _BLN
    N, H, W = 2, _IMG, _IMG     # Linear(nh*20*20, 100) pins the input spatial size to 40x40

    key = jax.random.PRNGKey(0)
    ks = jax.random.split(key, 9)
    params = dict(
        w1=jax.random.normal(ks[0], (5, 5, in_chan, nh * 2), jnp.float32) * 0.2,   # conv1 HWIO
        b1=jax.random.normal(ks[1], (nh * 2,), jnp.float32) * 0.1,
        w2=jax.random.normal(ks[2], (5, 5, nh * 2, nh), jnp.float32) * 0.06,        # conv2 HWIO
        b2=jax.random.normal(ks[3], (nh,), jnp.float32) * 0.1,
        wd=jax.random.normal(ks[4], (nh * 20 * 20, 100), jnp.float32) * 0.02,       # dense (in,out)
        bd=jax.random.normal(ks[5], (100,), jnp.float32) * 0.1,
        wb=jax.random.normal(ks[6], (100, nh_bln), jnp.float32) * 0.1,              # bottleneck
        bb=jax.random.normal(ks[7], (nh_bln,), jnp.float32) * 0.1,
        # Four independent nn.PReLU() instances (PyTorch default init 0.25).
        a1=jnp.array([0.25], jnp.float32),
        a2=jnp.array([0.25], jnp.float32),
        a3=jnp.array([0.25], jnp.float32),
        a4=jnp.array([0.25], jnp.float32),
        # DummyDistribution's registered buffer; unused in forward().
        sigma=jnp.array(0.0, jnp.float32),
    )
    x = jax.random.normal(ks[8], (N, in_chan, H, W), jnp.float32)   # PyTorch NCHW input

    ops = prepare_kernel_operands(params, N)                        # one-time host prep
    out = jax.block_until_ready(modconv_forward(x, ops))
    assert out.shape == (N, nh_bln), out.shape

    ref = reference_forward(x, params)
    max_err = float(jnp.max(jnp.abs(out - ref)))
    # Tolerance sized for default (single-pass bf16) MXU precision across all fused
    # matmuls — Precision.HIGHEST dropped per perf review.  Genuine logic errors
    # (wrong tap / padding / flatten order) show up as O(0.1..1) deviations.
    assert jnp.allclose(out, ref, atol=5e-2, rtol=5e-2), f"max abs err {max_err}"

    print("KERNEL_OK")
</pallas_src>

<mosaic_0001>
module attributes {stable_mosaic.version = 11 : i64} {
  func.func @_fused_forward_kernel(%arg0: memref<4xf32, #tpu.memory_space<smem>>, %arg1: memref<80x40xf32, #tpu.memory_space<vmem>>, %arg2: memref<5x80x80xf32, #tpu.memory_space<vmem>>, %arg3: memref<5x40x400xf32, #tpu.memory_space<vmem>>, %arg4: memref<1x400xf32, #tpu.memory_space<vmem>>, %arg5: memref<2x40x80xf32, #tpu.memory_space<vmem>>, %arg6: memref<2x400x200xf32, #tpu.memory_space<vmem>>, %arg7: memref<5x40x40xf32, #tpu.memory_space<vmem>>, %arg8: memref<5x200x100xf32, #tpu.memory_space<vmem>>, %arg9: memref<1x100xf32, #tpu.memory_space<vmem>>, %arg10: memref<2000x100xf32, #tpu.memory_space<vmem>>, %arg11: memref<1x100xf32, #tpu.memory_space<vmem>>, %arg12: memref<100x32xf32, #tpu.memory_space<vmem>>, %arg13: memref<1x32xf32, #tpu.memory_space<vmem>>, %arg14: memref<2x32xf32, #tpu.memory_space<vmem>>, %arg15: memref<2x2000xf32, #tpu.memory_space<vmem>>) attributes {dimension_semantics = [], scalar_prefetch = 0 : i64, scratch_operands = 1 : i64, tpu.core_type = #tpu.core_type<tc>} {
    %c0 = arith.constant 0 : index
    %c0_0 = arith.constant 0 : index
    %0 = vector.load %arg1[%c0, %c0_0] : memref<80x40xf32, #tpu.memory_space<vmem>>, vector<80x40xf32>
    %cst = arith.constant 0.000000e+00 : f32
    %1 = vector.broadcast %cst : f32 to vector<80x400xf32>
    %c0_1 = arith.constant 0 : index
    %c0_2 = arith.constant 0 : index
    %c0_3 = arith.constant 0 : index
    %2 = vector.load %arg2[%c0_1, %c0_2, %c0_3] : memref<5x80x80xf32, #tpu.memory_space<vmem>>, vector<1x80x80xf32>
    %3 = vector.shape_cast %2 : vector<1x80x80xf32> to vector<80x80xf32>
    %cst_4 = arith.constant dense<0.000000e+00> : vector<80x40xf32>
    %4 = tpu.matmul %3, %0, %cst_4 {dimension_numbers = #tpu.dot_dimension_numbers<[1], [0], [0], [1], [0, 0, 1, 1], [], []>} : vector<80x80xf32>, vector<80x40xf32>, vector<80x40xf32> -> vector<80x40xf32>
    %c0_5 = arith.constant 0 : index
    %c0_6 = arith.constant 0 : index
    %c0_7 = arith.constant 0 : index
    %5 = vector.load %arg3[%c0_5, %c0_6, %c0_7] : memref<5x40x400xf32, #tpu.memory_space<vmem>>, vector<1x40x400xf32>
    %6 = vector.shape_cast %5 : vector<1x40x400xf32> to vector<40x400xf32>
    %cst_8 = arith.constant dense<0.000000e+00> : vector<80x400xf32>
    %7 = tpu.matmul %4, %6, %cst_8 {dimension_numbers = #tpu.dot_dimension_numbers<[1], [0], [0], [1], [0, 0, 1, 1], [], []>} : vector<80x40xf32>, vector<40x400xf32>, vector<80x400xf32> -> vector<80x400xf32>
    %8 = arith.addf %1, %7 : vector<80x400xf32>
    %c1 = arith.constant 1 : index
    %c0_9 = arith.constant 0 : index
    %c0_10 = arith.constant 0 : index
    %9 = vector.load %arg2[%c1, %c0_9, %c0_10] : memref<5x80x80xf32, #tpu.memory_space<vmem>>, vector<1x80x80xf32>
    %10 = vector.shape_cast %9 : vector<1x80x80xf32> to vector<80x80xf32>
    %cst_11 = arith.constant dense<0.000000e+00> : vector<80x40xf32>
    %11 = tpu.matmul %10, %0, %cst_11 {dimension_numbers = #tpu.dot_dimension_numbers<[1], [0], [0], [1], [0, 0, 1, 1], [], []>} : vector<80x80xf32>, vector<80x40xf32>, vector<80x40xf32> -> vector<80x40xf32>
    %c1_12 = arith.constant 1 : index
    %c0_13 = arith.constant 0 : index
    %c0_14 = arith.constant 0 : index
    %12 = vector.load %arg3[%c1_12, %c0_13, %c0_14] : memref<5x40x400xf32, #tpu.memory_space<vmem>>, vector<1x40x400xf32>
    %13 = vector.shape_cast %12 : vector<1x40x400xf32> to vector<40x400xf32>
    %cst_15 = arith.constant dense<0.000000e+00> : vector<80x400xf32>
    %14 = tpu.matmul %11, %13, %cst_15 {dimension_numbers = #tpu.dot_dimension_numbers<[1], [0], [0], [1], [0, 0, 1, 1], [], []>} : vector<80x40xf32>, vector<40x400xf32>, vector<80x400xf32> -> vector<80x400xf32>
    %15 = arith.addf %8, %14 : vector<80x400xf32>
    %c2 = arith.constant 2 : index
    %c0_16 = arith.constant 0 : index
    %c0_17 = arith.constant 0 : index
    %16 = vector.load %arg2[%c2, %c0_16, %c0_17] : memref<5x80x80xf32, #tpu.memory_space<vmem>>, vector<1x80x80xf32>
    %17 = vector.shape_cast %16 : vector<1x80x80xf32> to vector<80x80xf32>
    %cst_18 = arith.constant dense<0.000000e+00> : vector<80x40xf32>
    %18 = tpu.matmul %17, %0, %cst_18 {dimension_numbers = #tpu.dot_dimension_numbers<[1], [0], [0], [1], [0, 0, 1, 1], [], []>} : vector<80x80xf32>, vector<80x40xf32>, vector<80x40xf32> -> vector<80x40xf32>
    %c2_19 = arith.constant 2 : index
    %c0_20 = arith.constant 0 : index
    %c0_21 = arith.constant 0 : index
    %19 = vector.load %arg3[%c2_19, %c0_20, %c0_21] : memref<5x40x400xf32, #tpu.memory_space<vmem>>, vector<1x40x400xf32>
    %20 = vector.shape_cast %19 : vector<1x40x400xf32> to vector<40x400xf32>
    %cst_22 = arith.constant dense<0.000000e+00> : vector<80x400xf32>
    %21 = tpu.matmul %18, %20, %cst_22 {dimension_numbers = #tpu.dot_dimension_numbers<[1], [0], [0], [1], [0, 0, 1, 1], [], []>} : vector<80x40xf32>, vector<40x400xf32>, vector<80x400xf32> -> vector<80x400xf32>
    %22 = arith.addf %15, %21 : vector<80x400xf32>
    %c3 = arith.constant 3 : index
    %c0_23 = arith.constant 0 : index
    %c0_24 = arith.constant 0 : index
    %23 = vector.load %arg2[%c3, %c0_23, %c0_24] : memref<5x80x80xf32, #tpu.memory_space<vmem>>, vector<1x80x80xf32>
    %24 = vector.shape_cast %23 : vector<1x80x80xf32> to vector<80x80xf32>
    %cst_25 = arith.constant dense<0.000000e+00> : vector<80x40xf32>
    %25 = tpu.matmul %24, %0, %cst_25 {dimension_numbers = #tpu.dot_dimension_numbers<[1], [0], [0], [1], [0, 0, 1, 1], [], []>} : vector<80x80xf32>, vector<80x40xf32>, vector<80x40xf32> -> vector<80x40xf32>
    %c3_26 = arith.constant 3 : index
    %c0_27 = arith.constant 0 : index
    %c0_28 = arith.constant 0 : index
    %26 = vector.load %arg3[%c3_26, %c0_27, %c0_28] : memref<5x40x400xf32, #tpu.memory_space<vmem>>, vector<1x40x400xf32>
    %27 = vector.shape_cast %26 : vector<1x40x400xf32> to vector<40x400xf32>
    %cst_29 = arith.constant dense<0.000000e+00> : vector<80x400xf32>
    %28 = tpu.matmul %25, %27, %cst_29 {dimension_numbers = #tpu.dot_dimension_numbers<[1], [0], [0], [1], [0, 0, 1, 1], [], []>} : vector<80x40xf32>, vector<40x400xf32>, vector<80x400xf32> -> vector<80x400xf32>
    %29 = arith.addf %22, %28 : vector<80x400xf32>
    %c4 = arith.constant 4 : index
    %c0_30 = arith.constant 0 : index
    %c0_31 = arith.constant 0 : index
    %30 = vector.load %arg2[%c4, %c0_30, %c0_31] : memref<5x80x80xf32, #tpu.memory_space<vmem>>, vector<1x80x80xf32>
    %31 = vector.shape_cast %30 : vector<1x80x80xf32> to vector<80x80xf32>
    %cst_32 = arith.constant dense<0.000000e+00> : vector<80x40xf32>
    %32 = tpu.matmul %31, %0, %cst_32 {dimension_numbers = #tpu.dot_dimension_numbers<[1], [0], [0], [1], [0, 0, 1, 1], [], []>} : vector<80x80xf32>, vector<80x40xf32>, vector<80x40xf32> -> vector<80x40xf32>
    %c4_33 = arith.constant 4 : index
    %c0_34 = arith.constant 0 : index
    %c0_35 = arith.constant 0 : index
    %33 = vector.load %arg3[%c4_33, %c0_34, %c0_35] : memref<5x40x400xf32, #tpu.memory_space<vmem>>, vector<1x40x400xf32>
    %34 = vector.shape_cast %33 : vector<1x40x400xf32> to vector<40x400xf32>
    %cst_36 = arith.constant dense<0.000000e+00> : vector<80x400xf32>
    %35 = tpu.matmul %32, %34, %cst_36 {dimension_numbers = #tpu.dot_dimension_numbers<[1], [0], [0], [1], [0, 0, 1, 1], [], []>} : vector<80x40xf32>, vector<40x400xf32>, vector<80x400xf32> -> vector<80x400xf32>
    %36 = arith.addf %29, %35 : vector<80x400xf32>
    %c0_37 = arith.constant 0 : index
    %c0_38 = arith.constant 0 : index
    %37 = vector.load %arg4[%c0_37, %c0_38] : memref<1x400xf32, #tpu.memory_space<vmem>>, vector<1x400xf32>
    %38 = vector.broadcast %37 : vector<1x400xf32> to vector<80x400xf32>
    %39 = arith.addf %36, %38 : vector<80x400xf32>
    %c0_39 = arith.constant 0 : index
    %40 = memref.load %arg0[%c0_39] : memref<4xf32, #tpu.memory_space<smem>>
    %cst_40 = arith.constant 0.000000e+00 : f32
    %41 = vector.broadcast %cst_40 : f32 to vector<80x400xf32>
    %42 = arith.cmpf oge, %39, %41 : vector<80x400xf32>
    %43 = vector.broadcast %40 : f32 to vector<80x400xf32>
    %44 = arith.mulf %43, %39 : vector<80x400xf32>
    %45 = arith.select %42, %39, %44 : vector<80x400xi1>, vector<80x400xf32>
    %c0_41 = arith.constant 0 : index
    %c0_42 = arith.constant 0 : index
    %c0_43 = arith.constant 0 : index
    %46 = vector.load %arg5[%c0_41, %c0_42, %c0_43] : memref<2x40x80xf32, #tpu.memory_space<vmem>>, vector<1x40x80xf32>
    %47 = vector.shape_cast %46 : vector<1x40x80xf32> to vector<40x80xf32>
    %cst_44 = arith.constant dense<0.000000e+00> : vector<40x400xf32>
    %48 = tpu.matmul %47, %45, %cst_44 {dimension_numbers = #tpu.dot_dimension_numbers<[1], [0], [0], [1], [0, 0, 1, 1], [], []>} : vector<40x80xf32>, vector<80x400xf32>, vector<40x400xf32> -> vector<40x400xf32>
    %c1_45 = arith.constant 1 : index
    %c0_46 = arith.constant 0 : index
    %c0_47 = arith.constant 0 : index
    %49 = vector.load %arg5[%c1_45, %c0_46, %c0_47] : memref<2x40x80xf32, #tpu.memory_space<vmem>>, vector<1x40x80xf32>
    %50 = vector.shape_cast %49 : vector<1x40x80xf32> to vector<40x80xf32>
    %cst_48 = arith.constant dense<0.000000e+00> : vector<40x400xf32>
    %51 = tpu.matmul %50, %45, %cst_48 {dimension_numbers = #tpu.dot_dimension_numbers<[1], [0], [0], [1], [0, 0, 1, 1], [], []>} : vector<40x80xf32>, vector<80x400xf32>, vector<40x400xf32> -> vector<40x400xf32>
    %52 = arith.maximumf %48, %51 : vector<40x400xf32>
    %c0_49 = arith.constant 0 : index
    %c0_50 = arith.constant 0 : index
    %c0_51 = arith.constant 0 : index
    %53 = vector.load %arg6[%c0_49, %c0_50, %c0_51] : memref<2x400x200xf32, #tpu.memory_space<vmem>>, vector<1x400x200xf32>
    %54 = vector.shape_cast %53 : vector<1x400x200xf32> to vector<400x200xf32>
    %cst_52 = arith.constant dense<0.000000e+00> : vector<40x200xf32>
    %55 = tpu.matmul %52, %54, %cst_52 {dimension_numbers = #tpu.dot_dimension_numbers<[1], [0], [0], [1], [0, 0, 1, 1], [], []>} : vector<40x400xf32>, vector<400x200xf32>, vector<40x200xf32> -> vector<40x200xf32>
    %c1_53 = arith.constant 1 : index
    %c0_54 = arith.constant 0 : index
    %c0_55 = arith.constant 0 : index
    %56 = vector.load %arg6[%c1_53, %c0_54, %c0_55] : memref<2x400x200xf32, #tpu.memory_space<vmem>>, vector<1x400x200xf32>
    %57 = vector.shape_cast %56 : vector<1x400x200xf32> to vector<400x200xf32>
    %cst_56 = arith.constant dense<0.000000e+00> : vector<40x200xf32>
    %58 = tpu.matmul %52, %57, %cst_56 {dimension_numbers = #tpu.dot_dimension_numbers<[1], [0], [0], [1], [0, 0, 1, 1], [], []>} : vector<40x400xf32>, vector<400x200xf32>, vector<40x200xf32> -> vector<40x200xf32>
    %59 = arith.maximumf %55, %58 : vector<40x200xf32>
    %c1_57 = arith.constant 1 : index
    %60 = memref.load %arg0[%c1_57] : memref<4xf32, #tpu.memory_space<smem>>
    %cst_58 = arith.constant 0.000000e+00 : f32
    %61 = vector.broadcast %cst_58 : f32 to vector<40x200xf32>
    %62 = arith.cmpf oge, %59, %61 : vector<40x200xf32>
    %63 = vector.broadcast %60 : f32 to vector<40x200xf32>
    %64 = arith.mulf %63, %59 : vector<40x200xf32>
    %65 = arith.select %62, %59, %64 : vector<40x200xi1>, vector<40x200xf32>
    %cst_59 = arith.constant 0.000000e+00 : f32
    %66 = vector.broadcast %cst_59 : f32 to vector<40x100xf32>
    %c0_60 = arith.constant 0 : index
    %c0_61 = arith.constant 0 : index
    %c0_62 = arith.constant 0 : index
    %67 = vector.load %arg7[%c0_60, %c0_61, %c0_62] : memref<5x40x40xf32, #tpu.memory_space<vmem>>, vector<1x40x40xf32>
    %68 = vector.shape_cast %67 : vector<1x40x40xf32> to vector<40x40xf32>
    %cst_63 = arith.constant dense<0.000000e+00> : vector<40x200xf32>
    %69 = tpu.matmul %68, %65, %cst_63 {dimension_numbers = #tpu.dot_dimension_numbers<[1], [0], [0], [1], [0, 0, 1, 1], [], []>} : vector<40x40xf32>, vector<40x200xf32>, vector<40x200xf32> -> vector<40x200xf32>
    %c0_64 = arith.constant 0 : index
    %c0_65 = arith.constant 0 : index
    %c0_66 = arith.constant 0 : index
    %70 = vector.load %arg8[%c0_64, %c0_65, %c0_66] : memref<5x200x100xf32, #tpu.memory_space<vmem>>, vector<1x200x100xf32>
    %71 = vector.shape_cast %70 : vector<1x200x100xf32> to vector<200x100xf32>
    %cst_67 = arith.constant dense<0.000000e+00> : vector<40x100xf32>
    %72 = tpu.matmul %69, %71, %cst_67 {dimension_numbers = #tpu.dot_dimension_numbers<[1], [0], [0], [1], [0, 0, 1, 1], [], []>} : vector<40x200xf32>, vector<200x100xf32>, vector<40x100xf32> -> vector<40x100xf32>
    %73 = arith.addf %66, %72 : vector<40x100xf32>
    %c1_68 = arith.constant 1 : index
    %c0_69 = arith.constant 0 : index
    %c0_70 = arith.constant 0 : index
    %74 = vector.load %arg7[%c1_68, %c0_69, %c0_70] : memref<5x40x40xf32, #tpu.memory_space<vmem>>, vector<1x40x40xf32>
    %75 = vector.shape_cast %74 : vector<1x40x40xf32> to vector<40x40xf32>
    %cst_71 = arith.constant dense<0.000000e+00> : vector<40x200xf32>
    %76 = tpu.matmul %75, %65, %cst_71 {dimension_numbers = #tpu.dot_dimension_numbers<[1], [0], [0], [1], [0, 0, 1, 1], [], []>} : vector<40x40xf32>, vector<40x200xf32>, vector<40x200xf32> -> vector<40x200xf32>
    %c1_72 = arith.constant 1 : index
    %c0_73 = arith.constant 0 : index
    %c0_74 = arith.constant 0 : index
    %77 = vector.load %arg8[%c1_72, %c0_73, %c0_74] : memref<5x200x100xf32, #tpu.memory_space<vmem>>, vector<1x200x100xf32>
    %78 = vector.shape_cast %77 : vector<1x200x100xf32> to vector<200x100xf32>
    %cst_75 = arith.constant dense<0.000000e+00> : vector<40x100xf32>
    %79 = tpu.matmul %76, %78, %cst_75 {dimension_numbers = #tpu.dot_dimension_numbers<[1], [0], [0], [1], [0, 0, 1, 1], [], []>} : vector<40x200xf32>, vector<200x100xf32>, vector<40x100xf32> -> vector<40x100xf32>
    %80 = arith.addf %73, %79 : vector<40x100xf32>
    %c2_76 = arith.constant 2 : index
    %c0_77 = arith.constant 0 : index
    %c0_78 = arith.constant 0 : index
    %81 = vector.load %arg7[%c2_76, %c0_77, %c0_78] : memref<5x40x40xf32, #tpu.memory_space<vmem>>, vector<1x40x40xf32>
    %82 = vector.shape_cast %81 : vector<1x40x40xf32> to vector<40x40xf32>
    %cst_79 = arith.constant dense<0.000000e+00> : vector<40x200xf32>
    %83 = tpu.matmul %82, %65, %cst_79 {dimension_numbers = #tpu.dot_dimension_numbers<[1], [0], [0], [1], [0, 0, 1, 1], [], []>} : vector<40x40xf32>, vector<40x200xf32>, vector<40x200xf32> -> vector<40x200xf32>
    %c2_80 = arith.constant 2 : index
    %c0_81 = arith.constant 0 : index
    %c0_82 = arith.constant 0 : index
    %84 = vector.load %arg8[%c2_80, %c0_81, %c0_82] : memref<5x200x100xf32, #tpu.memory_space<vmem>>, vector<1x200x100xf32>
    %85 = vector.shape_cast %84 : vector<1x200x100xf32> to vector<200x100xf32>
    %cst_83 = arith.constant dense<0.000000e+00> : vector<40x100xf32>
    %86 = tpu.matmul %83, %85, %cst_83 {dimension_numbers = #tpu.dot_dimension_numbers<[1], [0], [0], [1], [0, 0, 1, 1], [], []>} : vector<40x200xf32>, vector<200x100xf32>, vector<40x100xf32> -> vector<40x100xf32>
    %87 = arith.addf %80, %86 : vector<40x100xf32>
    %c3_84 = arith.constant 3 : index
    %c0_85 = arith.constant 0 : index
    %c0_86 = arith.constant 0 : index
    %88 = vector.load %arg7[%c3_84, %c0_85, %c0_86] : memref<5x40x40xf32, #tpu.memory_space<vmem>>, vector<1x40x40xf32>
    %89 = vector.shape_cast %88 : vector<1x40x40xf32> to vector<40x40xf32>
    %cst_87 = arith.constant dense<0.000000e+00> : vector<40x200xf32>
    %90 = tpu.matmul %89, %65, %cst_87 {dimension_numbers = #tpu.dot_dimension_numbers<[1], [0], [0], [1], [0, 0, 1, 1], [], []>} : vector<40x40xf32>, vector<40x200xf32>, vector<40x200xf32> -> vector<40x200xf32>
    %c3_88 = arith.constant 3 : index
    %c0_89 = arith.constant 0 : index
    %c0_90 = arith.constant 0 : index
    %91 = vector.load %arg8[%c3_88, %c0_89, %c0_90] : memref<5x200x100xf32, #tpu.memory_space<vmem>>, vector<1x200x100xf32>
    %92 = vector.shape_cast %91 : vector<1x200x100xf32> to vector<200x100xf32>
    %cst_91 = arith.constant dense<0.000000e+00> : vector<40x100xf32>
    %93 = tpu.matmul %90, %92, %cst_91 {dimension_numbers = #tpu.dot_dimension_numbers<[1], [0], [0], [1], [0, 0, 1, 1], [], []>} : vector<40x200xf32>, vector<200x100xf32>, vector<40x100xf32> -> vector<40x100xf32>
    %94 = arith.addf %87, %93 : vector<40x100xf32>
    %c4_92 = arith.constant 4 : index
    %c0_93 = arith.constant 0 : index
    %c0_94 = arith.constant 0 : index
    %95 = vector.load %arg7[%c4_92, %c0_93, %c0_94] : memref<5x40x40xf32, #tpu.memory_space<vmem>>, vector<1x40x40xf32>
    %96 = vector.shape_cast %95 : vector<1x40x40xf32> to vector<40x40xf32>
    %cst_95 = arith.constant dense<0.000000e+00> : vector<40x200xf32>
    %97 = tpu.matmul %96, %65, %cst_95 {dimension_numbers = #tpu.dot_dimension_numbers<[1], [0], [0], [1], [0, 0, 1, 1], [], []>} : vector<40x40xf32>, vector<40x200xf32>, vector<40x200xf32> -> vector<40x200xf32>
    %c4_96 = arith.constant 4 : index
    %c0_97 = arith.constant 0 : index
    %c0_98 = arith.constant 0 : index
    %98 = vector.load %arg8[%c4_96, %c0_97, %c0_98] : memref<5x200x100xf32, #tpu.memory_space<vmem>>, vector<1x200x100xf32>
    %99 = vector.shape_cast %98 : vector<1x200x100xf32> to vector<200x100xf32>
    %cst_99 = arith.constant dense<0.000000e+00> : vector<40x100xf32>
    %100 = tpu.matmul %97, %99, %cst_99 {dimension_numbers = #tpu.dot_dimension_numbers<[1], [0], [0], [1], [0, 0, 1, 1], [], []>} : vector<40x200xf32>, vector<200x100xf32>, vector<40x100xf32> -> vector<40x100xf32>
    %101 = arith.addf %94, %100 : vector<40x100xf32>
    %c0_100 = arith.constant 0 : index
    %c0_101 = arith.constant 0 : index
    %102 = vector.load %arg9[%c0_100, %c0_101] : memref<1x100xf32, #tpu.memory_space<vmem>>, vector<1x100xf32>
    %103 = vector.broadcast %102 : vector<1x100xf32> to vector<40x100xf32>
    %104 = arith.addf %101, %103 : vector<40x100xf32>
    %c2_102 = arith.constant 2 : index
    %105 = memref.load %arg0[%c2_102] : memref<4xf32, #tpu.memory_space<smem>>
    %cst_103 = arith.constant 0.000000e+00 : f32
    %106 = vector.broadcast %cst_103 : f32 to vector<40x100xf32>
    %107 = arith.cmpf oge, %104, %106 : vector<40x100xf32>
    %108 = vector.broadcast %105 : f32 to vector<40x100xf32>
    %109 = arith.mulf %108, %104 : vector<40x100xf32>
    %110 = arith.select %107, %104, %109 : vector<40x100xi1>, vector<40x100xf32>
    %111 = vector.extract_strided_slice %110 {offsets = [0, 0], sizes = [1, 100], strides = [1, 1]} : vector<40x100xf32> to vector<1x100xf32>
    %c0_104 = arith.constant 0 : index
    %c0_105 = arith.constant 0 : index
    %112 = vector.load %arg15[%c0_104, %c0_105] : memref<2x2000xf32, #tpu.memory_space<vmem>>, vector<1x100xf32>
    tpu.vector_store %arg15[%c0_104, %c0_105], %111 {strides = array<i32>} : memref<2x2000xf32, #tpu.memory_space<vmem>>, vector<1x100xf32>,
    %113 = vector.extract_strided_slice %110 {offsets = [1, 0], sizes = [1, 100], strides = [1, 1]} : vector<40x100xf32> to vector<1x100xf32>
    %c0_106 = arith.constant 0 : index
    %c100 = arith.constant 100 : index
    %114 = vector.load %arg15[%c0_106, %c100] : memref<2x2000xf32, #tpu.memory_space<vmem>>, vector<1x100xf32>
    tpu.vector_store %arg15[%c0_106, %c100], %113 {strides = array<i32>} : memref<2x2000xf32, #tpu.memory_space<vmem>>, vector<1x100xf32>,
    %115 = vector.extract_strided_slice %110 {offsets = [2, 0], sizes = [1, 100], strides = [1, 1]} : vector<40x100xf32> to vector<1x100xf32>
    %c0_107 = arith.constant 0 : index
    %c200 = arith.constant 200 : index
    %116 = vector.load %arg15[%c0_107, %c200] : memref<2x2000xf32, #tpu.memory_space<vmem>>, vector<1x100xf32>
    tpu.vector_store %arg15[%c0_107, %c200], %115 {strides = array<i32>} : memref<2x2000xf32, #tpu.memory_space<vmem>>, vector<1x100xf32>,
    %117 = vector.extract_strided_slice %110 {offsets = [3, 0], sizes = [1, 100], strides = [1, 1]} : vector<40x100xf32> to vector<1x100xf32>
    %c0_108 = arith.constant 0 : index
    %c300 = arith.constant 300 : index
    %118 = vector.load %arg15[%c0_108, %c300] : memref<2x2000xf32, #tpu.memory_space<vmem>>, vector<1x100xf32>
    tpu.vector_store %arg15[%c0_108, %c300], %117 {strides = array<i32>} : memref<2x2000xf32, #tpu.memory_space<vmem>>, vector<1x100xf32>,
    %119 = vector.extract_strided_slice %110 {offsets = [4, 0], sizes = [1, 100], strides = [1, 1]} : vector<40x100xf32> to vector<1x100xf32>
    %c0_109 = arith.constant 0 : index
    %c400 = arith.constant 400 : index
    %120 = vector.load %arg15[%c0_109, %c400] : memref<2x2000xf32, #tpu.memory_space<vmem>>, vector<1x100xf32>
    tpu.vector_store %arg15[%c0_109, %c400], %119 {strides = array<i32>} : memref<2x2000xf32, #tpu.memory_space<vmem>>, vector<1x100xf32>,
    %121 = vector.extract_strided_slice %110 {offsets = [5, 0], sizes = [1, 100], strides = [1, 1]} : vector<40x100xf32> to vector<1x100xf32>
    %c0_110 = arith.constant 0 : index
    %c500 = arith.constant 500 : index
    %122 = vector.load %arg15[%c0_110, %c500] : memref<2x2000xf32, #tpu.memory_space<vmem>>, vector<1x100xf32>
    tpu.vector_store %arg15[%c0_110, %c500], %121 {strides = array<i32>} : memref<2x2000xf32, #tpu.memory_space<vmem>>, vector<1x100xf32>,
    %123 = vector.extract_strided_slice %110 {offsets = [6, 0], sizes = [1, 100], strides = [1, 1]} : vector<40x100xf32> to vector<1x100xf32>
    %c0_111 = arith.constant 0 : index
    %c600 = arith.constant 600 : index
    %124 = vector.load %arg15[%c0_111, %c600] : memref<2x2000xf32, #tpu.memory_space<vmem>>, vector<1x100xf32>
    tpu.vector_store %arg15[%c0_111, %c600], %123 {strides = array<i32>} : memref<2x2000xf32, #tpu.memory_space<vmem>>, vector<1x100xf32>,
    %125 = vector.extract_strided_slice %110 {offsets = [7, 0], sizes = [1, 100], strides = [1, 1]} : vector<40x100xf32> to vector<1x100xf32>
    %c0_112 = arith.constant 0 : index
    %c700 = arith.constant 700 : index
    %126 = vector.load %arg15[%c0_112, %c700] : memref<2x2000xf32, #tpu.memory_space<vmem>>, vector<1x100xf32>
    tpu.vector_store %arg15[%c0_112, %c700], %125 {strides = array<i32>} : memref<2x2000xf32, #tpu.memory_space<vmem>>, vector<1x100xf32>,
    %127 = vector.extract_strided_slice %110 {offsets = [8, 0], sizes = [1, 100], strides = [1, 1]} : vector<40x100xf32> to vector<1x100xf32>
    %c0_113 = arith.constant 0 : index
    %c800 = arith.constant 800 : index
    %128 = vector.load %arg15[%c0_113, %c800] : memref<2x2000xf32, #tpu.memory_space<vmem>>, vector<1x100xf32>
    tpu.vector_store %arg15[%c0_113, %c800], %127 {strides = array<i32>} : memref<2x2000xf32, #tpu.memory_space<vmem>>, vector<1x100xf32>,
    %129 = vector.extract_strided_slice %110 {offsets = [9, 0], sizes = [1, 100], strides = [1, 1]} : vector<40x100xf32> to vector<1x100xf32>
    %c0_114 = arith.constant 0 : index
    %c900 = arith.constant 900 : index
    %130 = vector.load %arg15[%c0_114, %c900] : memref<2x2000xf32, #tpu.memory_space<vmem>>, vector<1x100xf32>
    tpu.vector_store %arg15[%c0_114, %c900], %129 {strides = array<i32>} : memref<2x2000xf32, #tpu.memory_space<vmem>>, vector<1x100xf32>,
    %131 = vector.extract_strided_slice %110 {offsets = [10, 0], sizes = [1, 100], strides = [1, 1]} : vector<40x100xf32> to vector<1x100xf32>
    %c0_115 = arith.constant 0 : index
    %c1000 = arith.constant 1000 : index
    %132 = vector.load %arg15[%c0_115, %c1000] : memref<2x2000xf32, #tpu.memory_space<vmem>>, vector<1x100xf32>
    tpu.vector_store %arg15[%c0_115, %c1000], %131 {strides = array<i32>} : memref<2x2000xf32, #tpu.memory_space<vmem>>, vector<1x100xf32>,
    %133 = vector.extract_strided_slice %110 {offsets = [11, 0], sizes = [1, 100], strides = [1, 1]} : vector<40x100xf32> to vector<1x100xf32>
    %c0_116 = arith.constant 0 : index
    %c1100 = arith.constant 1100 : index
    %134 = vector.load %arg15[%c0_116, %c1100] : memref<2x2000xf32, #tpu.memory_space<vmem>>, vector<1x100xf32>
    tpu.vector_store %arg15[%c0_116, %c1100], %133 {strides = array<i32>} : memref<2x2000xf32, #tpu.memory_space<vmem>>, vector<1x100xf32>,
    %135 = vector.extract_strided_slice %110 {offsets = [12, 0], sizes = [1, 100], strides = [1, 1]} : vector<40x100xf32> to vector<1x100xf32>
    %c0_117 = arith.constant 0 : index
    %c1200 = arith.constant 1200 : index
    %136 = vector.load %arg15[%c0_117, %c1200] : memref<2x2000xf32, #tpu.memory_space<vmem>>, vector<1x100xf32>
    tpu.vector_store %arg15[%c0_117, %c1200], %135 {strides = array<i32>} : memref<2x2000xf32, #tpu.memory_space<vmem>>, vector<1x100xf32>,
    %137 = vector.extract_strided_slice %110 {offsets = [13, 0], sizes = [1, 100], strides = [1, 1]} : vector<40x100xf32> to vector<1x100xf32>
    %c0_118 = arith.constant 0 : index
    %c1300 = arith.constant 1300 : index
    %138 = vector.load %arg15[%c0_118, %c1300] : memref<2x2000xf32, #tpu.memory_space<vmem>>, vector<1x100xf32>
    tpu.vector_store %arg15[%c0_118, %c1300], %137 {strides = array<i32>} : memref<2x2000xf32, #tpu.memory_space<vmem>>, vector<1x100xf32>,
    %139 = vector.extract_strided_slice %110 {offsets = [14, 0], sizes = [1, 100], strides = [1, 1]} : vector<40x100xf32> to vector<1x100xf32>
    %c0_119 = arith.constant 0 : index
    %c1400 = arith.constant 1400 : index
    %140 = vector.load %arg15[%c0_119, %c1400] : memref<2x2000xf32, #tpu.memory_space<vmem>>, vector<1x100xf32>
    tpu.vector_store %arg15[%c0_119, %c1400], %139 {strides = array<i32>} : memref<2x2000xf32, #tpu.memory_space<vmem>>, vector<1x100xf32>,
    %141 = vector.extract_strided_slice %110 {offsets = [15, 0], sizes = [1, 100], strides = [1, 1]} : vector<40x100xf32> to vector<1x100xf32>
    %c0_120 = arith.constant 0 : index
    %c1500 = arith.constant 1500 : index
    %142 = vector.load %arg15[%c0_120, %c1500] : memref<2x2000xf32, #tpu.memory_space<vmem>>, vector<1x100xf32>
    tpu.vector_store %arg15[%c0_120, %c1500], %141 {strides = array<i32>} : memref<2x2000xf32, #tpu.memory_space<vmem>>, vector<1x100xf32>,
    %143 = vector.extract_strided_slice %110 {offsets = [16, 0], sizes = [1, 100], strides = [1, 1]} : vector<40x100xf32> to vector<1x100xf32>
    %c0_121 = arith.constant 0 : index
    %c1600 = arith.constant 1600 : index
    %144 = vector.load %arg15[%c0_121, %c1600] : memref<2x2000xf32, #tpu.memory_space<vmem>>, vector<1x100xf32>
    tpu.vector_store %arg15[%c0_121, %c1600], %143 {strides = array<i32>} : memref<2x2000xf32, #tpu.memory_space<vmem>>, vector<1x100xf32>,
    %145 = vector.extract_strided_slice %110 {offsets = [17, 0], sizes = [1, 100], strides = [1, 1]} : vector<40x100xf32> to vector<1x100xf32>
    %c0_122 = arith.constant 0 : index
    %c1700 = arith.constant 1700 : index
    %146 = vector.load %arg15[%c0_122, %c1700] : memref<2x2000xf32, #tpu.memory_space<vmem>>, vector<1x100xf32>
    tpu.vector_store %arg15[%c0_122, %c1700], %145 {strides = array<i32>} : memref<2x2000xf32, #tpu.memory_space<vmem>>, vector<1x100xf32>,
    %147 = vector.extract_strided_slice %110 {offsets = [18, 0], sizes = [1, 100], strides = [1, 1]} : vector<40x100xf32> to vector<1x100xf32>
    %c0_123 = arith.constant 0 : index
    %c1800 = arith.constant 1800 : index
    %148 = vector.load %arg15[%c0_123, %c1800] : memref<2x2000xf32, #tpu.memory_space<vmem>>, vector<1x100xf32>
    tpu.vector_store %arg15[%c0_123, %c1800], %147 {strides = array<i32>} : memref<2x2000xf32, #tpu.memory_space<vmem>>, vector<1x100xf32>,
    %149 = vector.extract_strided_slice %110 {offsets = [19, 0], sizes = [1, 100], strides = [1, 1]} : vector<40x100xf32> to vector<1x100xf32>
    %c0_124 = arith.constant 0 : index
    %c1900 = arith.constant 1900 : index
    %150 = vector.load %arg15[%c0_124, %c1900] : memref<2x2000xf32, #tpu.memory_space<vmem>>, vector<1x100xf32>
    tpu.vector_store %arg15[%c0_124, %c1900], %149 {strides = array<i32>} : memref<2x2000xf32, #tpu.memory_space<vmem>>, vector<1x100xf32>,
    %151 = vector.extract_strided_slice %110 {offsets = [20, 0], sizes = [1, 100], strides = [1, 1]} : vector<40x100xf32> to vector<1x100xf32>
    %c1_125 = arith.constant 1 : index
    %c0_126 = arith.constant 0 : index
    %152 = vector.load %arg15[%c1_125, %c0_126] : memref<2x2000xf32, #tpu.memory_space<vmem>>, vector<1x100xf32>
    tpu.vector_store %arg15[%c1_125, %c0_126], %151 {strides = array<i32>} : memref<2x2000xf32, #tpu.memory_space<vmem>>, vector<1x100xf32>,
    %153 = vector.extract_strided_slice %110 {offsets = [21, 0], sizes = [1, 100], strides = [1, 1]} : vector<40x100xf32> to vector<1x100xf32>
    %c1_127 = arith.constant 1 : index
    %c100_128 = arith.constant 100 : index
    %154 = vector.load %arg15[%c1_127, %c100_128] : memref<2x2000xf32, #tpu.memory_space<vmem>>, vector<1x100xf32>
    tpu.vector_store %arg15[%c1_127, %c100_128], %153 {strides = array<i32>} : memref<2x2000xf32, #tpu.memory_space<vmem>>, vector<1x100xf32>,
    %155 = vector.extract_strided_slice %110 {offsets = [22, 0], sizes = [1, 100], strides = [1, 1]} : vector<40x100xf32> to vector<1x100xf32>
    %c1_129 = arith.constant 1 : index
    %c200_130 = arith.constant 200 : index
    %156 = vector.load %arg15[%c1_129, %c200_130] : memref<2x2000xf32, #tpu.memory_space<vmem>>, vector<1x100xf32>
    tpu.vector_store %arg15[%c1_129, %c200_130], %155 {strides = array<i32>} : memref<2x2000xf32, #tpu.memory_space<vmem>>, vector<1x100xf32>,
    %157 = vector.extract_strided_slice %110 {offsets = [23, 0], sizes = [1, 100], strides = [1, 1]} : vector<40x100xf32> to vector<1x100xf32>
    %c1_131 = arith.constant 1 : index
    %c300_132 = arith.constant 300 : index
    %158 = vector.load %arg15[%c1_131, %c300_132] : memref<2x2000xf32, #tpu.memory_space<vmem>>, vector<1x100xf32>
    tpu.vector_store %arg15[%c1_131, %c300_132], %157 {strides = array<i32>} : memref<2x2000xf32, #tpu.memory_space<vmem>>, vector<1x100xf32>,
    %159 = vector.extract_strided_slice %110 {offsets = [24, 0], sizes = [1, 100], strides = [1, 1]} : vector<40x100xf32> to vector<1x100xf32>
    %c1_133 = arith.constant 1 : index
    %c400_134 = arith.constant 400 : index
    %160 = vector.load %arg15[%c1_133, %c400_134] : memref<2x2000xf32, #tpu.memory_space<vmem>>, vector<1x100xf32>
    tpu.vector_store %arg15[%c1_133, %c400_134], %159 {strides = array<i32>} : memref<2x2000xf32, #tpu.memory_space<vmem>>, vector<1x100xf32>,
    %161 = vector.extract_strided_slice %110 {offsets = [25, 0], sizes = [1, 100], strides = [1, 1]} : vector<40x100xf32> to vector<1x100xf32>
    %c1_135 = arith.constant 1 : index
    %c500_136 = arith.constant 500 : index
    %162 = vector.load %arg15[%c1_135, %c500_136] : memref<2x2000xf32, #tpu.memory_space<vmem>>, vector<1x100xf32>
    tpu.vector_store %arg15[%c1_135, %c500_136], %161 {strides = array<i32>} : memref<2x2000xf32, #tpu.memory_space<vmem>>, vector<1x100xf32>,
    %163 = vector.extract_strided_slice %110 {offsets = [26, 0], sizes = [1, 100], strides = [1, 1]} : vector<40x100xf32> to vector<1x100xf32>
    %c1_137 = arith.constant 1 : index
    %c600_138 = arith.constant 600 : index
    %164 = vector.load %arg15[%c1_137, %c600_138] : memref<2x2000xf32, #tpu.memory_space<vmem>>, vector<1x100xf32>
    tpu.vector_store %arg15[%c1_137, %c600_138], %163 {strides = array<i32>} : memref<2x2000xf32, #tpu.memory_space<vmem>>, vector<1x100xf32>,
    %165 = vector.extract_strided_slice %110 {offsets = [27, 0], sizes = [1, 100], strides = [1, 1]} : vector<40x100xf32> to vector<1x100xf32>
    %c1_139 = arith.constant 1 : index
    %c700_140 = arith.constant 700 : index
    %166 = vector.load %arg15[%c1_139, %c700_140] : memref<2x2000xf32, #tpu.memory_space<vmem>>, vector<1x100xf32>
    tpu.vector_store %arg15[%c1_139, %c700_140], %165 {strides = array<i32>} : memref<2x2000xf32, #tpu.memory_space<vmem>>, vector<1x100xf32>,
    %167 = vector.extract_strided_slice %110 {offsets = [28, 0], sizes = [1, 100], strides = [1, 1]} : vector<40x100xf32> to vector<1x100xf32>
    %c1_141 = arith.constant 1 : index
    %c800_142 = arith.constant 800 : index
    %168 = vector.load %arg15[%c1_141, %c800_142] : memref<2x2000xf32, #tpu.memory_space<vmem>>, vector<1x100xf32>
    tpu.vector_store %arg15[%c1_141, %c800_142], %167 {strides = array<i32>} : memref<2x2000xf32, #tpu.memory_space<vmem>>, vector<1x100xf32>,
    %169 = vector.extract_strided_slice %110 {offsets = [29, 0], sizes = [1, 100], strides = [1, 1]} : vector<40x100xf32> to vector<1x100xf32>
    %c1_143 = arith.constant 1 : index
    %c900_144 = arith.constant 900 : index
    %170 = vector.load %arg15[%c1_143, %c900_144] : memref<2x2000xf32, #tpu.memory_space<vmem>>, vector<1x100xf32>
    tpu.vector_store %arg15[%c1_143, %c900_144], %169 {strides = array<i32>} : memref<2x2000xf32, #tpu.memory_space<vmem>>, vector<1x100xf32>,
    %171 = vector.extract_strided_slice %110 {offsets = [30, 0], sizes = [1, 100], strides = [1, 1]} : vector<40x100xf32> to vector<1x100xf32>
    %c1_145 = arith.constant 1 : index
    %c1000_146 = arith.constant 1000 : index
    %172 = vector.load %arg15[%c1_145, %c1000_146] : memref<2x2000xf32, #tpu.memory_space<vmem>>, vector<1x100xf32>
    tpu.vector_store %arg15[%c1_145, %c1000_146], %171 {strides = array<i32>} : memref<2x2000xf32, #tpu.memory_space<vmem>>, vector<1x100xf32>,
    %173 = vector.extract_strided_slice %110 {offsets = [31, 0], sizes = [1, 100], strides = [1, 1]} : vector<40x100xf32> to vector<1x100xf32>
    %c1_147 = arith.constant 1 : index
    %c1100_148 = arith.constant 1100 : index
    %174 = vector.load %arg15[%c1_147, %c1100_148] : memref<2x2000xf32, #tpu.memory_space<vmem>>, vector<1x100xf32>
    tpu.vector_store %arg15[%c1_147, %c1100_148], %173 {strides = array<i32>} : memref<2x2000xf32, #tpu.memory_space<vmem>>, vector<1x100xf32>,
    %175 = vector.extract_strided_slice %110 {offsets = [32, 0], sizes = [1, 100], strides = [1, 1]} : vector<40x100xf32> to vector<1x100xf32>
    %c1_149 = arith.constant 1 : index
    %c1200_150 = arith.constant 1200 : index
    %176 = vector.load %arg15[%c1_149, %c1200_150] : memref<2x2000xf32, #tpu.memory_space<vmem>>, vector<1x100xf32>
    tpu.vector_store %arg15[%c1_149, %c1200_150], %175 {strides = array<i32>} : memref<2x2000xf32, #tpu.memory_space<vmem>>, vector<1x100xf32>,
    %177 = vector.extract_strided_slice %110 {offsets = [33, 0], sizes = [1, 100], strides = [1, 1]} : vector<40x100xf32> to vector<1x100xf32>
    %c1_151 = arith.constant 1 : index
    %c1300_152 = arith.constant 1300 : index
    %178 = vector.load %arg15[%c1_151, %c1300_152] : memref<2x2000xf32, #tpu.memory_space<vmem>>, vector<1x100xf32>
    tpu.vector_store %arg15[%c1_151, %c1300_152], %177 {strides = array<i32>} : memref<2x2000xf32, #tpu.memory_space<vmem>>, vector<1x100xf32>,
    %179 = vector.extract_strided_slice %110 {offsets = [34, 0], sizes = [1, 100], strides = [1, 1]} : vector<40x100xf32> to vector<1x100xf32>
    %c1_153 = arith.constant 1 : index
    %c1400_154 = arith.constant 1400 : index
    %180 = vector.load %arg15[%c1_153, %c1400_154] : memref<2x2000xf32, #tpu.memory_space<vmem>>, vector<1x100xf32>
    tpu.vector_store %arg15[%c1_153, %c1400_154], %179 {strides = array<i32>} : memref<2x2000xf32, #tpu.memory_space<vmem>>, vector<1x100xf32>,
    %181 = vector.extract_strided_slice %110 {offsets = [35, 0], sizes = [1, 100], strides = [1, 1]} : vector<40x100xf32> to vector<1x100xf32>
    %c1_155 = arith.constant 1 : index
    %c1500_156 = arith.constant 1500 : index
    %182 = vector.load %arg15[%c1_155, %c1500_156] : memref<2x2000xf32, #tpu.memory_space<vmem>>, vector<1x100xf32>
    tpu.vector_store %arg15[%c1_155, %c1500_156], %181 {strides = array<i32>} : memref<2x2000xf32, #tpu.memory_space<vmem>>, vector<1x100xf32>,
    %183 = vector.extract_strided_slice %110 {offsets = [36, 0], sizes = [1, 100], strides = [1, 1]} : vector<40x100xf32> to vector<1x100xf32>
    %c1_157 = arith.constant 1 : index
    %c1600_158 = arith.constant 1600 : index
    %184 = vector.load %arg15[%c1_157, %c1600_158] : memref<2x2000xf32, #tpu.memory_space<vmem>>, vector<1x100xf32>
    tpu.vector_store %arg15[%c1_157, %c1600_158], %183 {strides = array<i32>} : memref<2x2000xf32, #tpu.memory_space<vmem>>, vector<1x100xf32>,
    %185 = vector.extract_strided_slice %110 {offsets = [37, 0], sizes = [1, 100], strides = [1, 1]} : vector<40x100xf32> to vector<1x100xf32>
    %c1_159 = arith.constant 1 : index
    %c1700_160 = arith.constant 1700 : index
    %186 = vector.load %arg15[%c1_159, %c1700_160] : memref<2x2000xf32, #tpu.memory_space<vmem>>, vector<1x100xf32>
    tpu.vector_store %arg15[%c1_159, %c1700_160], %185 {strides = array<i32>} : memref<2x2000xf32, #tpu.memory_space<vmem>>, vector<1x100xf32>,
    %187 = vector.extract_strided_slice %110 {offsets = [38, 0], sizes = [1, 100], strides = [1, 1]} : vector<40x100xf32> to vector<1x100xf32>
    %c1_161 = arith.constant 1 : index
    %c1800_162 = arith.constant 1800 : index
    %188 = vector.load %arg15[%c1_161, %c1800_162] : memref<2x2000xf32, #tpu.memory_space<vmem>>, vector<1x100xf32>
    tpu.vector_store %arg15[%c1_161, %c1800_162], %187 {strides = array<i32>} : memref<2x2000xf32, #tpu.memory_space<vmem>>, vector<1x100xf32>,
    %189 = vector.extract_strided_slice %110 {offsets = [39, 0], sizes = [1, 100], strides = [1, 1]} : vector<40x100xf32> to vector<1x100xf32>
    %c1_163 = arith.constant 1 : index
    %c1900_164 = arith.constant 1900 : index
    %190 = vector.load %arg15[%c1_163, %c1900_164] : memref<2x2000xf32, #tpu.memory_space<vmem>>, vector<1x100xf32>
    tpu.vector_store %arg15[%c1_163, %c1900_164], %189 {strides = array<i32>} : memref<2x2000xf32, #tpu.memory_space<vmem>>, vector<1x100xf32>,
    %c0_165 = arith.constant 0 : index
    %c0_166 = arith.constant 0 : index
    %191 = vector.load %arg15[%c0_165, %c0_166] : memref<2x2000xf32, #tpu.memory_space<vmem>>, vector<2x2000xf32>
    %c0_167 = arith.constant 0 : index
    %c0_168 = arith.constant 0 : index
    %192 = vector.load %arg10[%c0_167, %c0_168] : memref<2000x100xf32, #tpu.memory_space<vmem>>, vector<2000x100xf32>
    %cst_169 = arith.constant dense<0.000000e+00> : vector<2x100xf32>
    %193 = tpu.matmul %191, %192, %cst_169 {dimension_numbers = #tpu.dot_dimension_numbers<[1], [0], [0], [1], [0, 0, 1, 1], [], []>} : vector<2x2000xf32>, vector<2000x100xf32>, vector<2x100xf32> -> vector<2x100xf32>
    %c0_170 = arith.constant 0 : index
    %c0_171 = arith.constant 0 : index
    %194 = vector.load %arg11[%c0_170, %c0_171] : memref<1x100xf32, #tpu.memory_space<vmem>>, vector<1x100xf32>
    %195 = vector.broadcast %194 : vector<1x100xf32> to vector<2x100xf32>
    %196 = arith.addf %193, %195 : vector<2x100xf32>
    %c3_172 = arith.constant 3 : index
    %197 = memref.load %arg0[%c3_172] : memref<4xf32, #tpu.memory_space<smem>>
    %cst_173 = arith.constant 0.000000e+00 : f32
    %198 = vector.broadcast %cst_173 : f32 to vector<2x100xf32>
    %199 = arith.cmpf oge, %196, %198 : vector<2x100xf32>
    %200 = vector.broadcast %197 : f32 to vector<2x100xf32>
    %201 = arith.mulf %200, %196 : vector<2x100xf32>
    %202 = arith.select %199, %196, %201 : vector<2x100xi1>, vector<2x100xf32>
    %c0_174 = arith.constant 0 : index
    %c0_175 = arith.constant 0 : index
    %203 = vector.load %arg12[%c0_174, %c0_175] : memref<100x32xf32, #tpu.memory_space<vmem>>, vector<100x32xf32>
    %cst_176 = arith.constant dense<0.000000e+00> : vector<2x32xf32>
    %204 = tpu.matmul %202, %203, %cst_176 {dimension_numbers = #tpu.dot_dimension_numbers<[1], [0], [0], [1], [0, 0, 1, 1], [], []>} : vector<2x100xf32>, vector<100x32xf32>, vector<2x32xf32> -> vector<2x32xf32>
    %c0_177 = arith.constant 0 : index
    %c0_178 = arith.constant 0 : index
    %205 = vector.load %arg13[%c0_177, %c0_178] : memref<1x32xf32, #tpu.memory_space<vmem>>, vector<1x32xf32>
    %206 = vector.broadcast %205 : vector<1x32xf32> to vector<2x32xf32>
    %207 = arith.addf %204, %206 : vector<2x32xf32>
    %c0_179 = arith.constant 0 : index
    %c0_180 = arith.constant 0 : index
    %208 = vector.load %arg14[%c0_179, %c0_180] : memref<2x32xf32, #tpu.memory_space<vmem>>, vector<2x32xf32>
    tpu.vector_store %arg14[%c0_179, %c0_180], %207 {strides = array<i32>} : memref<2x32xf32, #tpu.memory_space<vmem>>, vector<2x32xf32>,
    return
  }
}

</mosaic_0001>

<bundles_post_ra>
// kernel: modconv_forward.1
= control target key start
LH: loop header
LB: loop body
LE: loop exit
PB: predicated region body
PF: predicated region fallthrough
CT: control target
= control target key end

     0   :  { %19 = vsyncpa [#allocation6], 0  ;;  %s12679_s0 = inlined_call_operand.vmem [shape: f32[4], index: 0, kind: input, shape index: {}]   ;;  %s12680_s1 = inlined_call_operand.hbm [shape: f32[80,40], index: 1, kind: input, shape index: {}]   ;;  %s12681_s2 = inlined_call_operand.vmem [shape: f32[5,80,80], index: 2, kind: input, shape index: {}]   ;;  %s12682_s3 = inlined_call_operand.vmem [shape: f32[5,40,400], index: 3, kind: input, shape index: {}]   ;;  %s12683_s4 = inlined_call_operand.hbm [shape: f32[1,400], index: 4, kind: input, shape index: {}]   ;;  %s12684_s5 = inlined_call_operand.hbm [shape: f32[2,40,80], index: 5, kind: input, shape index: {}]   ;;  %s12685_s6 = inlined_call_operand.vmem [shape: f32[2,400,200], index: 6, kind: input, shape index: {}]   ;;  %s12686_s7 = inlined_call_operand.hbm [shape: f32[5,40,40], index: 7, kind: input, shape index: {}]   ;;  %s12687_s8 = inlined_call_operand.vmem [shape: f32[5,200,100], index: 8, kind: input, shape index: {}]   ;;  %s12688_s9 = inlined_call_operand.hbm [shape: f32[1,100], index: 9, kind: input, shape index: {}]   ;;  %s12689_s10 = inlined_call_operand.vmem [shape: f32[2000,100], index: 10, kind: input, shape index: {}]   ;;  %s12690_s11 = inlined_call_operand.vmem [shape: f32[1,100], index: 11, kind: input, shape index: {}]   ;;  %s12691_s12 = inlined_call_operand.vmem [shape: f32[100,32], index: 12, kind: input, shape index: {}]   ;;  %s12692_s13 = inlined_call_operand.hbm [shape: f32[1,32], index: 13, kind: input, shape index: {}]   ;;  %s12693_s14 = inlined_call_operand.hbm [shape: f32[2,32], index: 14, kind: output, shape index: {}]  }
   0x1   :  { %20 = vsyncpa [#allocation4], 0 }
   0x2   :  { %21 = vsyncpa [#allocation9], 0 }
   0x3   :  { %22 = vsyncpa [#allocation12], 0 }
   0x4   :  { %23 = vsyncpa [#allocation15], 0 }
   0x5   :  { %24 = vsyncpa [#allocation5], 0  ;;  %s9030_s29 = smov [#allocation8]   ;;  %s8852_s17 = scalar_lea.hbm %s12683_s4, 64 }
   0x6   :  { %s57_s30 = sshll.u32 %s9030_s29, 4  ;;  %p8853_p0 = scmp.ne.s32.totalorder %s12683_s4, %s8852_s17  ;;  %s58_s30 = int_to_ptr.vmem [resolvable:$true] %s57_s30 }
   0x7   :  { %p8856_p1 = scmp.lt.u32.totalorder %s8852_s17, %s12683_s4 }
   0x9   :  { %p8858_p2 = pnand %p8856_p1, %p8853_p0 }
   0xb   :  { %8861 = shalt.err (!%p8858_p2)
}
   0xc   :  { %s8862_s22 = scalar_lea.vmem %s58_s30, 64  ;;  %p8867_p4 = scmp.lt.s32.totalorder %s58_s30, %s58_s30 }
   0xd   :  { %p8863_p3 = scmp.ne.s32.totalorder %s58_s30, %s8862_s22  ;;  %p8868_p5 = scmp.lt.s32.totalorder %s8862_s22, %s8862_s22 }
   0xf   :  { %p8869_p6 = por %p8868_p5, %p8867_p4 }
  0x11   :  { %p8870_p7 = pnand %p8869_p6, %p8863_p3 }
  0x13   :  { %8873 = shalt.err (!%p8870_p7)
}
  0x14   :  { %60 = dma.hbm_to_vmem [thread:$0]  %s12683_s4, 64, %s58_s30, [#allocation9]  }
  0x15   :  { %s9031_s25 = smov [#allocation11]   ;;  %s31_s29 = sshll.u32 %s12679_s0, 4  ;;  %s32_s29 = int_to_ptr.vmem [resolvable:$true] %s31_s29 }
  0x16   :  { %s80_s26 = sshll.u32 %s9031_s25, 4  ;;  %s8874_s17 = scalar_lea.hbm %s12686_s7, 3200  ;;  %s81_s26 = int_to_ptr.vmem [resolvable:$true] %s80_s26 }
  0x17   :  { %p8875_p8 = scmp.ne.s32.totalorder %s12686_s7, %s8874_s17  ;;  %p8878_p9 = scmp.lt.u32.totalorder %s8874_s17, %s12686_s7 }
  0x19   :  { %p8880_p10 = pnand %p8878_p9, %p8875_p8 }
  0x1b   :  { %8883 = shalt.err (!%p8880_p10)
}
  0x1c   :  { %s8884_s4 = scalar_lea.vmem %s81_s26, 3200  ;;  %p8889_p12 = scmp.lt.s32.totalorder %s81_s26, %s81_s26 }
  0x1d   :  { %p8885_p11 = scmp.ne.s32.totalorder %s81_s26, %s8884_s4  ;;  %p8890_p13 = scmp.lt.s32.totalorder %s8884_s4, %s8884_s4 }
  0x1f   :  { %p8891_p0 = por %p8890_p13, %p8889_p12 }
  0x21   :  { %p8892_p1 = pnand %p8891_p0, %p8885_p11 }
  0x23   :  { %8895 = shalt.err (!%p8892_p1)
}
  0x24   :  { %s9032_s0 = smov 128   ;;  %s9033_s30 = smov 8  }
  0x25   :  { %86 = dma.hbm_to_vmem [thread:$0]  %s12686_s7, 3200, %s81_s26, [#allocation12], %s9032_s0, %s9032_s0, %s9033_s30  }
  0x26   :  { %s8896_s24 = scalar_lea.vmem %s32_s29, 16  ;;  %p8901_p3 = scmp.lt.s32.totalorder %s32_s29, %s32_s29 }
  0x27   :  { %p8897_p2 = scmp.ne.s32.totalorder %s32_s29, %s8896_s24  ;;  %p8902_p4 = scmp.lt.s32.totalorder %s8896_s24, %s8896_s24 }
  0x29   :  { %p8903_p5 = por %p8902_p4, %p8901_p3 }
  0x2b   :  { %p8904_p6 = pnand %p8903_p5, %p8897_p2 }
  0x2d   :  { %8907 = shalt.err (!%p8904_p6)
}
  0x2e   :  { %s9034_s25 = smov [#allocation3]   ;;  %s9035_s27 = smov [#allocation7]  }
  0x2f   :  { %34 = dma.vmem_to_smem %s32_s29, 16, %s9034_s25, [#allocation6]  }
  0x30   :  { %s40_s28 = sshll.u32 %s9035_s27, 4  ;;  %s9036_s15 = smov [#allocation10]   ;;  %s41_s28 = int_to_ptr.vmem [resolvable:$true] %s40_s28 }
  0x31   :  { %s66_s16 = sshll.u32 %s9036_s15, 4  ;;  %s8908_s19 = scalar_lea.hbm %s12680_s1, 1280  ;;  %s67_s16 = int_to_ptr.vmem [resolvable:$true] %s66_s16 }
  0x32   :  { %p8909_p7 = scmp.ne.s32.totalorder %s12680_s1, %s8908_s19  ;;  %p8912_p8 = scmp.lt.u32.totalorder %s8908_s19, %s12680_s1 }
  0x34   :  { %p8914_p9 = pnand %p8912_p8, %p8909_p7 }
  0x36   :  { %8917 = shalt.err (!%p8914_p9)
}
  0x37   :  { %s8918_s29 = scalar_lea.vmem %s41_s28, 1280  ;;  %p8923_p11 = scmp.lt.s32.totalorder %s41_s28, %s41_s28 }
  0x38   :  { %p8919_p10 = scmp.ne.s32.totalorder %s41_s28, %s8918_s29  ;;  %p8924_p12 = scmp.lt.s32.totalorder %s8918_s29, %s8918_s29 }
  0x3a   :  { %p8925_p13 = por %p8924_p12, %p8923_p11 }
  0x3c   :  { %p8926_p0 = pnand %p8925_p13, %p8919_p10 }
  0x3e   :  { %8929 = shalt.err (!%p8926_p0)
}
  0x3f   :  { %46 = dma.hbm_to_vmem [thread:$0]  %s12680_s1, 1280, %s41_s28, [#allocation4], %s9032_s0, %s9032_s0, %s9033_s30  }
  0x40   :  { %s8930_s25 = scalar_lea.hbm %s12684_s5, 1280 }
  0x41   :  { %p8931_p1 = scmp.ne.s32.totalorder %s12684_s5, %s8930_s25  ;;  %p8934_p2 = scmp.lt.u32.totalorder %s8930_s25, %s12684_s5 }
  0x43   :  { %p8936_p3 = pnand %p8934_p2, %p8931_p1 }
  0x45   :  { %8939 = shalt.err (!%p8936_p3)
}
  0x46   :  { %s8940_s19 = scalar_lea.vmem %s67_s16, 1280  ;;  %p8945_p5 = scmp.lt.s32.totalorder %s67_s16, %s67_s16 }
  0x47   :  { %p8941_p4 = scmp.ne.s32.totalorder %s67_s16, %s8940_s19  ;;  %p8946_p6 = scmp.lt.s32.totalorder %s8940_s19, %s8940_s19 }
  0x49   :  { %p8947_p7 = por %p8946_p6, %p8945_p5 }
  0x4b   :  { %p8948_p8 = pnand %p8947_p7, %p8941_p4 }
  0x4d   :  { %8951 = shalt.err (!%p8948_p8)
}
  0x4e   :  { %72 = dma.hbm_to_vmem [thread:$0]  %s12684_s5, 1280, %s67_s16, [#allocation9], %s9032_s0, %s9032_s0, %s9033_s30  }
  0x4f   :  { %s9037_s20 = smov [#allocation13]   ;;  %s9038_s26 = smov [#allocation14]  }
  0x50   :  { %s95_s7 = sshll.u32 %s9037_s20, 4  ;;  %s111_s21 = sshll.u32 %s9038_s26, 4  ;;  %s96_s7 = int_to_ptr.vmem [resolvable:$true] %s95_s7  ;;  %s112_s21 = int_to_ptr.vmem [resolvable:$true] %s111_s21 }
  0x51   :  { %s8952_s22 = scalar_lea.hbm %s12688_s9, 16 }
  0x52   :  { %p8953_p9 = scmp.ne.s32.totalorder %s12688_s9, %s8952_s22  ;;  %p8956_p10 = scmp.lt.u32.totalorder %s8952_s22, %s12688_s9 }
  0x54   :  { %p8958_p11 = pnand %p8956_p10, %p8953_p9 }
  0x56   :  { %8961 = shalt.err (!%p8958_p11)
}
  0x57   :  { %s8962_s5 = scalar_lea.vmem %s96_s7, 16  ;;  %s8966_s0 = scalar_lea.vmem %s96_s7, 32 }
  0x58   :  { %p8963_p12 = scmp.ne.s32.totalorder %s96_s7, %s8962_s5  ;;  %p8967_p13 = scmp.lt.s32.totalorder %s96_s7, %s96_s7 }
  0x59   :  { %p8968_p0 = scmp.lt.s32.totalorder %s8966_s0, %s8962_s5 }
  0x5b   :  { %p8969_p1 = por %p8968_p0, %p8967_p13 }
  0x5d   :  { %p8970_p2 = pnand %p8969_p1, %p8963_p12 }
  0x5f   :  { %8973 = shalt.err (!%p8970_p2)
}
  0x60   :  { %98 = dma.hbm_to_vmem [thread:$0]  %s12688_s9, 16, %s96_s7, [#allocation12]  }
  0x61   :  { %s8974_s19 = scalar_lea.hbm %s12692_s13, 16 }
  0x62   :  { %p8975_p3 = scmp.ne.s32.totalorder %s12692_s13, %s8974_s19  ;;  %p8978_p4 = scmp.lt.u32.totalorder %s8974_s19, %s12692_s13 }
  0x64   :  { %p8980_p5 = pnand %p8978_p4, %p8975_p3 }
  0x66   :  { %8983 = shalt.err (!%p8980_p5)
}
  0x67   :  { %s8984_s29 = scalar_lea.vmem %s112_s21, 16  ;;  %s8988_s4 = scalar_lea.vmem %s112_s21, 32 }
  0x68   :  { %p8985_p6 = scmp.ne.s32.totalorder %s112_s21, %s8984_s29  ;;  %p8989_p7 = scmp.lt.s32.totalorder %s112_s21, %s112_s21 }
  0x69   :  { %p8990_p8 = scmp.lt.s32.totalorder %s8988_s4, %s8984_s29 }
  0x6b   :  { %p8991_p9 = por %p8990_p8, %p8989_p7 }
  0x6d   :  { %p8992_p10 = pnand %p8991_p9, %p8985_p6 }
  0x6f   :  { %8995 = shalt.err (!%p8992_p10)
}
  0x70   :  { %114 = dma.hbm_to_vmem [thread:$0]  %s12692_s13, 16, %s112_s21, [#allocation15]  }
  0x71   :  { %9018 = dma.done.wait [#allocation6], 16  }
  0x72   :  { %9019 = vsyncadd [#allocation6], 4294967280 }
  0x73   :  { %9020 = dma.done.wait [#allocation4], 1280  }
  0x74   :  { %9021 = vsyncadd [#allocation4], 4294966016 }
  0x75   :  { %9022 = dma.done.wait [#allocation9], 1344  }
  0x76   :  { %9023 = vsyncadd [#allocation9], 4294965952 }
  0x77   :  { %9024 = dma.done.wait [#allocation12], 3216  }
  0x78   :  { %9025 = vsyncadd [#allocation12], 4294964080 }
  0x79   :  { %9026 = dma.done.wait [#allocation15], 16  }
  0x7a   :  { %9027 = vsyncadd [#allocation15], 4294967280 }
  0x7b   :  { %136 = sfence }
  0x7c   :  { %v137_v0 = vld [vmem:[#allocation7] sm:$0xff]  ;;  %v138_v1 = vld [vmem:[#allocation7 + $0x8] sm:$0xff]  ;;  %v139_v2 = vld [vmem:[#allocation7 + $0x10] sm:$0xff]  ;;  %vm157_vm0 = vcmask 654336   ;;  %v9039_v63 = vmov 0.0   ;;  %vm500_vm1 = vcmask 326656  }
  0x7d   :  { %v9221_v3 = vpack.c.bf16 %v138_v1, %v137_v0  ;;  %v140_v4 = vld [vmem:[#allocation7 + $0x18] sm:$0xff]  ;;  %v141_v6 = vld [vmem:[#allocation7 + $0x20] sm:$0xff]  ;;  %v142_v7 = vld [vmem:[#allocation7 + $0x28] sm:$0xff]  ;;  %s9042_s7 = smov 72   ;;  %s9043_s13 = smov 100  }
  0x7e   :  { %v9223_v5 = vpack.c.bf16 %v140_v4, %v139_v2  ;;  %v6546_v8 = vld [vmem:[%s12681_s2 + $0x50] sm:$0xff]  ;;  %v9233_v9 = vpack.c.bf16 %v142_v7, %v141_v6  ;;  %v144_v11 = vld [vmem:[#allocation7 + $0x38] sm:$0xff]  ;;  %v147_v12 = vld [vmem:[%s12681_s2] sm:$0xff]  ;;  %s9044_s5 = smov 44   ;;  %s9045_s16 = smov 116  }
  0x7f   :  { %7699 = vmatprep.subr.bf16.mxu1 %v9221_v3  ;;  %7679 = vmatprep.subr.bf16.mxu0 %v9221_v3  ;;  %v143_v10 = vld [vmem:[#allocation7 + $0x30] sm:$0xff]  ;;  %v145_v14 = vld [vmem:[#allocation7 + $0x40] sm:$0xff]  ;;  %v146_v15 = vld [vmem:[#allocation7 + $0x48] sm:$0xff]  ;;  %s9046_s23 = smov 16   ;;  %s9047_s9 = smov 88  }
  0x80   :  { %7701 = vmatpush3.bf16.msra.mxu1 %v9221_v3  ;;  %7529 = vmatprep.mubr.msk.f32.mxu1 %vm157_vm0, %v6546_v8  ;;  %v9243_v13 = vpack.c.bf16 %v144_v11, %v143_v10  ;;  %v9249_v16 = vpack.c.bf16 %v146_v15, %v145_v14  ;;  %v6569_v17 = vld [vmem:[%s12682_s3 + $0xb8] sm:$0xff]  ;;  %v6567_v19 = vld [vmem:[%s12682_s3 + $0xa8] sm:$0xff]  ;;  %v6566_v23 = vld [vmem:[%s12682_s3 + $0xa0] sm:$0xff]  ;;  %s9049_s20 = smov 32   ;;  %s9050_s21 = smov 104  }
  0x81   :  { %7703 = vmatprep.subr.bf16.mxu1 %v9223_v5  ;;  %7681 = vmatpush3.bf16.msra.mxu0 %v9221_v3  ;;  %v6573_v18 = vld [vmem:[%s12682_s3 + $0xd8] sm:$0xff]  ;;  %v6571_v20 = vld [vmem:[%s12682_s3 + $0xc8] sm:$0xff]  ;;  %v6570_v24 = vld [vmem:[%s12682_s3 + $0xc0] sm:$0xff]  ;;  %s9051_s17 = smov 4   ;;  %s9053_s22 = smov 48  }
  0x82   :  { %7683 = vmatprep.subr.bf16.mxu0 %v9223_v5  ;;  %7494 = vmatprep.mubr.msk.f32.mxu0 %vm157_vm0, %v147_v12  ;;  %v7726_v21 = vpack.c.bf16 %v6573_v18, %v6569_v17  ;;  %v7718_v22 = vpack.c.bf16 %v6571_v20, %v6567_v19  ;;  %v6568_v25 = vld [vmem:[%s12682_s3 + $0xb0] sm:$0xff]  ;;  %v6575_v27 = vld [vmem:[%s12682_s3 + $0xe8] sm:$0xff]  ;;  %v6547_v29 = vld [vmem:[%s12681_s2 + $0x58] sm:$0xff]  ;;  %v7720_v34 = vpack.c.bf16 %v6570_v24, %v6566_v23  ;;  %s9057_s24 = smov 64   ;;  %s9058_s25 = smov 36  }
  0x83   :  { %v6572_v26 = vld [vmem:[%s12682_s3 + $0xd0] sm:$0xff]  ;;  %v6579_v28 = vld [vmem:[%s12682_s3 + $0x108] sm:$0xff]  ;;  %v6577_v30 = vld [vmem:[%s12682_s3 + $0xf8] sm:$0xff]  ;;  %s9059_s27 = smov 108  }
  0x84   :  { %7705 = vmatpush3.bf16.msra.mxu1 %v9223_v5  ;;  %v6581_v31 = vld [vmem:[%s12682_s3 + $0x118] sm:$0xff]  ;;  %v6548_v32 = vld [vmem:[%s12681_s2 + $0x60] sm:$0xff]  ;;  %v148_v33 = vld [vmem:[%s12681_s2 + $0x8] sm:$0xff]  ;;  %v7728_v36 = vpack.c.bf16 %v6572_v26, %v6568_v25  ;;  %v7722_v37 = vpack.c.bf16 %v6579_v28, %v6575_v27 }
  0x85   :  { %7707 = vmatprep.subr.bf16.mxu1 %v9233_v9  ;;  %7685 = vmatpush3.bf16.msra.mxu0 %v9223_v5  ;;  %v149_v35 = vld [vmem:[%s12681_s2 + $0x10] sm:$0xff]  ;;  %v6574_v38 = vld [vmem:[%s12682_s3 + $0xe0] sm:$0xff]  ;;  %v7730_v40 = vpack.c.bf16 %v6581_v31, %v6577_v30  ;;  %v6549_v43 = vld [vmem:[%s12681_s2 + $0x68] sm:$0xff] }
  0x86   :  { %7687 = vmatprep.subr.bf16.mxu0 %v9233_v9  ;;  %v6578_v39 = vld [vmem:[%s12682_s3 + $0x100] sm:$0xff]  ;;  %v6576_v41 = vld [vmem:[%s12682_s3 + $0xf0] sm:$0xff]  ;;  %v150_v45 = vld [vmem:[%s12681_s2 + $0x18] sm:$0xff] }
  0x87   :  { %v6580_v42 = vld [vmem:[%s12682_s3 + $0x110] sm:$0xff]  ;;  %v7724_v46 = vpack.c.bf16 %v6578_v39, %v6574_v38  ;;  %v151_v47 = vld [vmem:[%s12681_s2 + $0x20] sm:$0xff]  ;;  %v6551_v49 = vld [vmem:[%s12681_s2 + $0x78] sm:$0xff] }
  0x88   :  { %7709 = vmatpush3.bf16.msra.mxu1 %v9233_v9  ;;  %v6550_v44 = vld [vmem:[%s12681_s2 + $0x70] sm:$0xff]  ;;  %v7732_v48 = vpack.c.bf16 %v6580_v42, %v6576_v41  ;;  %v6552_v50 = vld [vmem:[%s12681_s2 + $0x80] sm:$0xff]  ;;  %v152_v51 = vld [vmem:[%s12681_s2 + $0x28] sm:$0xff] }
  0x89   :  { %7711 = vmatprep.subr.bf16.mxu1 %v9243_v13  ;;  %7689 = vmatpush3.bf16.msra.mxu0 %v9233_v9  ;;  %v153_v52 = vld [vmem:[%s12681_s2 + $0x30] sm:$0xff]  ;;  %v6553_v53 = vld [vmem:[%s12681_s2 + $0x88] sm:$0xff]  ;;  %v154_v55 = vld [vmem:[%s12681_s2 + $0x38] sm:$0xff] }
  0x8a   :  { %7691 = vmatprep.subr.bf16.mxu0 %v9243_v13  ;;  %v6554_v54 = vld [vmem:[%s12681_s2 + $0x90] sm:$0xff]  ;;  %v155_v56 = vld [vmem:[%s12681_s2 + $0x40] sm:$0xff]  ;;  %v6555_v57 = vld [vmem:[%s12681_s2 + $0x98] sm:$0xff] }
  0x8b   :  { %v156_v58 = vld [vmem:[%s12681_s2 + $0x48] sm:$0xff]  ;;  %v6585_v60 = vld [vmem:[%s12682_s3 + $0x138] sm:$0xff]  ;;  %v6582_v61 = vld [vmem:[%s12682_s3 + $0x120] sm:$0xff] }
  0x8c   :  { %7713 = vmatpush3.bf16.msra.mxu1 %v9243_v13  ;;  %v6583_v59 = vld [vmem:[%s12682_s3 + $0x128] sm:$0xff]  ;;  %v6584_v62 = vld [vmem:[%s12682_s3 + $0x130] sm:$0xff]  ;;  %v306_v4 = vld [vmem:[%s12682_s3 + $0x18] sm:$0xff] }
  0x8d   :  { %7715 = vmatprep.subr.bf16.mxu1 %v9249_v16  ;;  %7693 = vmatpush3.bf16.msra.mxu0 %v9243_v13  ;;  %v304_v0 = vld [vmem:[%s12682_s3 + $0x8] sm:$0xff]  ;;  %v310_v6 = vld [vmem:[%s12682_s3 + $0x38] sm:$0xff]  ;;  %v303_v8 = vld [vmem:[%s12682_s3] sm:$0xff] }
  0x8e   :  { %7695 = vmatprep.subr.bf16.mxu0 %v9249_v16  ;;  %v308_v1 = vld [vmem:[%s12682_s3 + $0x28] sm:$0xff]  ;;  %v7742_v7 = vpack.c.bf16 %v310_v6, %v306_v4  ;;  %v307_v10 = vld [vmem:[%s12682_s3 + $0x20] sm:$0xff]  ;;  %v305_v12 = vld [vmem:[%s12682_s3 + $0x10] sm:$0xff] }
  0x8f   :  { %v7734_v2 = vpack.c.bf16 %v308_v1, %v304_v0  ;;  %v312_v11 = vld [vmem:[%s12682_s3 + $0x48] sm:$0xff]  ;;  %v309_v14 = vld [vmem:[%s12682_s3 + $0x30] sm:$0xff]  ;;  %v314_v17 = vld [vmem:[%s12682_s3 + $0x58] sm:$0xff]  ;;  %v7736_v20 = vpack.c.bf16 %v307_v10, %v303_v8 }
  0x90   :  { %7717 = vmatpush3.bf16.msra.mxu1 %v9249_v16  ;;  %v316_v15 = vld [vmem:[%s12682_s3 + $0x68] sm:$0xff]  ;;  %v318_v18 = vld [vmem:[%s12682_s3 + $0x78] sm:$0xff]  ;;  %v315_v25 = vld [vmem:[%s12682_s3 + $0x60] sm:$0xff] }
  0x91   :  { %7697 = vmatpush3.bf16.msra.mxu0 %v9249_v16  ;;  %7727 = vmatprep.subr.bf16.mxu1 %v7726_v21  ;;  %v311_v21 = vld [vmem:[%s12682_s3 + $0x40] sm:$0xff]  ;;  %v7738_v24 = vpack.c.bf16 %v316_v15, %v312_v11  ;;  %v7746_v26 = vpack.c.bf16 %v318_v18, %v314_v17  ;;  %v313_v27 = vld [vmem:[%s12682_s3 + $0x50] sm:$0xff]  ;;  %v6649_v39 = vld [vmem:[%s12682_s3 + $0x158] sm:$0xff] }
  0x92   :  { %7719 = vmatprep.subr.bf16.mxu0 %v7718_v22  ;;  %v7744_v22 = vpack.c.bf16 %v309_v14, %v305_v12  ;;  %v317_v28 = vld [vmem:[%s12682_s3 + $0x70] sm:$0xff]  ;;  %v6647_v6 = vld [vmem:[%s12682_s3 + $0x148] sm:$0xff]  ;;  %v6626_v10 = vld [vmem:[%s12681_s2 + $0xa0] sm:$0xff] }
  0x93   :  { %7530 = vmatmul.mubr.msk.f32.vlgmr.msra.gmra.mrb[0].mxu1 %vm157_vm0, %v6547_v29  ;;  %v6660_v0 = vld [vmem:[%s12682_s3 + $0x1b0] sm:$0xff]  ;;  %v6646_v11 = vld [vmem:[%s12682_s3 + $0x140] sm:$0xff]  ;;  %v6655_v14 = vld [vmem:[%s12682_s3 + $0x188] sm:$0xff] }
  0x94   :  { %7532 = vmatprep.mubr.msk.f32.mxu1 %vm157_vm0, %v6548_v32  ;;  %7495 = vmatmul.mubr.msk.f32.vlgmr.msra.gmra.mrb[0].mxu0 %vm157_vm0, %v148_v33  ;;  %v7740_v32 = vpack.c.bf16 %v315_v25, %v311_v21  ;;  %v7748_v33 = vpack.c.bf16 %v317_v28, %v313_v27  ;;  %v6664_v4 = vld [vmem:[%s12682_s3 + $0x1d0] sm:$0xff]  ;;  %v6650_v12 = vld [vmem:[%s12682_s3 + $0x160] sm:$0xff]  ;;  %v6659_v15 = vld [vmem:[%s12682_s3 + $0x1a8] sm:$0xff] }
  0x95   :  { %7497 = vmatprep.mubr.msk.f32.mxu0 %vm157_vm0, %v149_v35  ;;  %7721 = vmatpush1.bf16.msra.mxu0 %v7720_v34  ;;  %v320_v35 = vld [vmem:[%s12682_s3 + $0x88] sm:$0xff]  ;;  %v7772_v18 = vpack.c.bf16 %v6650_v12, %v6646_v11  ;;  %v6654_v21 = vld [vmem:[%s12682_s3 + $0x180] sm:$0xff]  ;;  %v6632_v27 = vld [vmem:[%s12681_s2 + $0xd0] sm:$0xff] }
  0x96   :  { %7729 = vmatpush1.bf16.msra.mxu1 %v7728_v36  ;;  %7723 = vmatprep.subr.bf16.mxu0 %v7722_v37  ;;  %v322_v37 = vld [vmem:[%s12682_s3 + $0x98] sm:$0xff]  ;;  %v6627_v17 = vld [vmem:[%s12681_s2 + $0xa8] sm:$0xff]  ;;  %v6630_v25 = vld [vmem:[%s12681_s2 + $0xc0] sm:$0xff] }
  0x97   :  { %7533 = vmatmul.mubr.msk.f32.gmra.mrb[2].mxu1 %vm157_vm0, %v6549_v43  ;;  %7731 = vmatprep.subr.bf16.mxu1 %v7730_v40  ;;  %v6653_v40 = vld [vmem:[%s12682_s3 + $0x178] sm:$0xff]  ;;  %v319_v43 = vld [vmem:[%s12682_s3 + $0x80] sm:$0xff]  ;;  %v6689_v11 = vld [vmem:[%s12681_s2 + $0x108] sm:$0xff] }
  0x98   :  { %7535 = vmatprep.mubr.msk.f32.mxu1 %vm157_vm0, %v6550_v44  ;;  %7498 = vmatmul.mubr.msk.f32.gmra.mrb[2].mxu0 %vm157_vm0, %v150_v45  ;;  %v321_v44 = vld [vmem:[%s12682_s3 + $0x90] sm:$0xff]  ;;  %v6633_v28 = vld [vmem:[%s12681_s2 + $0xd8] sm:$0xff] }
  0x99   :  { %7500 = vmatprep.mubr.msk.f32.mxu0 %vm157_vm0, %v151_v47  ;;  %7725 = vmatpush1.bf16.msra.mxu0 %v7724_v46  ;;  %v7778_v46 = vpack.c.bf16 %v6653_v40, %v6649_v39  ;;  %v6719_v39 = vld [vmem:[%s12682_s3 + $0x248] sm:$0xff] }
  0x9a   :  { %7733 = vmatpush1.bf16.msra.mxu1 %v7732_v48  ;;  %539 = vmatprep.subr.mxu0 %v6583_v59  ;;  %v6661_v59 = vld [vmem:[%s12682_s3 + $0x1b8] sm:$0xff] }
  0x9b   :  { %7536 = vmatmul.mubr.msk.f32.gmra.mrb[4].mxu1 %vm157_vm0, %v6551_v49  ;;  %664 = vmatprep.subr.mxu1 %v6585_v60 }
  0x9c   :  { %7538 = vmatprep.mubr.msk.f32.mxu1 %vm157_vm0, %v6552_v50  ;;  %7501 = vmatmul.mubr.msk.f32.gmra.mrb[4].mxu0 %vm157_vm0, %v152_v51 }
  0x9d   :  { %7503 = vmatprep.mubr.msk.f32.mxu0 %vm157_vm0, %v153_v52  ;;  %540 = vmatpush1.msra.mxu0 %v6582_v61 }
  0x9e   :  { %665 = vmatpush1.msra.mxu1 %v6584_v62  ;;  %7735 = vmatprep.subr.bf16.mxu0 %v7734_v2  ;;  %v6656_v62 = vld [vmem:[%s12682_s3 + $0x190] sm:$0xff]  ;;  %v6665_v2 = vld [vmem:[%s12682_s3 + $0x1d8] sm:$0xff] }
  0x9f   :  { %7539 = vmatmul.mubr.msk.f32.gmra.mrb[6].mxu1 %vm157_vm0, %v6553_v53  ;;  %7743 = vmatprep.subr.bf16.mxu1 %v7742_v7  ;;  %v7784_v1 = vpack.c.bf16 %v6660_v0, %v6656_v62  ;;  %v6651_v7 = vld [vmem:[%s12682_s3 + $0x168] sm:$0xff]  ;;  %v6712_v62 = vld [vmem:[%s12682_s3 + $0x210] sm:$0xff]  ;;  %v6717_v0 = vld [vmem:[%s12682_s3 + $0x238] sm:$0xff] }
  0xa0   :  { %7541 = vmatprep.mubr.msk.f32.mxu1 %vm157_vm0, %v6554_v54  ;;  %7504 = vmatmul.mubr.msk.f32.gmra.mrb[6].mxu0 %vm157_vm0, %v154_v55  ;;  %v7770_v8 = vpack.c.bf16 %v6651_v7, %v6647_v6  ;;  %v6688_v6 = vld [vmem:[%s12681_s2 + $0x100] sm:$0xff] }
  0xa1   :  { %7506 = vmatprep.mubr.msk.f32.mxu0 %vm157_vm0, %v155_v56  ;;  %v6648_v56 = vld [vmem:[%s12682_s3 + $0x150] sm:$0xff] }
  0xa3   :  { %7542 = vmatmul.mubr.msk.f32.gmra.mrb[8].mxu1 %vm157_vm0, %v6555_v57  ;;  %v6652_v57 = vld [vmem:[%s12682_s3 + $0x170] sm:$0xff] }
  0xa4   :  { %7507 = vmatmul.mubr.msk.f32.gmra.mrb[8].mxu0 %vm157_vm0, %v156_v58  ;;  %720 = vmatprep.mubr.f32.mxu1 %v9039_v63  ;;  %v6657_v58 = vld [vmem:[%s12682_s3 + $0x198] sm:$0xff]  ;;  %v7780_v60 = vpack.c.bf16 %v6652_v57, %v6648_v56 }
  0xa5   :  { %595 = vmatprep.mubr.f32.mxu0 %v9039_v63  ;;  %v7782_v61 = vpack.c.bf16 %v6661_v59, %v6657_v58  ;;  %v6713_v56 = vld [vmem:[%s12682_s3 + $0x218] sm:$0xff] }
 0x166   :  { %v7531_v19 = vpop.f32.mrb[0].mxu1 }
 0x167   :  { %v430_v23 = vpop.f32.mrb[1].mxu1  ;;  %v9441_v29 = vpop.f32.mrb[0].mxu0 }
 0x168   :  { %6586 = vmatmul.mubr.msk.f32.vlgmr.msra.gmra.mrb[10].mxu0 %vm500_vm1, %v430_v23  ;;  %6596 = vmatmul.mubr.msk.f32.vlgmr.msra.gmra.mrb[10].mxu1 %vm500_vm1, %v430_v23  ;;  %v9445_v30 = vpop.f32.mrb[1].mxu0  ;;  %v6629_v23 = vld [vmem:[%s12681_s2 + $0xb8] sm:$0xff] }
 0x169   :  { %601 = vmatprep.mubr.f32.mxu0 %v9039_v63  ;;  %726 = vmatprep.mubr.f32.mxu1 %v9039_v63 }
 0x16a   :  { %v7534_v31 = vpop.f32.mrb[2].mxu1  ;;  %7737 = vmatpush1.bf16.msra.mxu0 %v7736_v20  ;;  %7745 = vmatpush1.bf16.msra.mxu1 %v7744_v22  ;;  %v7774_v20 = vpack.c.bf16 %v6659_v15, %v6655_v14  ;;  %v6658_v22 = vld [vmem:[%s12682_s3 + $0x1a0] sm:$0xff]  ;;  %v6690_v14 = vld [vmem:[%s12681_s2 + $0x110] sm:$0xff]  ;;  %v6691_v15 = vld [vmem:[%s12681_s2 + $0x118] sm:$0xff] }
 0x16b   :  { %v440_v34 = vpop.f32.mrb[3].mxu1  ;;  %7739 = vmatprep.subr.bf16.mxu0 %v7738_v24  ;;  %7747 = vmatprep.subr.bf16.mxu1 %v7746_v26  ;;  %v9452_v36 = vpop.f32.mrb[2].mxu0  ;;  %v7776_v24 = vpack.c.bf16 %v6658_v22, %v6654_v21  ;;  %v6631_v26 = vld [vmem:[%s12681_s2 + $0xc8] sm:$0xff]  ;;  %v6725_v21 = vld [vmem:[%s12682_s3 + $0x278] sm:$0xff]  ;;  %v6724_v22 = vld [vmem:[%s12682_s3 + $0x270] sm:$0xff] }
 0x16c   :  { %6587 = vmatmul.mubr.msk.f32.gmra.mrb[12].mxu0 %vm500_vm1, %v7531_v19  ;;  %6597 = vmatmul.mubr.msk.f32.gmra.mrb[12].mxu1 %vm500_vm1, %v7531_v19  ;;  %v9459_v38 = vpop.f32.mrb[3].mxu0  ;;  %v6628_v19 = vld [vmem:[%s12681_s2 + $0xb0] sm:$0xff] }
 0x16d   :  { %607 = vmatprep.mubr.f32.mxu0 %v9039_v63  ;;  %732 = vmatprep.mubr.f32.mxu1 %v9039_v63 }
 0x16e   :  { %v7537_v41 = vpop.f32.mrb[4].mxu1  ;;  %7741 = vmatpush1.bf16.msra.mxu0 %v7740_v32  ;;  %7749 = vmatpush1.bf16.msra.mxu1 %v7748_v33  ;;  %v6662_v32 = vld [vmem:[%s12682_s3 + $0x1c0] sm:$0xff]  ;;  %v6707_v33 = vld [vmem:[%s12682_s3 + $0x1e8] sm:$0xff] }
 0x16f   :  { %v450_v42 = vpop.f32.mrb[5].mxu1  ;;  %819 = vmatprep.subr.mxu0 %v320_v35  ;;  %944 = vmatprep.subr.mxu1 %v322_v37  ;;  %v9475_v45 = vpop.f32.mrb[4].mxu0  ;;  %v6710_v37 = vld [vmem:[%s12682_s3 + $0x200] sm:$0xff] }
 0x170   :  { %6588 = vmatmul.mubr.msk.f32.gmra.mrb[14].mxu0 %vm500_vm1, %v440_v34  ;;  %6598 = vmatmul.mubr.msk.f32.gmra.mrb[14].mxu1 %vm500_vm1, %v440_v34  ;;  %v9479_v47 = vpop.f32.mrb[5].mxu0  ;;  %v6711_v34 = vld [vmem:[%s12682_s3 + $0x208] sm:$0xff] }
 0x171   :  { %613 = vmatprep.mubr.f32.mxu0 %v9039_v63  ;;  %738 = vmatprep.mubr.f32.mxu1 %v9039_v63  ;;  %v7806_v35 = vpack.c.bf16 %v6711_v34, %v6707_v33  ;;  %v6776_v34 = vld [vmem:[%s12682_s3 + $0x2d0] sm:$0xff] }
 0x172   :  { %v7540_v48 = vpop.f32.mrb[6].mxu1  ;;  %820 = vmatpush1.msra.mxu0 %v319_v43  ;;  %945 = vmatpush1.msra.mxu1 %v321_v44  ;;  %v6714_v44 = vld [vmem:[%s12682_s3 + $0x220] sm:$0xff] }
 0x173   :  { %v460_v49 = vpop.f32.mrb[7].mxu1  ;;  %7751 = vmatprep.subr.bf16.mxu0 %v9221_v3  ;;  %v9484_v50 = vpop.f32.mrb[6].mxu0  ;;  %7779 = vmatprep.subr.bf16.mxu1 %v7778_v46 }
 0x174   :  { %6589 = vmatmul.mubr.msk.f32.gmra.mrb[16].mxu0 %vm500_vm1, %v7534_v31  ;;  %6599 = vmatmul.mubr.msk.f32.gmra.mrb[16].mxu1 %vm500_vm1, %v7534_v31  ;;  %v9488_v51 = vpop.f32.mrb[7].mxu0  ;;  %v6663_v31 = vld [vmem:[%s12682_s3 + $0x1c8] sm:$0xff] }
 0x175   :  { %619 = vmatprep.mubr.f32.mxu0 %v9039_v63  ;;  %744 = vmatprep.mubr.f32.mxu1 %v9039_v63 }
 0x176   :  { %v7543_v52 = vpop.f32.mrb[8].mxu1 }
 0x177   :  { %v470_v53 = vpop.f32.mrb[9].mxu1  ;;  %v9492_v54 = vpop.f32.mrb[8].mxu0 }
 0x178   :  { %6590 = vmatmul.mubr.msk.f32.gmra.mrb[18].mxu0 %vm500_vm1, %v450_v42  ;;  %6600 = vmatmul.mubr.msk.f32.gmra.mrb[18].mxu1 %vm500_vm1, %v450_v42  ;;  %v9496_v55 = vpop.f32.mrb[9].mxu0 }
 0x179   :  { %625 = vmatprep.mubr.f32.mxu0 %v9039_v63  ;;  %750 = vmatprep.mubr.f32.mxu1 %v9039_v63 }
 0x17c   :  { %6591 = vmatmul.mubr.msk.f32.gmra.mrb[20].mxu0 %vm500_vm1, %v7537_v41  ;;  %6601 = vmatmul.mubr.msk.f32.gmra.mrb[20].mxu1 %vm500_vm1, %v7537_v41 }
 0x17d   :  { %631 = vmatprep.mubr.f32.mxu0 %v9039_v63  ;;  %756 = vmatprep.mubr.f32.mxu1 %v9039_v63 }
 0x180   :  { %6592 = vmatmul.mubr.msk.f32.gmra.mrb[22].mxu0 %vm500_vm1, %v460_v49  ;;  %6602 = vmatmul.mubr.msk.f32.gmra.mrb[22].mxu1 %vm500_vm1, %v460_v49  ;;  %v6723_v49 = vld [vmem:[%s12682_s3 + $0x268] sm:$0xff] }
 0x181   :  { %637 = vmatprep.mubr.f32.mxu0 %v9039_v63  ;;  %762 = vmatprep.mubr.f32.mxu1 %v9039_v63 }
 0x184   :  { %6593 = vmatmul.mubr.msk.f32.gmra.mrb[24].mxu0 %vm500_vm1, %v7540_v48  ;;  %6603 = vmatmul.mubr.msk.f32.gmra.mrb[24].mxu1 %vm500_vm1, %v7540_v48 }
 0x185   :  { %643 = vmatprep.mubr.f32.mxu0 %v9039_v63  ;;  %768 = vmatprep.mubr.f32.mxu1 %v9039_v63 }
 0x188   :  { %6594 = vmatmul.mubr.msk.f32.gmra.mrb[26].mxu0 %vm500_vm1, %v470_v53  ;;  %6604 = vmatmul.mubr.msk.f32.gmra.mrb[26].mxu1 %vm500_vm1, %v470_v53 }
 0x189   :  { %649 = vmatprep.mubr.f32.mxu0 %v9039_v63  ;;  %774 = vmatprep.mubr.f32.mxu1 %v9039_v63 }
 0x18c   :  { %6595 = vmatmul.mubr.msk.f32.gmra.mrb[28].mxu0 %vm500_vm1, %v7543_v52  ;;  %6605 = vmatmul.mubr.msk.f32.gmra.mrb[28].mxu1 %vm500_vm1, %v7543_v52  ;;  %v6722_v52 = vld [vmem:[%s12682_s3 + $0x260] sm:$0xff] }
 0x18d   :  { %875 = vmatprep.mubr.f32.mxu0 %v9039_v63  ;;  %1000 = vmatprep.mubr.f32.mxu1 %v9039_v63 }
 0x190   :  { %6606 = vmatmul.mubr.msk.f32.vlgmr.msra.gmra.mrb[10].mxu0 %vm500_vm1, %v9445_v30  ;;  %6616 = vmatmul.mubr.msk.f32.vlgmr.msra.gmra.mrb[10].mxu1 %vm500_vm1, %v9445_v30  ;;  %v6635_v30 = vld [vmem:[%s12681_s2 + $0xe8] sm:$0xff] }
 0x191   :  { %881 = vmatprep.mubr.f32.mxu0 %v9039_v63  ;;  %1006 = vmatprep.mubr.f32.mxu1 %v9039_v63 }
 0x192   :  { %7753 = vmatpush3.bf16.msra.mxu0 %v9221_v3  ;;  %7781 = vmatpush1.bf16.msra.mxu1 %v7780_v60  ;;  %v6686_v60 = vld [vmem:[%s12681_s2 + $0xf0] sm:$0xff] }
 0x193   :  { %7755 = vmatprep.subr.bf16.mxu0 %v9223_v5  ;;  %7783 = vmatprep.subr.bf16.mxu1 %v7782_v61  ;;  %v6708_v61 = vld [vmem:[%s12682_s3 + $0x1f0] sm:$0xff] }
 0x194   :  { %6607 = vmatmul.mubr.msk.f32.gmra.mrb[12].mxu0 %vm500_vm1, %v9441_v29  ;;  %6617 = vmatmul.mubr.msk.f32.gmra.mrb[12].mxu1 %vm500_vm1, %v9441_v29  ;;  %v6634_v29 = vld [vmem:[%s12681_s2 + $0xe0] sm:$0xff] }
 0x195   :  { %887 = vmatprep.mubr.f32.mxu0 %v9039_v63  ;;  %1012 = vmatprep.mubr.f32.mxu1 %v9039_v63 }
 0x196   :  { %7757 = vmatpush3.bf16.msra.mxu0 %v9223_v5  ;;  %7785 = vmatpush1.bf16.msra.mxu1 %v7784_v1  ;;  %v6721_v1 = vld [vmem:[%s12682_s3 + $0x258] sm:$0xff] }
 0x197   :  { %7759 = vmatprep.subr.bf16.mxu0 %v9233_v9  ;;  %1401 = vmatprep.subr.mxu1 %v6665_v2  ;;  %v6687_v2 = vld [vmem:[%s12681_s2 + $0xf8] sm:$0xff]  ;;  %v7818_v7 = vpack.c.bf16 %v6721_v1, %v6717_v0  ;;  %v6782_v1 = vld [vmem:[%s12682_s3 + $0x300] sm:$0xff] }
 0x198   :  { %6608 = vmatmul.mubr.msk.f32.gmra.mrb[14].mxu0 %vm500_vm1, %v9459_v38  ;;  %6618 = vmatmul.mubr.msk.f32.gmra.mrb[14].mxu1 %vm500_vm1, %v9459_v38  ;;  %v6715_v38 = vld [vmem:[%s12682_s3 + $0x228] sm:$0xff]  ;;  %v6785_v0 = vld [vmem:[%s12682_s3 + $0x318] sm:$0xff] }
 0x199   :  { %893 = vmatprep.mubr.f32.mxu0 %v9039_v63  ;;  %1018 = vmatprep.mubr.f32.mxu1 %v9039_v63  ;;  %v7810_v43 = vpack.c.bf16 %v6719_v39, %v6715_v38 }
 0x19a   :  { %7761 = vmatpush3.bf16.msra.mxu0 %v9233_v9  ;;  %1402 = vmatpush1.msra.mxu1 %v6664_v4  ;;  %v7816_v4 = vpack.c.bf16 %v6712_v62, %v6708_v61  ;;  %v6755_v61 = vld [vmem:[%s12681_s2 + $0x188] sm:$0xff] }
 0x19b   :  { %7763 = vmatprep.subr.bf16.mxu0 %v9243_v13  ;;  %7787 = vmatprep.subr.bf16.mxu1 %v9221_v3  ;;  %v6783_v62 = vld [vmem:[%s12682_s3 + $0x308] sm:$0xff] }
 0x19c   :  { %6609 = vmatmul.mubr.msk.f32.gmra.mrb[16].mxu0 %vm500_vm1, %v9452_v36  ;;  %6619 = vmatmul.mubr.msk.f32.gmra.mrb[16].mxu1 %vm500_vm1, %v9452_v36  ;;  %v6706_v36 = vld [vmem:[%s12682_s3 + $0x1e0] sm:$0xff] }
 0x19d   :  { %899 = vmatprep.mubr.f32.mxu0 %v9039_v63  ;;  %1024 = vmatprep.mubr.f32.mxu1 %v9039_v63  ;;  %v7808_v41 = vpack.c.bf16 %v6710_v37, %v6706_v36 }
 0x19e   :  { %7765 = vmatpush3.bf16.msra.mxu0 %v9243_v13 }
 0x19f   :  { %7767 = vmatprep.subr.bf16.mxu0 %v9249_v16 }
 0x1a0   :  { %6610 = vmatmul.mubr.msk.f32.gmra.mrb[18].mxu0 %vm500_vm1, %v9479_v47  ;;  %6620 = vmatmul.mubr.msk.f32.gmra.mrb[18].mxu1 %vm500_vm1, %v9479_v47 }
 0x1a1   :  { %905 = vmatprep.mubr.f32.mxu0 %v9039_v63  ;;  %1030 = vmatprep.mubr.f32.mxu1 %v9039_v63 }
 0x1a2   :  { %7769 = vmatpush3.bf16.msra.mxu0 %v9249_v16 }
 0x1a3   :  { %7771 = vmatprep.subr.bf16.mxu0 %v7770_v8  ;;  %v6716_v8 = vld [vmem:[%s12682_s3 + $0x230] sm:$0xff] }
 0x1a4   :  { %6611 = vmatmul.mubr.msk.f32.gmra.mrb[20].mxu0 %vm500_vm1, %v9475_v45  ;;  %6621 = vmatmul.mubr.msk.f32.gmra.mrb[20].mxu1 %vm500_vm1, %v9475_v45  ;;  %v6718_v45 = vld [vmem:[%s12682_s3 + $0x240] sm:$0xff] }
 0x1a5   :  { %911 = vmatprep.mubr.f32.mxu0 %v9039_v63  ;;  %1036 = vmatprep.mubr.f32.mxu1 %v9039_v63  ;;  %v7812_v47 = vpack.c.bf16 %v6718_v45, %v6714_v44  ;;  %v6770_v45 = vld [vmem:[%s12682_s3 + $0x2a0] sm:$0xff] }
 0x1a8   :  { %6612 = vmatmul.mubr.msk.f32.gmra.mrb[22].mxu0 %vm500_vm1, %v9488_v51  ;;  %6622 = vmatmul.mubr.msk.f32.gmra.mrb[22].mxu1 %vm500_vm1, %v9488_v51 }
 0x1a9   :  { %917 = vmatprep.mubr.f32.mxu0 %v9039_v63  ;;  %1042 = vmatprep.mubr.f32.mxu1 %v9039_v63 }
 0x1ac   :  { %6613 = vmatmul.mubr.msk.f32.gmra.mrb[24].mxu0 %vm500_vm1, %v9484_v50  ;;  %6623 = vmatmul.mubr.msk.f32.gmra.mrb[24].mxu1 %vm500_vm1, %v9484_v50 }
 0x1ad   :  { %923 = vmatprep.mubr.f32.mxu0 %v9039_v63  ;;  %1048 = vmatprep.mubr.f32.mxu1 %v9039_v63 }
 0x1b0   :  { %6614 = vmatmul.mubr.msk.f32.gmra.mrb[26].mxu0 %vm500_vm1, %v9496_v55  ;;  %6624 = vmatmul.mubr.msk.f32.gmra.mrb[26].mxu1 %vm500_vm1, %v9496_v55  ;;  %v6709_v55 = vld [vmem:[%s12682_s3 + $0x1f8] sm:$0xff] }
 0x1b1   :  { %929 = vmatprep.mubr.f32.mxu0 %v9039_v63  ;;  %1054 = vmatprep.mubr.f32.mxu1 %v9039_v63  ;;  %v7814_v59 = vpack.c.bf16 %v6713_v56, %v6709_v55  ;;  %v6750_v56 = vld [vmem:[%s12681_s2 + $0x160] sm:$0xff] }
 0x1b4   :  { %6615 = vmatmul.mubr.msk.f32.gmra.mrb[28].mxu0 %vm500_vm1, %v9492_v54  ;;  %6625 = vmatmul.mubr.msk.f32.gmra.mrb[28].mxu1 %vm500_vm1, %v9492_v54 }
 0x1b5   :  { %7564 = vmatprep.mubr.msk.f32.mxu0 %vm157_vm0, %v6626_v10  ;;  %1457 = vmatprep.mubr.f32.mxu1 %v9039_v63  ;;  %v6720_v10 = vld [vmem:[%s12682_s3 + $0x250] sm:$0xff] }
 0x1b6   :  { %v7820_v12 = vpack.c.bf16 %v6720_v10, %v6716_v8 }
 0x1b8   :  { %7565 = vmatmul.mubr.msk.f32.vlgmr.msra.gmra.mrb[30].mxu0 %vm157_vm0, %v6627_v17  ;;  %v6692_v17 = vld [vmem:[%s12681_s2 + $0x120] sm:$0xff] }
 0x1b9   :  { %7567 = vmatprep.mubr.msk.f32.mxu0 %vm157_vm0, %v6628_v19  ;;  %7773 = vmatpush1.bf16.msra.mxu0 %v7772_v18  ;;  %v6693_v18 = vld [vmem:[%s12681_s2 + $0x128] sm:$0xff]  ;;  %v6694_v19 = vld [vmem:[%s12681_s2 + $0x130] sm:$0xff] }
 0x1ba   :  { %7775 = vmatprep.subr.bf16.mxu0 %v7774_v20  ;;  %v6695_v20 = vld [vmem:[%s12681_s2 + $0x138] sm:$0xff] }
 0x1bc   :  { %7568 = vmatmul.mubr.msk.f32.gmra.mrb[32].mxu0 %vm157_vm0, %v6629_v23  ;;  %v6769_v23 = vld [vmem:[%s12682_s3 + $0x298] sm:$0xff] }
 0x1bd   :  { %7570 = vmatprep.mubr.msk.f32.mxu0 %vm157_vm0, %v6630_v25  ;;  %7777 = vmatpush1.bf16.msra.mxu0 %v7776_v24  ;;  %v6773_v24 = vld [vmem:[%s12682_s3 + $0x2b8] sm:$0xff] }
 0x1be   :  { %1276 = vmatprep.subr.mxu0 %v6663_v31  ;;  %v7850_v25 = vpack.c.bf16 %v6773_v24, %v6769_v23 }
 0x1c0   :  { %7571 = vmatmul.mubr.msk.f32.gmra.mrb[34].mxu0 %vm157_vm0, %v6631_v26  ;;  %v6768_v26 = vld [vmem:[%s12682_s3 + $0x290] sm:$0xff] }
 0x1c1   :  { %7573 = vmatprep.mubr.msk.f32.mxu0 %vm157_vm0, %v6632_v27  ;;  %1277 = vmatpush1.msra.mxu0 %v6662_v32  ;;  %v6772_v27 = vld [vmem:[%s12682_s3 + $0x2b0] sm:$0xff] }
 0x1c2   :  { %7807 = vmatprep.subr.bf16.mxu0 %v7806_v35  ;;  %v7852_v31 = vpack.c.bf16 %v6772_v27, %v6768_v26  ;;  %v6780_v35 = vld [vmem:[%s12682_s3 + $0x2f0] sm:$0xff] }
 0x1c3   :  { %v7856_v37 = vpack.c.bf16 %v6780_v35, %v6776_v34 }
 0x1c4   :  { %7574 = vmatmul.mubr.msk.f32.gmra.mrb[36].mxu0 %vm157_vm0, %v6633_v28  ;;  %v6777_v28 = vld [vmem:[%s12682_s3 + $0x2d8] sm:$0xff] }
 0x1c5   :  { %7576 = vmatprep.mubr.msk.f32.mxu0 %vm157_vm0, %v6634_v29  ;;  %v6781_v29 = vld [vmem:[%s12682_s3 + $0x2f8] sm:$0xff] }
 0x1c6   :  { %v7854_v33 = vpack.c.bf16 %v6781_v29, %v6777_v28 }
 0x1c8   :  { %7577 = vmatmul.mubr.msk.f32.gmra.mrb[38].mxu0 %vm157_vm0, %v6635_v30 }
 0x1c9   :  { %1332 = vmatprep.mubr.f32.mxu0 %v9039_v63 }
 0x28b   :  { %v7566_v40 = vpop.f32.mrb[30].mxu0 }
 0x28c   :  { %v1168_v42 = vpop.f32.mrb[31].mxu0 }
 0x28d   :  { %6666 = vmatmul.mubr.msk.f32.vlgmr.msra.gmra.mrb[10].mxu0 %vm500_vm1, %v1168_v42  ;;  %6676 = vmatmul.mubr.msk.f32.vlgmr.msra.gmra.mrb[10].mxu1 %vm500_vm1, %v1168_v42  ;;  %v6771_v42 = vld [vmem:[%s12682_s3 + $0x2a8] sm:$0xff] }
 0x28e   :  { %1338 = vmatprep.mubr.f32.mxu0 %v9039_v63  ;;  %1463 = vmatprep.mubr.f32.mxu1 %v9039_v63 }
 0x28f   :  { %v7569_v46 = vpop.f32.mrb[32].mxu0  ;;  %7789 = vmatpush3.bf16.msra.mxu1 %v9221_v3  ;;  %7809 = vmatpush1.bf16.msra.mxu0 %v7808_v41 }
 0x290   :  { %v1178_v48 = vpop.f32.mrb[33].mxu0  ;;  %7791 = vmatprep.subr.bf16.mxu1 %v9223_v5  ;;  %7811 = vmatprep.subr.bf16.mxu0 %v7810_v43 }
 0x291   :  { %6667 = vmatmul.mubr.msk.f32.gmra.mrb[12].mxu0 %vm500_vm1, %v7566_v40  ;;  %6677 = vmatmul.mubr.msk.f32.gmra.mrb[12].mxu1 %vm500_vm1, %v7566_v40 }
 0x292   :  { %1344 = vmatprep.mubr.f32.mxu0 %v9039_v63  ;;  %1469 = vmatprep.mubr.f32.mxu1 %v9039_v63 }
 0x293   :  { %v7572_v50 = vpop.f32.mrb[34].mxu0  ;;  %7793 = vmatpush3.bf16.msra.mxu1 %v9223_v5  ;;  %7813 = vmatpush1.bf16.msra.mxu0 %v7812_v47  ;;  %v6779_v47 = vld [vmem:[%s12682_s3 + $0x2e8] sm:$0xff] }
 0x294   :  { %v1188_v51 = vpop.f32.mrb[35].mxu0  ;;  %7795 = vmatprep.subr.bf16.mxu1 %v9233_v9  ;;  %1773 = vmatprep.subr.mxu0 %v6723_v49 }
 0x295   :  { %6668 = vmatmul.mubr.msk.f32.gmra.mrb[14].mxu0 %vm500_vm1, %v1178_v48  ;;  %6678 = vmatmul.mubr.msk.f32.gmra.mrb[14].mxu1 %vm500_vm1, %v1178_v48  ;;  %v6747_v48 = vld [vmem:[%s12681_s2 + $0x148] sm:$0xff] }
 0x296   :  { %1350 = vmatprep.mubr.f32.mxu0 %v9039_v63  ;;  %1475 = vmatprep.mubr.f32.mxu1 %v9039_v63 }
 0x297   :  { %v7575_v53 = vpop.f32.mrb[36].mxu0  ;;  %7797 = vmatpush3.bf16.msra.mxu1 %v9233_v9  ;;  %1774 = vmatpush1.msra.mxu0 %v6722_v52  ;;  %v6774_v52 = vld [vmem:[%s12682_s3 + $0x2c0] sm:$0xff] }
 0x298   :  { %v1198_v54 = vpop.f32.mrb[37].mxu0  ;;  %7799 = vmatprep.subr.bf16.mxu1 %v9243_v13  ;;  %7823 = vmatprep.subr.bf16.mxu0 %v9221_v3 }
 0x299   :  { %6669 = vmatmul.mubr.msk.f32.gmra.mrb[16].mxu0 %vm500_vm1, %v7569_v46  ;;  %6679 = vmatmul.mubr.msk.f32.gmra.mrb[16].mxu1 %vm500_vm1, %v7569_v46  ;;  %v6775_v46 = vld [vmem:[%s12682_s3 + $0x2c8] sm:$0xff] }
 0x29a   :  { %1356 = vmatprep.mubr.f32.mxu0 %v9039_v63  ;;  %1481 = vmatprep.mubr.f32.mxu1 %v9039_v63 }
 0x29b   :  { %v7578_v57 = vpop.f32.mrb[38].mxu0  ;;  %7801 = vmatpush3.bf16.msra.mxu1 %v9243_v13 }
 0x29c   :  { %v1208_v58 = vpop.f32.mrb[39].mxu0  ;;  %7803 = vmatprep.subr.bf16.mxu1 %v9249_v16 }
 0x29d   :  { %6670 = vmatmul.mubr.msk.f32.gmra.mrb[18].mxu0 %vm500_vm1, %v1188_v51  ;;  %6680 = vmatmul.mubr.msk.f32.gmra.mrb[18].mxu1 %vm500_vm1, %v1188_v51  ;;  %v7846_v51 = vpack.c.bf16 %v6779_v47, %v6775_v46 }
 0x29e   :  { %1362 = vmatprep.mubr.f32.mxu0 %v9039_v63  ;;  %1487 = vmatprep.mubr.f32.mxu1 %v9039_v63 }
 0x29f   :  { %7805 = vmatpush3.bf16.msra.mxu1 %v9249_v16 }
 0x2a0   :  { %7815 = vmatprep.subr.bf16.mxu1 %v7814_v59  ;;  %v6753_v59 = vld [vmem:[%s12681_s2 + $0x178] sm:$0xff] }
 0x2a1   :  { %6671 = vmatmul.mubr.msk.f32.gmra.mrb[20].mxu0 %vm500_vm1, %v7572_v50  ;;  %6681 = vmatmul.mubr.msk.f32.gmra.mrb[20].mxu1 %vm500_vm1, %v7572_v50  ;;  %v6748_v50 = vld [vmem:[%s12681_s2 + $0x150] sm:$0xff] }
 0x2a2   :  { %1368 = vmatprep.mubr.f32.mxu0 %v9039_v63  ;;  %1493 = vmatprep.mubr.f32.mxu1 %v9039_v63 }
 0x2a5   :  { %6672 = vmatmul.mubr.msk.f32.gmra.mrb[22].mxu0 %vm500_vm1, %v1198_v54  ;;  %6682 = vmatmul.mubr.msk.f32.gmra.mrb[22].mxu1 %vm500_vm1, %v1198_v54  ;;  %v6749_v54 = vld [vmem:[%s12681_s2 + $0x158] sm:$0xff] }
 0x2a6   :  { %1374 = vmatprep.mubr.f32.mxu0 %v9039_v63  ;;  %1499 = vmatprep.mubr.f32.mxu1 %v9039_v63 }
 0x2a9   :  { %6673 = vmatmul.mubr.msk.f32.gmra.mrb[24].mxu0 %vm500_vm1, %v7575_v53  ;;  %6683 = vmatmul.mubr.msk.f32.gmra.mrb[24].mxu1 %vm500_vm1, %v7575_v53  ;;  %v6778_v53 = vld [vmem:[%s12682_s3 + $0x2e0] sm:$0xff] }
 0x2aa   :  { %1380 = vmatprep.mubr.f32.mxu0 %v9039_v63  ;;  %1505 = vmatprep.mubr.f32.mxu1 %v9039_v63  ;;  %v7848_v55 = vpack.c.bf16 %v6778_v53, %v6774_v52 }
 0x2ad   :  { %6674 = vmatmul.mubr.msk.f32.gmra.mrb[26].mxu0 %vm500_vm1, %v1208_v58  ;;  %6684 = vmatmul.mubr.msk.f32.gmra.mrb[26].mxu1 %vm500_vm1, %v1208_v58  ;;  %v6752_v58 = vld [vmem:[%s12681_s2 + $0x170] sm:$0xff] }
 0x2ae   :  { %1386 = vmatprep.mubr.f32.mxu0 %v9039_v63  ;;  %1511 = vmatprep.mubr.f32.mxu1 %v9039_v63 }
 0x2b1   :  { %6675 = vmatmul.mubr.msk.f32.gmra.mrb[28].mxu0 %vm500_vm1, %v7578_v57  ;;  %6685 = vmatmul.mubr.msk.f32.gmra.mrb[28].mxu1 %vm500_vm1, %v7578_v57  ;;  %v6751_v57 = vld [vmem:[%s12681_s2 + $0x168] sm:$0xff] }
 0x2b2   :  { %7599 = vmatprep.mubr.msk.f32.mxu1 %vm157_vm0, %v6686_v60  ;;  %1829 = vmatprep.mubr.f32.mxu0 %v9039_v63  ;;  %v6754_v60 = vld [vmem:[%s12681_s2 + $0x180] sm:$0xff] }
 0x2b5   :  { %7600 = vmatmul.mubr.msk.f32.vlgmr.msra.gmra.mrb[30].mxu1 %vm157_vm0, %v6687_v2  ;;  %v6784_v2 = vld [vmem:[%s12682_s3 + $0x310] sm:$0xff] }
 0x2b6   :  { %7602 = vmatprep.mubr.msk.f32.mxu1 %vm157_vm0, %v6688_v6  ;;  %7817 = vmatpush1.bf16.msra.mxu1 %v7816_v4 }
 0x2b7   :  { %7819 = vmatprep.subr.bf16.mxu1 %v7818_v7 }
 0x2b9   :  { %7603 = vmatmul.mubr.msk.f32.gmra.mrb[32].mxu1 %vm157_vm0, %v6689_v11 }
 0x2ba   :  { %7605 = vmatprep.mubr.msk.f32.mxu1 %vm157_vm0, %v6690_v14  ;;  %7821 = vmatpush1.bf16.msra.mxu1 %v7820_v12 }
 0x2bb   :  { %1898 = vmatprep.subr.mxu1 %v6725_v21 }
 0x2bd   :  { %7606 = vmatmul.mubr.msk.f32.gmra.mrb[34].mxu1 %vm157_vm0, %v6691_v15 }
 0x2be   :  { %7608 = vmatprep.mubr.msk.f32.mxu1 %vm157_vm0, %v6692_v17  ;;  %1899 = vmatpush1.msra.mxu1 %v6724_v22  ;;  %v2552_v22 = vld [vmem:[#allocation8] sm:$0xf] }
 0x2bf   :  { %7851 = vmatprep.subr.bf16.mxu1 %v7850_v25 }
 0x2c1   :  { %7609 = vmatmul.mubr.msk.f32.gmra.mrb[36].mxu1 %vm157_vm0, %v6693_v18  ;;  %v2554_v18 = vlaneseq }
 0x2c2   :  { %7611 = vmatprep.mubr.msk.f32.mxu1 %vm157_vm0, %v6694_v19 }
 0x2c3   :  { %v10023_v19 = vshrl.u32 %v2554_v18, 7 }
 0x2c5   :  { %7612 = vmatmul.mubr.msk.f32.gmra.mrb[38].mxu1 %vm157_vm0, %v6695_v20  ;;  %v2556_v20 = vsub.s32 0, %v10023_v19  ;;  %v2564_v21 = vsub.s32 2, %v10023_v19  ;;  %v2560_v23 = vsub.s32 1, %v10023_v19  ;;  %v2568_v24 = vsub.s32 3, %v10023_v19 }
 0x2c6   :  { %1954 = vmatprep.mubr.f32.mxu1 %v9039_v63 }
 0x2c7   :  { %v10029_v25 = vrot.slane %v2552_v22, %v2556_v20  ;;  %v10031_v26 = vrot.slane %v2552_v22, %v2564_v21  ;;  %v10033_v27 = vrot.slane %v2552_v22, %v2560_v23  ;;  %v10035_v28 = vrot.slane %v2552_v22, %v2568_v24 }
 0x388   :  { %v7601_v30 = vpop.f32.mrb[30].mxu1 }
 0x389   :  { %v1665_v32 = vpop.f32.mrb[31].mxu1 }
 0x38a   :  { %6726 = vmatmul.mubr.msk.f32.vlgmr.msra.gmra.mrb[10].mxu0 %vm500_vm1, %v1665_v32  ;;  %6736 = vmatmul.mubr.msk.f32.vlgmr.msra.gmra.mrb[10].mxu1 %vm500_vm1, %v1665_v32 }
 0x38b   :  { %1835 = vmatprep.mubr.f32.mxu0 %v9039_v63  ;;  %1960 = vmatprep.mubr.f32.mxu1 %v9039_v63 }
 0x38c   :  { %v7604_v36 = vpop.f32.mrb[32].mxu1  ;;  %7825 = vmatpush3.bf16.msra.mxu0 %v9221_v3  ;;  %7853 = vmatpush1.bf16.msra.mxu1 %v7852_v31 }
 0x38d   :  { %v1675_v38 = vpop.f32.mrb[33].mxu1  ;;  %7827 = vmatprep.subr.bf16.mxu0 %v9223_v5  ;;  %7855 = vmatprep.subr.bf16.mxu1 %v7854_v33 }
 0x38e   :  { %6727 = vmatmul.mubr.msk.f32.gmra.mrb[12].mxu0 %vm500_vm1, %v7601_v30  ;;  %6737 = vmatmul.mubr.msk.f32.gmra.mrb[12].mxu1 %vm500_vm1, %v7601_v30 }
 0x38f   :  { %1841 = vmatprep.mubr.f32.mxu0 %v9039_v63  ;;  %1966 = vmatprep.mubr.f32.mxu1 %v9039_v63 }
 0x390   :  { %v7607_v39 = vpop.f32.mrb[34].mxu1  ;;  %7829 = vmatpush3.bf16.msra.mxu0 %v9223_v5  ;;  %7857 = vmatpush1.bf16.msra.mxu1 %v7856_v37  ;;  %v6767_v5 = vld [vmem:[%s12682_s3 + $0x288] sm:$0xff] }
 0x391   :  { %v1685_v40 = vpop.f32.mrb[35].mxu1  ;;  %7831 = vmatprep.subr.bf16.mxu0 %v9233_v9  ;;  %v7842_v44 = vpack.c.bf16 %v6771_v42, %v6767_v5  ;;  %2395 = vmatprep.subr.mxu1 %v6785_v0 }
 0x392   :  { %6728 = vmatmul.mubr.msk.f32.gmra.mrb[14].mxu0 %vm500_vm1, %v1675_v38  ;;  %6738 = vmatmul.mubr.msk.f32.gmra.mrb[14].mxu1 %vm500_vm1, %v1675_v38 }
 0x393   :  { %1847 = vmatprep.mubr.f32.mxu0 %v9039_v63  ;;  %1972 = vmatprep.mubr.f32.mxu1 %v9039_v63 }
 0x394   :  { %v7610_v3 = vpop.f32.mrb[36].mxu1  ;;  %7833 = vmatpush3.bf16.msra.mxu0 %v9233_v9  ;;  %2396 = vmatpush1.msra.mxu1 %v6784_v2 }
 0x395   :  { %v1695_v41 = vpop.f32.mrb[37].mxu1  ;;  %7835 = vmatprep.subr.bf16.mxu0 %v9243_v13 }
 0x396   :  { %6729 = vmatmul.mubr.msk.f32.gmra.mrb[16].mxu0 %vm500_vm1, %v7604_v36  ;;  %6739 = vmatmul.mubr.msk.f32.gmra.mrb[16].mxu1 %vm500_vm1, %v7604_v36 }
 0x397   :  { %1853 = vmatprep.mubr.f32.mxu0 %v9039_v63  ;;  %1978 = vmatprep.mubr.f32.mxu1 %v9039_v63 }
 0x398   :  { %v7613_v9 = vpop.f32.mrb[38].mxu1  ;;  %7837 = vmatpush3.bf16.msra.mxu0 %v9243_v13  ;;  %v6746_v13 = vld [vmem:[%s12681_s2 + $0x140] sm:$0xff] }
 0x399   :  { %v1705_v43 = vpop.f32.mrb[39].mxu1  ;;  %7839 = vmatprep.subr.bf16.mxu0 %v9249_v16 }
 0x39a   :  { %6730 = vmatmul.mubr.msk.f32.gmra.mrb[18].mxu0 %vm500_vm1, %v1685_v40  ;;  %6740 = vmatmul.mubr.msk.f32.gmra.mrb[18].mxu1 %vm500_vm1, %v1685_v40 }
 0x39b   :  { %1859 = vmatprep.mubr.f32.mxu0 %v9039_v63  ;;  %1984 = vmatprep.mubr.f32.mxu1 %v9039_v63 }
 0x39c   :  { %7841 = vmatpush3.bf16.msra.mxu0 %v9249_v16  ;;  %v6766_v16 = vld [vmem:[%s12682_s3 + $0x280] sm:$0xff]  ;;  %s2614_s3 = sld [smem:[#allocation3]] }
 0x39d   :  { %7843 = vmatprep.subr.bf16.mxu0 %v7842_v44  ;;  %v7844_v49 = vpack.c.bf16 %v6770_v45, %v6766_v16 }
 0x39e   :  { %6731 = vmatmul.mubr.msk.f32.gmra.mrb[20].mxu0 %vm500_vm1, %v7607_v39  ;;  %6741 = vmatmul.mubr.msk.f32.gmra.mrb[20].mxu1 %vm500_vm1, %v7607_v39 }
 0x39f   :  { %1865 = vmatprep.mubr.f32.mxu0 %v9039_v63  ;;  %1990 = vmatprep.mubr.f32.mxu1 %v9039_v63 }
 0x3a2   :  { %6732 = vmatmul.mubr.msk.f32.gmra.mrb[22].mxu0 %vm500_vm1, %v1695_v41  ;;  %6742 = vmatmul.mubr.msk.f32.gmra.mrb[22].mxu1 %vm500_vm1, %v1695_v41  ;;  %v10038_v32 = vstv %s2614_s3 }
 0x3a3   :  { %1871 = vmatprep.mubr.f32.mxu0 %v9039_v63  ;;  %1996 = vmatprep.mubr.f32.mxu1 %v9039_v63 }
 0x3a6   :  { %6733 = vmatmul.mubr.msk.f32.gmra.mrb[24].mxu0 %vm500_vm1, %v7610_v3  ;;  %6743 = vmatmul.mubr.msk.f32.gmra.mrb[24].mxu1 %vm500_vm1, %v7610_v3 }
 0x3a7   :  { %1877 = vmatprep.mubr.f32.mxu0 %v9039_v63  ;;  %2002 = vmatprep.mubr.f32.mxu1 %v9039_v63 }
 0x3aa   :  { %6734 = vmatmul.mubr.msk.f32.gmra.mrb[26].mxu0 %vm500_vm1, %v1705_v43  ;;  %6744 = vmatmul.mubr.msk.f32.gmra.mrb[26].mxu1 %vm500_vm1, %v1705_v43 }
 0x3ab   :  { %1883 = vmatprep.mubr.f32.mxu0 %v9039_v63  ;;  %2008 = vmatprep.mubr.f32.mxu1 %v9039_v63 }
 0x3ae   :  { %6735 = vmatmul.mubr.msk.f32.gmra.mrb[28].mxu0 %vm500_vm1, %v7613_v9  ;;  %6745 = vmatmul.mubr.msk.f32.gmra.mrb[28].mxu1 %vm500_vm1, %v7613_v9 }
 0x3af   :  { %7634 = vmatprep.mubr.msk.f32.mxu0 %vm157_vm0, %v6746_v13  ;;  %2451 = vmatprep.mubr.f32.mxu1 %v9039_v63 }
 0x3b2   :  { %7635 = vmatmul.mubr.msk.f32.vlgmr.msra.gmra.mrb[40].mxu0 %vm157_vm0, %v6747_v48 }
 0x3b3   :  { %7637 = vmatprep.mubr.msk.f32.mxu0 %vm157_vm0, %v6748_v50  ;;  %7845 = vmatpush1.bf16.msra.mxu0 %v7844_v49 }
 0x3b4   :  { %7847 = vmatprep.subr.bf16.mxu0 %v7846_v51 }
 0x3b6   :  { %7638 = vmatmul.mubr.msk.f32.gmra.mrb[42].mxu0 %vm157_vm0, %v6749_v54 }
 0x3b7   :  { %7640 = vmatprep.mubr.msk.f32.mxu0 %vm157_vm0, %v6750_v56  ;;  %7849 = vmatpush1.bf16.msra.mxu0 %v7848_v55 }
 0x3b8   :  { %2270 = vmatprep.subr.mxu0 %v6783_v62 }
 0x3ba   :  { %7641 = vmatmul.mubr.msk.f32.gmra.mrb[44].mxu0 %vm157_vm0, %v6751_v57 }
 0x3bb   :  { %7643 = vmatprep.mubr.msk.f32.mxu0 %vm157_vm0, %v6752_v58  ;;  %2271 = vmatpush1.msra.mxu0 %v6782_v1 }
 0x3be   :  { %7644 = vmatmul.mubr.msk.f32.gmra.mrb[46].mxu0 %vm157_vm0, %v6753_v59 }
 0x3bf   :  { %7646 = vmatprep.mubr.msk.f32.mxu0 %vm157_vm0, %v6754_v60 }
 0x3c2   :  { %7647 = vmatmul.mubr.msk.f32.gmra.mrb[48].mxu0 %vm157_vm0, %v6755_v61 }
 0x3c3   :  { %2326 = vmatprep.mubr.f32.mxu0 %v9039_v63 }
 0x485   :  { %v7636_v4 = vpop.f32.mrb[40].mxu0 }
 0x486   :  { %v2162_v6 = vpop.f32.mrb[41].mxu0 }
 0x487   :  { %6786 = vmatmul.mubr.msk.f32.vlgmr.msra.gmra.mrb[10].mxu0 %vm500_vm1, %v2162_v6  ;;  %6796 = vmatmul.mubr.msk.f32.vlgmr.msra.gmra.mrb[10].mxu1 %vm500_vm1, %v2162_v6 }
 0x488   :  { %2332 = vmatprep.mubr.f32.mxu0 %v9039_v63  ;;  %2457 = vmatprep.mubr.f32.mxu1 %v9039_v63 }
 0x489   :  { %v7639_v7 = vpop.f32.mrb[42].mxu0 }
 0x48a   :  { %v2172_v8 = vpop.f32.mrb[43].mxu0 }
 0x48b   :  { %6787 = vmatmul.mubr.msk.f32.gmra.mrb[12].mxu0 %vm500_vm1, %v7636_v4  ;;  %6797 = vmatmul.mubr.msk.f32.gmra.mrb[12].mxu1 %vm500_vm1, %v7636_v4 }
 0x48c   :  { %2338 = vmatprep.mubr.f32.mxu0 %v9039_v63  ;;  %2463 = vmatprep.mubr.f32.mxu1 %v9039_v63 }
 0x48d   :  { %v7642_v10 = vpop.f32.mrb[44].mxu0 }
 0x48e   :  { %v2182_v11 = vpop.f32.mrb[45].mxu0 }
 0x48f   :  { %6788 = vmatmul.mubr.msk.f32.gmra.mrb[14].mxu0 %vm500_vm1, %v2172_v8  ;;  %6798 = vmatmul.mubr.msk.f32.gmra.mrb[14].mxu1 %vm500_vm1, %v2172_v8 }
 0x490   :  { %2344 = vmatprep.mubr.f32.mxu0 %v9039_v63  ;;  %2469 = vmatprep.mubr.f32.mxu1 %v9039_v63 }
 0x491   :  { %v7645_v12 = vpop.f32.mrb[46].mxu0 }
 0x492   :  { %v2192_v14 = vpop.f32.mrb[47].mxu0 }
 0x493   :  { %6789 = vmatmul.mubr.msk.f32.gmra.mrb[16].mxu0 %vm500_vm1, %v7639_v7  ;;  %6799 = vmatmul.mubr.msk.f32.gmra.mrb[16].mxu1 %vm500_vm1, %v7639_v7 }
 0x494   :  { %2350 = vmatprep.mubr.f32.mxu0 %v9039_v63  ;;  %2475 = vmatprep.mubr.f32.mxu1 %v9039_v63 }
 0x495   :  { %v7648_v15 = vpop.f32.mrb[48].mxu0 }
 0x496   :  { %v2202_v17 = vpop.f32.mrb[49].mxu0 }
 0x497   :  { %6790 = vmatmul.mubr.msk.f32.gmra.mrb[18].mxu0 %vm500_vm1, %v2182_v11  ;;  %6800 = vmatmul.mubr.msk.f32.gmra.mrb[18].mxu1 %vm500_vm1, %v2182_v11 }
 0x498   :  { %2356 = vmatprep.mubr.f32.mxu0 %v9039_v63  ;;  %2481 = vmatprep.mubr.f32.mxu1 %v9039_v63 }
 0x49b   :  { %6791 = vmatmul.mubr.msk.f32.gmra.mrb[20].mxu0 %vm500_vm1, %v7642_v10  ;;  %6801 = vmatmul.mubr.msk.f32.gmra.mrb[20].mxu1 %vm500_vm1, %v7642_v10 }
 0x49c   :  { %2362 = vmatprep.mubr.f32.mxu0 %v9039_v63  ;;  %2487 = vmatprep.mubr.f32.mxu1 %v9039_v63 }
 0x49f   :  { %6792 = vmatmul.mubr.msk.f32.gmra.mrb[22].mxu0 %vm500_vm1, %v2192_v14  ;;  %6802 = vmatmul.mubr.msk.f32.gmra.mrb[22].mxu1 %vm500_vm1, %v2192_v14 }
 0x4a0   :  { %2368 = vmatprep.mubr.f32.mxu0 %v9039_v63  ;;  %2493 = vmatprep.mubr.f32.mxu1 %v9039_v63 }
 0x4a3   :  { %6793 = vmatmul.mubr.msk.f32.gmra.mrb[24].mxu0 %vm500_vm1, %v7645_v12  ;;  %6803 = vmatmul.mubr.msk.f32.gmra.mrb[24].mxu1 %vm500_vm1, %v7645_v12 }
 0x4a4   :  { %2374 = vmatprep.mubr.f32.mxu0 %v9039_v63  ;;  %2499 = vmatprep.mubr.f32.mxu1 %v9039_v63 }
 0x4a7   :  { %6794 = vmatmul.mubr.msk.f32.gmra.mrb[26].mxu0 %vm500_vm1, %v2202_v17  ;;  %6804 = vmatmul.mubr.msk.f32.gmra.mrb[26].mxu1 %vm500_vm1, %v2202_v17 }
 0x4a8   :  { %2380 = vmatprep.mubr.f32.mxu0 %v9039_v63  ;;  %2505 = vmatprep.mubr.f32.mxu1 %v9039_v63 }
 0x4ab   :  { %6795 = vmatmul.mubr.msk.f32.gmra.mrb[28].mxu0 %vm500_vm1, %v7648_v15  ;;  %6805 = vmatmul.mubr.msk.f32.gmra.mrb[28].mxu1 %vm500_vm1, %v7648_v15 }
 0x4ac   :  { %2820 = vmatprep.mubr.f32.mxu1 %v9039_v63  ;;  %2915 = vmatprep.mubr.f32.mxu0 %v9039_v63 }
 0x55a   :  { %v2328_v29 = vpop.f32.mrb[10].mxu0  ;;  %v2453_v30 = vpop.f32.mrb[10].mxu1 }
 0x55b   :  { %v2574_v31 = vadd.f32 %v10029_v25, %v2328_v29  ;;  %v2576_v33 = vadd.f32 %v10031_v26, %v2453_v30  ;;  %v2330_v34 = vpop.f32.mrb[11].mxu0  ;;  %v2455_v35 = vpop.f32.mrb[11].mxu1 }
 0x55c   :  { %v2575_v36 = vadd.f32 %v10033_v27, %v2330_v34  ;;  %v2577_v37 = vadd.f32 %v10035_v28, %v2455_v35 }
 0x55d   :  { %vm2615_vm2 = vcmp.ge.f32.partialorder %v2574_v31, 0.0  ;;  %v2656_v38 = vmul.f32 %v10038_v32, %v2574_v31  ;;  %vm2617_vm3 = vcmp.ge.f32.partialorder %v2576_v33, 0.0  ;;  %v2658_v39 = vmul.f32 %v10038_v32, %v2576_v33 }
 0x55e   :  { %v2334_v40 = vpop.f32.mrb[12].mxu0  ;;  %v2459_v3 = vpop.f32.mrb[12].mxu1  ;;  %vm2616_vm4 = vcmp.ge.f32.partialorder %v2575_v36, 0.0  ;;  %v2657_v41 = vmul.f32 %v10038_v32, %v2575_v36  ;;  %vm2618_vm5 = vcmp.ge.f32.partialorder %v2577_v37, 0.0  ;;  %v2659_v44 = vmul.f32 %v10038_v32, %v2577_v37 }
 0x55f   :  { %v2578_v5 = vadd.f32 %v10029_v25, %v2334_v40  ;;  %v2580_v42 = vadd.f32 %v10031_v26, %v2459_v3  ;;  %v2336_v9 = vpop.f32.mrb[13].mxu0  ;;  %v2461_v43 = vpop.f32.mrb[13].mxu1  ;;  %v2696_v47 = vsel %vm2615_vm2, %v2574_v31, %v2656_v38  ;;  %v2698_v48 = vsel %vm2617_vm3, %v2576_v33, %v2658_v39 }
 0x560   :  { %v2579_v13 = vadd.f32 %v10033_v27, %v2336_v9  ;;  %v2581_v16 = vadd.f32 %v10035_v28, %v2461_v43  ;;  %v2697_v0 = vsel %vm2616_vm4, %v2575_v36, %v2657_v41  ;;  %v2699_v1 = vsel %vm2618_vm5, %v2577_v37, %v2659_v44 }
 0x561   :  { %vm2619_vm6 = vcmp.ge.f32.partialorder %v2578_v5, 0.0  ;;  %v2660_v45 = vmul.f32 %v10038_v32, %v2578_v5  ;;  %vm2621_vm7 = vcmp.ge.f32.partialorder %v2580_v42, 0.0  ;;  %v2662_v46 = vmul.f32 %v10038_v32, %v2580_v42 }
 0x562   :  { %v2661_v49 = vmul.f32 %v10038_v32, %v2579_v13  ;;  %v2663_v50 = vmul.f32 %v10038_v32, %v2581_v16  ;;  %v2340_v51 = vpop.f32.mrb[14].mxu0  ;;  %v2465_v52 = vpop.f32.mrb[14].mxu1  ;;  %vm2620_vm8 = vcmp.ge.f32.partialorder %v2579_v13, 0.0  ;;  %vm2622_vm9 = vcmp.ge.f32.partialorder %v2581_v16, 0.0 }
 0x563   :  { %v2700_v53 = vsel %vm2619_vm6, %v2578_v5, %v2660_v45  ;;  %v2702_v54 = vsel %vm2621_vm7, %v2580_v42, %v2662_v46  ;;  %v2582_v55 = vadd.f32 %v10029_v25, %v2340_v51  ;;  %v2584_v56 = vadd.f32 %v10031_v26, %v2465_v52  ;;  %v2342_v57 = vpop.f32.mrb[15].mxu0  ;;  %v2467_v58 = vpop.f32.mrb[15].mxu1 }
 0x564   :  { %v10059_v59 = vpack.c.bf16 %v2700_v53, %v2696_v47  ;;  %v10061_v60 = vpack.c.bf16 %v2702_v54, %v2698_v48  ;;  %v2583_v61 = vadd.f32 %v10033_v27, %v2342_v57  ;;  %v10065_v62 = vadd.f32 %v10035_v28, %v2467_v58 }
 0x565   :  { %vm2623_vm10 = vcmp.ge.f32.partialorder %v2582_v55, 0.0  ;;  %v2664_v2 = vmul.f32 %v10038_v32, %v2582_v55  ;;  %vm2625_vm11 = vcmp.ge.f32.partialorder %v2584_v56, 0.0  ;;  %v2666_v4 = vmul.f32 %v10038_v32, %v2584_v56 }
 0x566   :  { %v2346_v6 = vpop.f32.mrb[16].mxu0  ;;  %v2471_v7 = vpop.f32.mrb[16].mxu1  ;;  %vm2624_vm12 = vcmp.ge.f32.partialorder %v2583_v61, 0.0  ;;  %v2665_v8 = vmul.f32 %v10038_v32, %v2583_v61  ;;  %vm2626_vm13 = vcmp.ge.f32.partialorder %v10065_v62, 0.0  ;;  %v2701_v18 = vsel %vm2620_vm8, %v2579_v13, %v2661_v49 }
 0x567   :  { %v2586_v10 = vadd.f32 %v10029_v25, %v2346_v6  ;;  %v2588_v11 = vadd.f32 %v10031_v26, %v2471_v7  ;;  %v2348_v12 = vpop.f32.mrb[17].mxu0  ;;  %v2473_v14 = vpop.f32.mrb[17].mxu1  ;;  %v2703_v20 = vsel %vm2622_vm9, %v2581_v16, %v2663_v50  ;;  %v2704_v23 = vsel %vm2623_vm10, %v2582_v55, %v2664_v2 }
 0x568   :  { %v2587_v15 = vadd.f32 %v10033_v27, %v2348_v12  ;;  %v10077_v17 = vadd.f32 %v10035_v28, %v2473_v14  ;;  %v2706_v24 = vsel %vm2625_vm11, %v2584_v56, %v2666_v4  ;;  %v2667_v29 = vmul.f32 %v10038_v32, %v10065_v62 }
 0x569   :  { %vm2627_vm14 = vcmp.ge.f32.partialorder %v2586_v10, 0.0  ;;  %v2668_v21 = vmul.f32 %v10038_v32, %v2586_v10  ;;  %vm2629_vm15 = vcmp.ge.f32.partialorder %v2588_v11, 0.0  ;;  %v2670_v22 = vmul.f32 %v10038_v32, %v2588_v11 }
 0x56a   :  { %vm2628_vm2 = vcmp.ge.f32.partialorder %v2587_v15, 0.0  ;;  %v2352_v30 = vpop.f32.mrb[18].mxu0  ;;  %v2477_v31 = vpop.f32.mrb[18].mxu1  ;;  %v10087_v35 = vpack.c.bf16 %v2701_v18, %v2697_v0  ;;  %v10089_v36 = vpack.c.bf16 %v2703_v20, %v2699_v1  ;;  %v2669_v5 = vmul.f32 %v10038_v32, %v2587_v15 }
 0x56b   :  { %v2708_v33 = vsel %vm2627_vm14, %v2586_v10, %v2668_v21  ;;  %v2710_v34 = vsel %vm2629_vm15, %v2588_v11, %v2670_v22  ;;  %v2354_v37 = vpop.f32.mrb[19].mxu0  ;;  %v2479_v38 = vpop.f32.mrb[19].mxu1  ;;  %v2590_v3 = vadd.f32 %v10029_v25, %v2352_v30  ;;  %v2592_v41 = vadd.f32 %v10031_v26, %v2477_v31 }
 0x56c   :  { %v10091_v39 = vpack.c.bf16 %v2708_v33, %v2704_v23  ;;  %v10093_v40 = vpack.c.bf16 %v2710_v34, %v2706_v24  ;;  %vm2630_vm3 = vcmp.ge.f32.partialorder %v10077_v17, 0.0  ;;  %7859 = vmatprep.subr.bf16.mxu1 %v10087_v35  ;;  %7879 = vmatprep.subr.bf16.mxu0 %v10089_v36  ;;  %v10102_v42 = vadd.f32 %v10033_v27, %v2354_v37 }
 0x56d   :  { %v10105_v9 = vadd.f32 %v10035_v28, %v2479_v38  ;;  %v2671_v43 = vmul.f32 %v10038_v32, %v10077_v17  ;;  %7861 = vmatpush1.bf16.msra.mxu1 %v10059_v59  ;;  %7881 = vmatpush1.bf16.msra.mxu0 %v10061_v60  ;;  %vm2631_vm4 = vcmp.ge.f32.partialorder %v2590_v3, 0.0  ;;  %v2672_v44 = vmul.f32 %v10038_v32, %v2590_v3 }
 0x56e   :  { %v2358_v13 = vpop.f32.mrb[20].mxu0  ;;  %v2483_v16 = vpop.f32.mrb[20].mxu1  ;;  %v2705_v45 = vsel %vm2624_vm12, %v2583_v61, %v2665_v8  ;;  %vm2633_vm5 = vcmp.ge.f32.partialorder %v2592_v41, 0.0  ;;  %v2674_v46 = vmul.f32 %v10038_v32, %v2592_v41  ;;  %vm2632_vm6 = vcmp.ge.f32.partialorder %v10102_v42, 0.0 }
 0x56f   :  { %v2673_v47 = vmul.f32 %v10038_v32, %v10102_v42  ;;  %v2360_v48 = vpop.f32.mrb[21].mxu0  ;;  %v2485_v49 = vpop.f32.mrb[21].mxu1  ;;  %vm2634_vm7 = vcmp.ge.f32.partialorder %v10105_v9, 0.0  ;;  %v10120_v50 = vmul.f32 %v10038_v32, %v10105_v9  ;;  %v2594_v51 = vadd.f32 %v10029_v25, %v2358_v13 }
 0x570   :  { %v2596_v52 = vadd.f32 %v10031_v26, %v2483_v16  ;;  %v2712_v53 = vsel %vm2631_vm4, %v2590_v3, %v2672_v44  ;;  %v2595_v54 = vadd.f32 %v10033_v27, %v2360_v48  ;;  %v10126_v55 = vadd.f32 %v10035_v28, %v2485_v49 }
 0x571   :  { %v2709_v56 = vsel %vm2628_vm2, %v2587_v15, %v2669_v5  ;;  %vm2635_vm8 = vcmp.ge.f32.partialorder %v2594_v51, 0.0  ;;  %v2676_v57 = vmul.f32 %v10038_v32, %v2594_v51  ;;  %v2714_v1 = vsel %vm2633_vm5, %v2592_v41, %v2674_v46 }
 0x572   :  { %vm2637_vm9 = vcmp.ge.f32.partialorder %v2596_v52, 0.0  ;;  %v2678_v58 = vmul.f32 %v10038_v32, %v2596_v52  ;;  %v2364_v61 = vpop.f32.mrb[22].mxu0  ;;  %v2489_v0 = vpop.f32.mrb[22].mxu1  ;;  %vm2636_vm10 = vcmp.ge.f32.partialorder %v2595_v54, 0.0  ;;  %v2677_v2 = vmul.f32 %v10038_v32, %v2595_v54 }
 0x573   :  { %v2707_v4 = vsel %vm2626_vm13, %v10065_v62, %v2667_v29  ;;  %v2366_v6 = vpop.f32.mrb[23].mxu0  ;;  %v2491_v7 = vpop.f32.mrb[23].mxu1  ;;  %v2716_v8 = vsel %vm2635_vm8, %v2594_v51, %v2676_v57  ;;  %v10136_v11 = vpack.c.bf16 %v2709_v56, %v2705_v45  ;;  %v2711_v12 = vsel %vm2630_vm3, %v10077_v17, %v2671_v43 }
 0x574   :  { %v2718_v10 = vsel %vm2637_vm9, %v2596_v52, %v2678_v58  ;;  %v10141_v14 = vpack.c.bf16 %v2716_v8, %v2712_v53  ;;  %v10145_v18 = vpack.c.bf16 %v2711_v12, %v2707_v4  ;;  %v2598_v20 = vadd.f32 %v10029_v25, %v2364_v61 }
 0x575   :  { %v10143_v15 = vpack.c.bf16 %v2718_v10, %v2714_v1  ;;  %vm2638_vm11 = vcmp.ge.f32.partialorder %v10126_v55, 0.0  ;;  %7863 = vmatprep.subr.bf16.mxu1 %v10136_v11  ;;  %v2600_v62 = vadd.f32 %v10031_v26, %v2489_v0  ;;  %v10152_v21 = vadd.f32 %v10033_v27, %v2366_v6 }
 0x576   :  { %v10155_v22 = vadd.f32 %v10035_v28, %v2491_v7  ;;  %v2370_v17 = vpop.f32.mrb[24].mxu0  ;;  %v2495_v23 = vpop.f32.mrb[24].mxu1  ;;  %7883 = vmatprep.subr.bf16.mxu0 %v10145_v18  ;;  %7865 = vmatpush1.bf16.msra.mxu1 %v10091_v39  ;;  %vm2639_vm12 = vcmp.ge.f32.partialorder %v2598_v20, 0.0  ;;  %v2680_v24 = vmul.f32 %v10038_v32, %v2598_v20  ;;  %v2679_v34 = vmul.f32 %v10038_v32, %v10126_v55 }
 0x577   :  { %v2602_v29 = vadd.f32 %v10029_v25, %v2370_v17  ;;  %v2604_v30 = vadd.f32 %v10031_v26, %v2495_v23  ;;  %v2372_v31 = vpop.f32.mrb[25].mxu0  ;;  %v2497_v33 = vpop.f32.mrb[25].mxu1  ;;  %7885 = vmatpush1.bf16.msra.mxu0 %v10093_v40  ;;  %vm2641_vm13 = vcmp.ge.f32.partialorder %v2600_v62, 0.0  ;;  %v2682_v37 = vmul.f32 %v10038_v32, %v2600_v62 }
 0x578   :  { %v2713_v38 = vsel %vm2632_vm6, %v10102_v42, %v2673_v47  ;;  %v2720_v3 = vsel %vm2639_vm12, %v2598_v20, %v2680_v24  ;;  %vm2640_vm14 = vcmp.ge.f32.partialorder %v10152_v21, 0.0  ;;  %v2681_v41 = vmul.f32 %v10038_v32, %v10152_v21 }
 0x579   :  { %v10174_v5 = vmul.f32 %v10038_v32, %v10155_v22  ;;  %vm2643_vm15 = vcmp.ge.f32.partialorder %v2602_v29, 0.0  ;;  %v2722_v43 = vsel %vm2641_vm13, %v2600_v62, %v2682_v37  ;;  %vm2642_vm2 = vcmp.ge.f32.partialorder %v10155_v22, 0.0 }
 0x57a   :  { %v2684_v44 = vmul.f32 %v10038_v32, %v2602_v29  ;;  %vm2645_vm3 = vcmp.ge.f32.partialorder %v2604_v30, 0.0  ;;  %v2686_v13 = vmul.f32 %v10038_v32, %v2604_v30  ;;  %v2376_v42 = vpop.f32.mrb[26].mxu0  ;;  %v2501_v16 = vpop.f32.mrb[26].mxu1  ;;  %v2603_v45 = vadd.f32 %v10033_v27, %v2372_v31 }
 0x57b   :  { %v2605_v46 = vadd.f32 %v10035_v28, %v2497_v33  ;;  %v2717_v47 = vsel %vm2636_vm10, %v2595_v54, %v2677_v2  ;;  %v2715_v48 = vsel %vm2634_vm7, %v10105_v9, %v10120_v50  ;;  %v2378_v49 = vpop.f32.mrb[27].mxu0  ;;  %v2503_v51 = vpop.f32.mrb[27].mxu1  ;;  %v2719_v57 = vsel %vm2638_vm11, %v10126_v55, %v2679_v34 }
 0x57c   :  { %v2724_v52 = vsel %vm2643_vm15, %v2602_v29, %v2684_v44  ;;  %v2726_v53 = vsel %vm2645_vm3, %v2604_v30, %v2686_v13  ;;  %v10186_v56 = vpack.c.bf16 %v2717_v47, %v2713_v38  ;;  %vm2644_vm4 = vcmp.ge.f32.partialorder %v2603_v45, 0.0 }
 0x57d   :  { %v10191_v58 = vpack.c.bf16 %v2724_v52, %v2720_v3  ;;  %v10193_v61 = vpack.c.bf16 %v2726_v53, %v2722_v43  ;;  %v2685_v54 = vmul.f32 %v10038_v32, %v2603_v45  ;;  %vm2646_vm5 = vcmp.ge.f32.partialorder %v2605_v46, 0.0  ;;  %v2947_v52 = vld [vmem:[#allocation10 + $0x28] sm:$0xff] }
 0x57e   :  { %v2687_v9 = vmul.f32 %v10038_v32, %v2605_v46  ;;  %7867 = vmatprep.subr.bf16.mxu1 %v10186_v56  ;;  %v10198_v50 = vpack.c.bf16 %v2719_v57, %v2715_v48  ;;  %v2606_v0 = vadd.f32 %v10029_v25, %v2376_v42  ;;  %v2382_v1 = vpop.f32.mrb[28].mxu0  ;;  %v2507_v2 = vpop.f32.mrb[28].mxu1  ;;  %v2608_v55 = vadd.f32 %v10031_v26, %v2501_v16  ;;  %v6833_v57 = vld [vmem:[%s12685_s6 + $0x330] sm:$0xff] }
 0x57f   :  { %7869 = vmatpush1.bf16.msra.mxu1 %v10141_v14  ;;  %v2607_v4 = vadd.f32 %v10033_v27, %v2378_v49  ;;  %v2609_v6 = vadd.f32 %v10035_v28, %v2503_v51  ;;  %v2610_v7 = vadd.f32 %v10029_v25, %v2382_v1  ;;  %v2384_v8 = vpop.f32.mrb[29].mxu0  ;;  %v2509_v10 = vpop.f32.mrb[29].mxu1  ;;  %v2612_v20 = vadd.f32 %v10031_v26, %v2507_v2  ;;  %v3182_v49 = vld [vmem:[%s12685_s6 + $0x28] sm:$0xff]  ;;  %v3184_v51 = vld [vmem:[%s12685_s6 + $0x38] sm:$0xff] }
 0x580   :  { %7887 = vmatprep.subr.bf16.mxu0 %v10198_v50  ;;  %vm2647_vm6 = vcmp.ge.f32.partialorder %v2606_v0, 0.0  ;;  %v2688_v12 = vmul.f32 %v10038_v32, %v2606_v0  ;;  %v2611_v62 = vadd.f32 %v10033_v27, %v2384_v8  ;;  %vm2649_vm7 = vcmp.ge.f32.partialorder %v2608_v55, 0.0  ;;  %v3188_v1 = vld [vmem:[%s12685_s6 + $0x58] sm:$0xff]  ;;  %v2948_v2 = vld [vmem:[#allocation10 + $0x30] sm:$0xff]  ;;  %v6837_v8 = vld [vmem:[%s12685_s6 + $0x350] sm:$0xff] }
 0x581   :  { %7889 = vmatpush1.bf16.msra.mxu0 %v10143_v15  ;;  %v2690_v17 = vmul.f32 %v10038_v32, %v2608_v55  ;;  %vm2648_vm8 = vcmp.ge.f32.partialorder %v2607_v4, 0.0  ;;  %v2689_v23 = vmul.f32 %v10038_v32, %v2607_v4  ;;  %vm2650_vm9 = vcmp.ge.f32.partialorder %v2609_v6, 0.0 }
 0x582   :  { %v2728_v25 = vsel %vm2647_vm6, %v2606_v0, %v2688_v12  ;;  %v2691_v24 = vmul.f32 %v10038_v32, %v2609_v6  ;;  %vm2651_vm10 = vcmp.ge.f32.partialorder %v2610_v7, 0.0  ;;  %v2692_v30 = vmul.f32 %v10038_v32, %v2610_v7  ;;  %v3186_v0 = vld [vmem:[%s12685_s6 + $0x48] sm:$0xff] }
 0x583   :  { %v2730_v29 = vsel %vm2649_vm7, %v2608_v55, %v2690_v17  ;;  %vm2653_vm11 = vcmp.ge.f32.partialorder %v2612_v20, 0.0  ;;  %v2694_v26 = vmul.f32 %v10038_v32, %v2612_v20  ;;  %vm2652_vm12 = vcmp.ge.f32.partialorder %v2611_v62, 0.0  ;;  %v3187_v17 = vld [vmem:[%s12685_s6 + $0x50] sm:$0xff] }
 0x584   :  { %v2693_v27 = vmul.f32 %v10038_v32, %v2611_v62  ;;  %v2613_v31 = vadd.f32 %v10035_v28, %v2509_v10  ;;  %v2721_v33 = vsel %vm2640_vm14, %v10152_v21, %v2681_v41  ;;  %v2732_v34 = vsel %vm2651_vm10, %v2610_v7, %v2692_v30  ;;  %v6835_v7 = vld [vmem:[%s12685_s6 + $0x340] sm:$0xff]  ;;  %v6840_v10 = vld [vmem:[%s12685_s6 + $0x368] sm:$0xff] }
 0x585   :  { %v2734_v37 = vsel %vm2653_vm11, %v2612_v20, %v2694_v26  ;;  %v2725_v38 = vsel %vm2644_vm4, %v2603_v45, %v2685_v54  ;;  %v2723_v3 = vsel %vm2642_vm2, %v10155_v22, %v10174_v5  ;;  %v10226_v43 = vpack.c.bf16 %v2732_v34, %v2728_v25  ;;  %v2737_v5 = vld [vmem:[#allocation10 + $0x8] sm:$0xff] }
 0x586   :  { %v10228_v44 = vpack.c.bf16 %v2734_v37, %v2730_v29  ;;  %vm2654_vm13 = vcmp.ge.f32.partialorder %v2613_v31, 0.0  ;;  %v2695_v28 = vmul.f32 %v10038_v32, %v2613_v31  ;;  %v7870_v13 = vpack.c.bf16 %v2725_v38, %v2721_v33  ;;  %v2736_v32 = vld [vmem:[#allocation10] sm:$0xff]  ;;  %v6844_v33 = vld [vmem:[%s12685_s6 + $0x388] sm:$0xff]  ;;  %v3189_v38 = vld [vmem:[%s12685_s6 + $0x60] sm:$0xff] }
 0x587   :  { %v2727_v42 = vsel %vm2646_vm5, %v2605_v46, %v2687_v9  ;;  %v2729_v21 = vsel %vm2648_vm8, %v2607_v4, %v2689_v23  ;;  %v2733_v41 = vsel %vm2652_vm12, %v2611_v62, %v2693_v27  ;;  %v2731_v47 = vsel %vm2650_vm9, %v2609_v6, %v2691_v24  ;;  %v6838_v54 = vld [vmem:[%s12685_s6 + $0x358] sm:$0xff]  ;;  %v3181_v9 = vld [vmem:[%s12685_s6 + $0x20] sm:$0xff]  ;;  %v3190_v23 = vld [vmem:[%s12685_s6 + $0x68] sm:$0xff] }
 0x588   :  { %v7890_v16 = vpack.c.bf16 %v2727_v42, %v2723_v3  ;;  %v7874_v45 = vpack.c.bf16 %v2733_v41, %v2729_v21  ;;  %v2735_v48 = vsel %vm2654_vm13, %v2613_v31, %v2695_v28  ;;  %7871 = vmatprep.subr.bf16.mxu1 %v7870_v13  ;;  %v7946_v12 = vpack.c.bf16 %v3188_v1, %v3186_v0  ;;  %v6842_v20 = vld [vmem:[%s12685_s6 + $0x378] sm:$0xff]  ;;  %v3185_v62 = vld [vmem:[%s12685_s6 + $0x40] sm:$0xff]  ;;  %v2949_v24 = vld [vmem:[#allocation10 + $0x38] sm:$0xff] }
 0x589   :  { %v7894_v22 = vpack.c.bf16 %v2735_v48, %v2731_v47  ;;  %7873 = vmatpush1.bf16.msra.mxu1 %v10191_v58  ;;  %v3192_v25 = vld [vmem:[%s12685_s6 + $0x78] sm:$0xff]  ;;  %v8044_v29 = vpack.c.bf16 %v6837_v8, %v6835_v7  ;;  %v8046_v30 = vpack.c.bf16 %v6842_v20, %v6840_v10  ;;  %v7948_v26 = vpack.c.bf16 %v3187_v17, %v3185_v62  ;;  %v6839_v27 = vld [vmem:[%s12685_s6 + $0x360] sm:$0xff]  ;;  %v6841_v31 = vld [vmem:[%s12685_s6 + $0x370] sm:$0xff] }
 0x58a   :  { %7891 = vmatprep.subr.bf16.mxu0 %v7890_v16  ;;  %7875 = vmatprep.subr.bf16.mxu1 %v7874_v45  ;;  %v7950_v34 = vpack.c.bf16 %v3192_v25, %v3190_v23  ;;  %v6846_v37 = vld [vmem:[%s12685_s6 + $0x398] sm:$0xff]  ;;  %v3191_v3 = vld [vmem:[%s12685_s6 + $0x70] sm:$0xff]  ;;  %v6843_v41 = vld [vmem:[%s12685_s6 + $0x380] sm:$0xff]  ;;  %vm3277_vm14 = vcmask 130048   ;;  %vm4098_vm11 = vcmask 588800   ;;  %vm5094_vm12 = vcmask 811008  }
 0x58b   :  { %7893 = vmatpush1.bf16.msra.mxu0 %v10193_v61  ;;  %v2950_v28 = vld [vmem:[#allocation10 + $0x40] sm:$0xff]  ;;  %v8050_v42 = vpack.c.bf16 %v6846_v37, %v6844_v33  ;;  %v7952_v21 = vpack.c.bf16 %v3191_v3, %v3189_v38  ;;  %v3201_v0 = vld [vmem:[%s12685_s6 + $0xc0] sm:$0xff]  ;;  %v3210_v25 = vld [vmem:[%s12685_s6 + $0x108] sm:$0xff] }
 0x58c   :  { %7895 = vmatprep.subr.bf16.mxu0 %v7894_v22  ;;  %v6850_v48 = vld [vmem:[%s12685_s6 + $0x3b8] sm:$0xff]  ;;  %v3203_v1 = vld [vmem:[%s12685_s6 + $0xd0] sm:$0xff]  ;;  %v6855_v8 = vld [vmem:[%s12685_s6 + $0x3e0] sm:$0xff] }
 0x58d   :  { %7877 = vmatpush1.bf16.msra.mxu1 %v10226_v43  ;;  %v7964_v7 = vpack.c.bf16 %v3203_v1, %v3201_v0  ;;  %v6857_v10 = vld [vmem:[%s12685_s6 + $0x3f0] sm:$0xff]  ;;  %v6862_v62 = vld [vmem:[%s12685_s6 + $0x418] sm:$0xff]  ;;  %v3205_v17 = vld [vmem:[%s12685_s6 + $0xe0] sm:$0xff] }
 0x58e   :  { %7899 = vmatprep.subr.bf16.mxu1 %v10087_v35  ;;  %v2738_v35 = vld [vmem:[#allocation10 + $0x10] sm:$0xff]  ;;  %v3207_v23 = vld [vmem:[%s12685_s6 + $0xf0] sm:$0xff]  ;;  %v6866_v37 = vld [vmem:[%s12685_s6 + $0x438] sm:$0xff] }
 0x58f   :  { %7897 = vmatpush1.bf16.msra.mxu0 %v10228_v44  ;;  %v6864_v33 = vld [vmem:[%s12685_s6 + $0x428] sm:$0xff]  ;;  %v3209_v38 = vld [vmem:[%s12685_s6 + $0x100] sm:$0xff]  ;;  %v3211_v3 = vld [vmem:[%s12685_s6 + $0x110] sm:$0xff] }
 0x590   :  { %7919 = vmatprep.subr.bf16.mxu0 %v10089_v36  ;;  %6806 = vmatmul.mubr.msk.f32.vlgmr.msra.gmra.mrb[40].mxu1 %vm157_vm0, %v2736_v32  ;;  %v3180_v36 = vld [vmem:[%s12685_s6 + $0x18] sm:$0xff]  ;;  %v3223_v0 = vld [vmem:[%s12685_s6 + $0x170] sm:$0xff] }
 0x591   :  { %7901 = vmatpush1.bf16.msra.mxu1 %v10059_v59  ;;  %2826 = vmatprep.mubr.f32.mxu1 %v9039_v63  ;;  %v2739_v59 = vld [vmem:[#allocation10 + $0x18] sm:$0xff] }
 0x592   :  { %6811 = vmatmul.mubr.msk.f32.vlgmr.msra.gmra.mrb[50].mxu0 %vm157_vm0, %v2736_v32  ;;  %7903 = vmatprep.subr.bf16.mxu1 %v10136_v11  ;;  %v2740_v11 = vld [vmem:[#allocation10 + $0x20] sm:$0xff] }
 0x593   :  { %7921 = vmatpush1.bf16.msra.mxu0 %v10061_v60  ;;  %2921 = vmatprep.mubr.f32.mxu0 %v9039_v63  ;;  %v3178_v60 = vld [vmem:[%s12685_s6 + $0x8] sm:$0xff]  ;;  %v3195_v32 = vld [vmem:[%s12685_s6 + $0x90] sm:$0xff] }
 0x594   :  { %7923 = vmatprep.subr.bf16.mxu0 %v10145_v18  ;;  %6807 = vmatmul.mubr.msk.f32.gmra.mrb[42].mxu1 %vm157_vm0, %v2737_v5  ;;  %v3179_v18 = vld [vmem:[%s12685_s6 + $0x10] sm:$0xff] }
 0x595   :  { %7905 = vmatpush1.bf16.msra.mxu1 %v10091_v39  ;;  %2832 = vmatprep.mubr.f32.mxu1 %v9039_v63  ;;  %v6832_v39 = vld [vmem:[%s12685_s6 + $0x328] sm:$0xff] }
 0x596   :  { %7907 = vmatprep.subr.bf16.mxu1 %v10186_v56  ;;  %6812 = vmatmul.mubr.msk.f32.gmra.mrb[52].mxu0 %vm157_vm0, %v2737_v5  ;;  %v6831_v56 = vld [vmem:[%s12685_s6 + $0x320] sm:$0xff]  ;;  %v3198_v5 = vld [vmem:[%s12685_s6 + $0xa8] sm:$0xff] }
 0x597   :  { %7925 = vmatpush1.bf16.msra.mxu0 %v10093_v40  ;;  %2927 = vmatprep.mubr.f32.mxu0 %v9039_v63  ;;  %v6834_v40 = vld [vmem:[%s12685_s6 + $0x338] sm:$0xff]  ;;  %v8040_v55 = vpack.c.bf16 %v6833_v57, %v6831_v56 }
 0x598   :  { %7927 = vmatprep.subr.bf16.mxu0 %v10198_v50  ;;  %6808 = vmatmul.mubr.msk.f32.gmra.mrb[44].mxu1 %vm157_vm0, %v2738_v35  ;;  %v8038_v46 = vpack.c.bf16 %v6834_v40, %v6832_v39  ;;  %v3183_v50 = vld [vmem:[%s12685_s6 + $0x30] sm:$0xff]  ;;  %v6847_v40 = vld [vmem:[%s12685_s6 + $0x3a0] sm:$0xff] }
 0x599   :  { %7909 = vmatpush1.bf16.msra.mxu1 %v10141_v14  ;;  %2838 = vmatprep.mubr.f32.mxu1 %v9039_v63  ;;  %v7938_v14 = vpack.c.bf16 %v3180_v36, %v3178_v60  ;;  %v7944_v6 = vpack.c.bf16 %v3183_v50, %v3181_v9  ;;  %v6858_v50 = vld [vmem:[%s12685_s6 + $0x3f8] sm:$0xff] }
 0x59a   :  { %7911 = vmatprep.subr.bf16.mxu1 %v7870_v13  ;;  %6813 = vmatmul.mubr.msk.f32.gmra.mrb[54].mxu0 %vm157_vm0, %v2738_v35  ;;  %v8048_v13 = vpack.c.bf16 %v6841_v31, %v6839_v27  ;;  %v3200_v35 = vld [vmem:[%s12685_s6 + $0xb8] sm:$0xff]  ;;  %v6859_v27 = vld [vmem:[%s12685_s6 + $0x400] sm:$0xff]  ;;  %v6861_v31 = vld [vmem:[%s12685_s6 + $0x410] sm:$0xff] }
 0x59b   :  { %7929 = vmatpush1.bf16.msra.mxu0 %v10143_v15  ;;  %2933 = vmatprep.mubr.f32.mxu0 %v9039_v63  ;;  %v3177_v15 = vld [vmem:[%s12685_s6] sm:$0xff] }
 0x59c   :  { %7931 = vmatprep.subr.bf16.mxu0 %v7890_v16  ;;  %6809 = vmatmul.mubr.msk.f32.gmra.mrb[46].mxu1 %vm157_vm0, %v2739_v59  ;;  %v7940_v53 = vpack.c.bf16 %v3179_v18, %v3177_v15  ;;  %v6845_v16 = vld [vmem:[%s12685_s6 + $0x390] sm:$0xff]  ;;  %v7958_v15 = vpack.c.bf16 %v3200_v35, %v3198_v5  ;;  %v6854_v18 = vld [vmem:[%s12685_s6 + $0x3d8] sm:$0xff] }
 0x59d   :  { %7913 = vmatpush1.bf16.msra.mxu1 %v10191_v58  ;;  %2844 = vmatprep.mubr.f32.mxu1 %v9039_v63  ;;  %v7942_v58 = vpack.c.bf16 %v3184_v51, %v3182_v49  ;;  %v8052_v60 = vpack.c.bf16 %v6845_v16, %v6843_v41  ;;  %v3199_v49 = vld [vmem:[%s12685_s6 + $0xb0] sm:$0xff]  ;;  %v3202_v51 = vld [vmem:[%s12685_s6 + $0xc8] sm:$0xff] }
 0x59e   :  { %7915 = vmatprep.subr.bf16.mxu1 %v7874_v45  ;;  %6814 = vmatmul.mubr.msk.f32.gmra.mrb[56].mxu0 %vm157_vm0, %v2739_v59  ;;  %v6848_v45 = vld [vmem:[%s12685_s6 + $0x3a8] sm:$0xff]  ;;  %v2951_v59 = vld [vmem:[#allocation10 + $0x48] sm:$0xff]  ;;  %v6865_v41 = vld [vmem:[%s12685_s6 + $0x430] sm:$0xff] }
 0x59f   :  { %7933 = vmatpush1.bf16.msra.mxu0 %v10193_v61  ;;  %2939 = vmatprep.mubr.f32.mxu0 %v9039_v63  ;;  %v6836_v61 = vld [vmem:[%s12685_s6 + $0x348] sm:$0xff]  ;;  %v8054_v36 = vpack.c.bf16 %v6850_v48, %v6848_v45  ;;  %v3213_v48 = vld [vmem:[%s12685_s6 + $0x120] sm:$0xff] }
 0x5a0   :  { %7935 = vmatprep.subr.bf16.mxu0 %v7894_v22  ;;  %6810 = vmatmul.mubr.msk.f32.gmra.mrb[48].mxu1 %vm157_vm0, %v2740_v11  ;;  %v8042_v4 = vpack.c.bf16 %v6838_v54, %v6836_v61  ;;  %v3193_v22 = vld [vmem:[%s12685_s6 + $0x80] sm:$0xff]  ;;  %v6853_v61 = vld [vmem:[%s12685_s6 + $0x3d0] sm:$0xff]  ;;  %v6856_v54 = vld [vmem:[%s12685_s6 + $0x3e8] sm:$0xff] }
 0x5a1   :  { %7917 = vmatpush1.bf16.msra.mxu1 %v10226_v43  ;;  %3031 = vmatprep.mubr.f32.mxu1 %v9039_v63  ;;  %v3194_v43 = vld [vmem:[%s12685_s6 + $0x88] sm:$0xff]  ;;  %v7956_v39 = vpack.c.bf16 %v3195_v32, %v3193_v22  ;;  %v3215_v22 = vld [vmem:[%s12685_s6 + $0x130] sm:$0xff] }
 0x5a2   :  { %7939 = vmatprep.subr.bf16.mxu1 %v7938_v14  ;;  %6815 = vmatmul.mubr.msk.f32.gmra.mrb[58].mxu0 %vm157_vm0, %v2740_v11  ;;  %v6849_v11 = vld [vmem:[%s12685_s6 + $0x3b0] sm:$0xff]  ;;  %v6852_v14 = vld [vmem:[%s12685_s6 + $0x3c8] sm:$0xff]  ;;  %v7976_v35 = vpack.c.bf16 %v3215_v22, %v3213_v48 }
 0x5a3   :  { %7937 = vmatpush1.bf16.msra.mxu0 %v10228_v44  ;;  %3126 = vmatprep.mubr.f32.mxu0 %v9039_v63  ;;  %v3196_v44 = vld [vmem:[%s12685_s6 + $0x98] sm:$0xff]  ;;  %v8058_v56 = vpack.c.bf16 %v6854_v18, %v6852_v14  ;;  %v6868_v16 = vld [vmem:[%s12685_s6 + $0x448] sm:$0xff]  ;;  %v3217_v18 = vld [vmem:[%s12685_s6 + $0x140] sm:$0xff] }
 0x5a4   :  { %8039 = vmatprep.subr.bf16.mxu0 %v8038_v46  ;;  %6816 = vmatmul.mubr.msk.f32.vlgmr.msra.gmra.mrb[50].mxu1 %vm157_vm0, %v2947_v52  ;;  %v7954_v47 = vpack.c.bf16 %v3196_v44, %v3194_v43  ;;  %v3197_v46 = vld [vmem:[%s12685_s6 + $0xa0] sm:$0xff]  ;;  %v3214_v43 = vld [vmem:[%s12685_s6 + $0x128] sm:$0xff]  ;;  %v3216_v44 = vld [vmem:[%s12685_s6 + $0x138] sm:$0xff] }
 0x5a5   :  { %3037 = vmatprep.mubr.f32.mxu1 %v9039_v63  ;;  %7941 = vmatpush1.bf16.msra.mxu1 %v7940_v53  ;;  %v8056_v53 = vpack.c.bf16 %v6849_v11, %v6847_v40  ;;  %v7960_v57 = vpack.c.bf16 %v3199_v49, %v3197_v46  ;;  %v7974_v45 = vpack.c.bf16 %v3216_v44, %v3214_v43  ;;  %v3220_v40 = vld [vmem:[%s12685_s6 + $0x158] sm:$0xff]  ;;  %v6872_v11 = vld [vmem:[%s12685_s6 + $0x468] sm:$0xff]  ;;  %v3219_v46 = vld [vmem:[%s12685_s6 + $0x150] sm:$0xff] }
 0x5a6   :  { %7943 = vmatprep.subr.bf16.mxu1 %v7942_v58  ;;  %6821 = vmatmul.mubr.msk.f32.vlgmr.msra.gmra.mrb[60].mxu0 %vm157_vm0, %v2947_v52  ;;  %v3204_v52 = vld [vmem:[%s12685_s6 + $0xd8] sm:$0xff]  ;;  %v6851_v58 = vld [vmem:[%s12685_s6 + $0x3c0] sm:$0xff]  ;;  %v3235_v48 = vld [vmem:[%s12685_s6 + $0x1d0] sm:$0xff] }
 0x5a7   :  { %3132 = vmatprep.mubr.f32.mxu0 %v9039_v63  ;;  %8041 = vmatpush1.bf16.msra.mxu0 %v8040_v55  ;;  %v7962_v9 = vpack.c.bf16 %v3204_v52, %v3202_v51  ;;  %v3208_v55 = vld [vmem:[%s12685_s6 + $0xf8] sm:$0xff]  ;;  %v7980_v51 = vpack.c.bf16 %v3219_v46, %v3217_v18  ;;  %v6871_v52 = vld [vmem:[%s12685_s6 + $0x460] sm:$0xff] }
 0x5a8   :  { %6817 = vmatmul.mubr.msk.f32.gmra.mrb[52].mxu1 %vm157_vm0, %v2948_v2  ;;  %8043 = vmatprep.subr.bf16.mxu0 %v8042_v4  ;;  %v8060_v4 = vpack.c.bf16 %v6853_v61, %v6851_v58  ;;  %v3224_v58 = vld [vmem:[%s12685_s6 + $0x178] sm:$0xff]  ;;  %v6876_v61 = vld [vmem:[%s12685_s6 + $0x488] sm:$0xff]  ;;  %v6883_v44 = vld [vmem:[%s12685_s6 + $0x4c0] sm:$0xff] }
 0x5a9   :  { %3043 = vmatprep.mubr.f32.mxu1 %v9039_v63  ;;  %7945 = vmatpush1.bf16.msra.mxu1 %v7944_v6  ;;  %v8062_v6 = vpack.c.bf16 %v6858_v50, %v6856_v54  ;;  %v3221_v50 = vld [vmem:[%s12685_s6 + $0x160] sm:$0xff] }
 0x5aa   :  { %6822 = vmatmul.mubr.msk.f32.gmra.mrb[62].mxu0 %vm157_vm0, %v2948_v2  ;;  %7947 = vmatprep.subr.bf16.mxu1 %v7946_v12  ;;  %v3206_v2 = vld [vmem:[%s12685_s6 + $0xe8] sm:$0xff] }
 0x5ab   :  { %3138 = vmatprep.mubr.f32.mxu0 %v9039_v63  ;;  %8045 = vmatpush1.bf16.msra.mxu0 %v8044_v29  ;;  %v6860_v12 = vld [vmem:[%s12685_s6 + $0x408] sm:$0xff]  ;;  %v7966_v20 = vpack.c.bf16 %v3208_v55, %v3206_v2  ;;  %v8064_v29 = vpack.c.bf16 %v6857_v10, %v6855_v8  ;;  %v7984_v2 = vpack.c.bf16 %v3223_v0, %v3221_v50  ;;  %v6875_v55 = vld [vmem:[%s12685_s6 + $0x480] sm:$0xff]  ;;  %v3228_v8 = vld [vmem:[%s12685_s6 + $0x198] sm:$0xff] }
 0x5ac   :  { %6818 = vmatmul.mubr.msk.f32.gmra.mrb[54].mxu1 %vm157_vm0, %v2949_v24  ;;  %8047 = vmatprep.subr.bf16.mxu0 %v8046_v30  ;;  %v8066_v30 = vpack.c.bf16 %v6862_v62, %v6860_v12  ;;  %v6880_v10 = vld [vmem:[%s12685_s6 + $0x4a8] sm:$0xff]  ;;  %v3225_v62 = vld [vmem:[%s12685_s6 + $0x180] sm:$0xff] }
 0x5ad   :  { %3049 = vmatprep.mubr.f32.mxu1 %v9039_v63  ;;  %7949 = vmatpush1.bf16.msra.mxu1 %v7948_v26  ;;  %v7968_v26 = vpack.c.bf16 %v3207_v23, %v3205_v17  ;;  %v3227_v17 = vld [vmem:[%s12685_s6 + $0x190] sm:$0xff] }
 0x5ae   :  { %6823 = vmatmul.mubr.msk.f32.gmra.mrb[64].mxu0 %vm157_vm0, %v2949_v24  ;;  %7951 = vmatprep.subr.bf16.mxu1 %v7950_v34  ;;  %v3212_v24 = vld [vmem:[%s12685_s6 + $0x118] sm:$0xff] }
 0x5af   :  { %3144 = vmatprep.mubr.f32.mxu0 %v9039_v63  ;;  %8049 = vmatpush1.bf16.msra.mxu0 %v8048_v13  ;;  %v7970_v34 = vpack.c.bf16 %v3212_v24, %v3210_v25  ;;  %v8070_v13 = vpack.c.bf16 %v6866_v37, %v6864_v33  ;;  %v7988_v25 = vpack.c.bf16 %v3227_v17, %v3225_v62  ;;  %v6879_v24 = vld [vmem:[%s12685_s6 + $0x4a0] sm:$0xff] }
 0x5b0   :  { %6819 = vmatmul.mubr.msk.f32.gmra.mrb[56].mxu1 %vm157_vm0, %v2950_v28  ;;  %8051 = vmatprep.subr.bf16.mxu0 %v8050_v42  ;;  %v7972_v42 = vpack.c.bf16 %v3211_v3, %v3209_v38  ;;  %v3229_v37 = vld [vmem:[%s12685_s6 + $0x1a0] sm:$0xff]  ;;  %v3231_v38 = vld [vmem:[%s12685_s6 + $0x1b0] sm:$0xff] }
 0x5b1   :  { %3055 = vmatprep.mubr.f32.mxu1 %v9039_v63  ;;  %7953 = vmatpush1.bf16.msra.mxu1 %v7952_v21  ;;  %v6863_v21 = vld [vmem:[%s12685_s6 + $0x420] sm:$0xff]  ;;  %v7992_v43 = vpack.c.bf16 %v3231_v38, %v3229_v37  ;;  %v3248_v37 = vld [vmem:[%s12685_s6 + $0x238] sm:$0xff]  ;;  %v6900_v38 = vld [vmem:[%s12685_s6 + $0x548] sm:$0xff] }
 0x5b2   :  { %6824 = vmatmul.mubr.msk.f32.gmra.mrb[66].mxu0 %vm157_vm0, %v2950_v28  ;;  %7955 = vmatprep.subr.bf16.mxu1 %v7954_v47  ;;  %v8068_v28 = vpack.c.bf16 %v6861_v31, %v6859_v27  ;;  %v6870_v47 = vld [vmem:[%s12685_s6 + $0x458] sm:$0xff]  ;;  %v8072_v32 = vpack.c.bf16 %v6865_v41, %v6863_v21  ;;  %v6884_v31 = vld [vmem:[%s12685_s6 + $0x4c8] sm:$0xff] }
 0x5b3   :  { %3150 = vmatprep.mubr.f32.mxu0 %v9039_v63  ;;  %8053 = vmatpush1.bf16.msra.mxu0 %v8052_v60  ;;  %v8074_v5 = vpack.c.bf16 %v6870_v47, %v6868_v16  ;;  %v6869_v60 = vld [vmem:[%s12685_s6 + $0x450] sm:$0xff]  ;;  %v3232_v27 = vld [vmem:[%s12685_s6 + $0x1b8] sm:$0xff]  ;;  %v6888_v41 = vld [vmem:[%s12685_s6 + $0x4e8] sm:$0xff] }
 0x5b4   :  { %6820 = vmatmul.mubr.msk.f32.gmra.mrb[58].mxu1 %vm157_vm0, %v2951_v59  ;;  %8055 = vmatprep.subr.bf16.mxu0 %v8054_v36  ;;  %v3236_v21 = vld [vmem:[%s12685_s6 + $0x1d8] sm:$0xff]  ;;  %v3233_v47 = vld [vmem:[%s12685_s6 + $0x1c0] sm:$0xff] }
 0x5b5   :  { %7957 = vmatpush1.bf16.msra.mxu1 %v7956_v39  ;;  %v3218_v39 = vld [vmem:[%s12685_s6 + $0x148] sm:$0xff] }
 0x5b6   :  { %6825 = vmatmul.mubr.msk.f32.gmra.mrb[68].mxu0 %vm157_vm0, %v2951_v59  ;;  %7959 = vmatprep.subr.bf16.mxu1 %v7958_v15  ;;  %v6867_v59 = vld [vmem:[%s12685_s6 + $0x440] sm:$0xff]  ;;  %v7978_v14 = vpack.c.bf16 %v3220_v40, %v3218_v39  ;;  %v6874_v15 = vld [vmem:[%s12685_s6 + $0x478] sm:$0xff]  ;;  %v6892_v39 = vld [vmem:[%s12685_s6 + $0x508] sm:$0xff] }
 0x5b7   :  { %8057 = vmatpush1.bf16.msra.mxu0 %v8056_v53  ;;  %v8076_v36 = vpack.c.bf16 %v6869_v60, %v6867_v59  ;;  %v8078_v49 = vpack.c.bf16 %v6874_v15, %v6872_v11  ;;  %v6873_v53 = vld [vmem:[%s12685_s6 + $0x470] sm:$0xff]  ;;  %v3238_v60 = vld [vmem:[%s12685_s6 + $0x1e8] sm:$0xff]  ;;  %v6894_v11 = vld [vmem:[%s12685_s6 + $0x518] sm:$0xff] }
 0x5b8   :  { %8059 = vmatprep.subr.bf16.mxu0 %v8058_v56  ;;  %v8080_v56 = vpack.c.bf16 %v6873_v53, %v6871_v52  ;;  %v3239_v15 = vld [vmem:[%s12685_s6 + $0x1f0] sm:$0xff]  ;;  %v8098_v18 = vpack.c.bf16 %v6894_v11, %v6892_v39  ;;  %v3242_v53 = vld [vmem:[%s12685_s6 + $0x208] sm:$0xff] }
 0x5b9   :  { %7961 = vmatpush1.bf16.msra.mxu1 %v7960_v57  ;;  %v3222_v57 = vld [vmem:[%s12685_s6 + $0x168] sm:$0xff] }
 0x5ba   :  { %7963 = vmatprep.subr.bf16.mxu1 %v7962_v9  ;;  %v7982_v54 = vpack.c.bf16 %v3224_v58, %v3222_v57  ;;  %v6878_v9 = vld [vmem:[%s12685_s6 + $0x498] sm:$0xff]  ;;  %v6896_v57 = vld [vmem:[%s12685_s6 + $0x528] sm:$0xff] }
 0x5bb   :  { %8061 = vmatpush1.bf16.msra.mxu0 %v8060_v4  ;;  %v8082_v1 = vpack.c.bf16 %v6878_v9, %v6876_v61  ;;  %v6877_v4 = vld [vmem:[%s12685_s6 + $0x490] sm:$0xff]  ;;  %v6898_v61 = vld [vmem:[%s12685_s6 + $0x538] sm:$0xff] }
 0x5bc   :  { %8063 = vmatprep.subr.bf16.mxu0 %v8062_v6  ;;  %v8084_v6 = vpack.c.bf16 %v6877_v4, %v6875_v55 }
 0x5bd   :  { %7965 = vmatpush1.bf16.msra.mxu1 %v7964_v7  ;;  %v3226_v7 = vld [vmem:[%s12685_s6 + $0x188] sm:$0xff] }
 0x5be   :  { %7967 = vmatprep.subr.bf16.mxu1 %v7966_v20  ;;  %v7986_v12 = vpack.c.bf16 %v3228_v8, %v3226_v7  ;;  %v6882_v20 = vld [vmem:[%s12685_s6 + $0x4b8] sm:$0xff] }
 0x5bf   :  { %8065 = vmatpush1.bf16.msra.mxu0 %v8064_v29  ;;  %v8086_v23 = vpack.c.bf16 %v6882_v20, %v6880_v10  ;;  %v6881_v29 = vld [vmem:[%s12685_s6 + $0x4b0] sm:$0xff] }
 0x5c0   :  { %8067 = vmatprep.subr.bf16.mxu0 %v8066_v30  ;;  %v8088_v30 = vpack.c.bf16 %v6881_v29, %v6879_v24  ;;  %v3241_v29 = vld [vmem:[%s12685_s6 + $0x200] sm:$0xff] }
 0x5c1   :  { %7969 = vmatpush1.bf16.msra.mxu1 %v7968_v26  ;;  %v3230_v26 = vld [vmem:[%s12685_s6 + $0x1a8] sm:$0xff] }
 0x5c2   :  { %7971 = vmatprep.subr.bf16.mxu1 %v7970_v34  ;;  %v7990_v33 = vpack.c.bf16 %v3232_v27, %v3230_v26  ;;  %v6886_v34 = vld [vmem:[%s12685_s6 + $0x4d8] sm:$0xff]  ;;  %v6895_v26 = vld [vmem:[%s12685_s6 + $0x520] sm:$0xff]  ;;  %v6897_v27 = vld [vmem:[%s12685_s6 + $0x530] sm:$0xff] }
 0x5c3   :  { %8069 = vmatpush1.bf16.msra.mxu0 %v8068_v28  ;;  %v8090_v3 = vpack.c.bf16 %v6886_v34, %v6884_v31  ;;  %v6885_v28 = vld [vmem:[%s12685_s6 + $0x4d0] sm:$0xff]  ;;  %v3246_v31 = vld [vmem:[%s12685_s6 + $0x228] sm:$0xff] }
 0x5c4   :  { %8071 = vmatprep.subr.bf16.mxu0 %v8070_v13  ;;  %v8092_v13 = vpack.c.bf16 %v6885_v28, %v6883_v44 }
 0x5c5   :  { %7973 = vmatpush1.bf16.msra.mxu1 %v7972_v42  ;;  %v3234_v42 = vld [vmem:[%s12685_s6 + $0x1c8] sm:$0xff] }
 0x5c6   :  { %7975 = vmatprep.subr.bf16.mxu1 %v7974_v45  ;;  %v7994_v16 = vpack.c.bf16 %v3236_v21, %v3234_v42  ;;  %v6890_v45 = vld [vmem:[%s12685_s6 + $0x4f8] sm:$0xff]  ;;  %v8104_v21 = vpack.c.bf16 %v6897_v27, %v6895_v26 }
 0x5c7   :  { %8073 = vmatpush1.bf16.msra.mxu0 %v8072_v32  ;;  %v8094_v22 = vpack.c.bf16 %v6890_v45, %v6888_v41  ;;  %v7996_v32 = vpack.c.bf16 %v3235_v48, %v3233_v47  ;;  %v3245_v41 = vld [vmem:[%s12685_s6 + $0x220] sm:$0xff]  ;;  %v8006_v45 = vpack.c.bf16 %v3248_v37, %v3246_v31 }
 0x5c8   :  { %8075 = vmatprep.subr.bf16.mxu0 %v8074_v5  ;;  %v6887_v5 = vld [vmem:[%s12685_s6 + $0x4e0] sm:$0xff] }
 0x5c9   :  { %7977 = vmatpush1.bf16.msra.mxu1 %v7976_v35  ;;  %v6889_v35 = vld [vmem:[%s12685_s6 + $0x4f0] sm:$0xff]  ;;  %v6899_v48 = vld [vmem:[%s12685_s6 + $0x540] sm:$0xff] }
 0x5ca   :  { %7979 = vmatprep.subr.bf16.mxu1 %v7978_v14  ;;  %v8096_v59 = vpack.c.bf16 %v6889_v35, %v6887_v5  ;;  %v3237_v14 = vld [vmem:[%s12685_s6 + $0x1e0] sm:$0xff] }
 0x5cb   :  { %8077 = vmatpush1.bf16.msra.mxu0 %v8076_v36  ;;  %v3240_v36 = vld [vmem:[%s12685_s6 + $0x1f8] sm:$0xff]  ;;  %v8000_v46 = vpack.c.bf16 %v3239_v15, %v3237_v14 }
 0x5cc   :  { %8079 = vmatprep.subr.bf16.mxu0 %v8078_v49  ;;  %v7998_v40 = vpack.c.bf16 %v3240_v36, %v3238_v60  ;;  %v6891_v49 = vld [vmem:[%s12685_s6 + $0x500] sm:$0xff]  ;;  %v6904_v60 = vld [vmem:[%s12685_s6 + $0x568] sm:$0xff]  ;;  %v6906_v36 = vld [vmem:[%s12685_s6 + $0x578] sm:$0xff] }
 0x5cd   :  { %7981 = vmatpush1.bf16.msra.mxu1 %v7980_v51  ;;  %v6893_v51 = vld [vmem:[%s12685_s6 + $0x510] sm:$0xff] }
 0x5ce   :  { %7983 = vmatprep.subr.bf16.mxu1 %v7982_v54  ;;  %v8100_v52 = vpack.c.bf16 %v6893_v51, %v6891_v49  ;;  %v8102_v54 = vpack.c.bf16 %v6898_v61, %v6896_v57  ;;  %v3249_v51 = vld [vmem:[%s12685_s6 + $0x240] sm:$0xff]  ;;  %v3254_v61 = vld [vmem:[%s12685_s6 + $0x268] sm:$0xff] }
 0x5cf   :  { %8081 = vmatpush1.bf16.msra.mxu0 %v8080_v56  ;;  %v3244_v56 = vld [vmem:[%s12685_s6 + $0x218] sm:$0xff]  ;;  %v6903_v57 = vld [vmem:[%s12685_s6 + $0x560] sm:$0xff] }
 0x5d0   :  { %8083 = vmatprep.subr.bf16.mxu0 %v8082_v1  ;;  %v8002_v58 = vpack.c.bf16 %v3244_v56, %v3242_v53  ;;  %v8110_v56 = vpack.c.bf16 %v6906_v36, %v6904_v60 }
 0x5d1   :  { %7985 = vmatpush1.bf16.msra.mxu1 %v7984_v2 }
 0x5d2   :  { %7987 = vmatprep.subr.bf16.mxu1 %v7986_v12 }
 0x5d3   :  { %8085 = vmatpush1.bf16.msra.mxu0 %v8084_v6 }
 0x5d4   :  { %8087 = vmatprep.subr.bf16.mxu0 %v8086_v23 }
 0x5d5   :  { %7989 = vmatpush1.bf16.msra.mxu1 %v7988_v25 }
 0x5d6   :  { %7991 = vmatprep.subr.bf16.mxu1 %v7990_v33 }
 0x5d7   :  { %8089 = vmatpush1.bf16.msra.mxu0 %v8088_v30  ;;  %v3243_v30 = vld [vmem:[%s12685_s6 + $0x210] sm:$0xff] }
 0x5d8   :  { %8091 = vmatprep.subr.bf16.mxu0 %v8090_v3  ;;  %v6902_v3 = vld [vmem:[%s12685_s6 + $0x558] sm:$0xff]  ;;  %v8004_v42 = vpack.c.bf16 %v3243_v30, %v3241_v29 }
 0x5d9   :  { %7993 = vmatpush1.bf16.msra.mxu1 %v7992_v43  ;;  %v8106_v47 = vpack.c.bf16 %v6902_v3, %v6900_v38  ;;  %v3258_v3 = vld [vmem:[%s12685_s6 + $0x288] sm:$0xff] }
 0x5da   :  { %7995 = vmatprep.subr.bf16.mxu1 %v7994_v16  ;;  %v3247_v16 = vld [vmem:[%s12685_s6 + $0x230] sm:$0xff] }
 0x5db   :  { %8093 = vmatpush1.bf16.msra.mxu0 %v8092_v13 }
 0x5dc   :  { %8095 = vmatprep.subr.bf16.mxu0 %v8094_v22  ;;  %v6901_v22 = vld [vmem:[%s12685_s6 + $0x550] sm:$0xff] }
 0x5dd   :  { %7997 = vmatpush1.bf16.msra.mxu1 %v7996_v32  ;;  %v3250_v32 = vld [vmem:[%s12685_s6 + $0x248] sm:$0xff]  ;;  %v8108_v49 = vpack.c.bf16 %v6901_v22, %v6899_v48 }
 0x5de   :  { %7999 = vmatprep.subr.bf16.mxu1 %v7998_v40 }
 0x5df   :  { %8097 = vmatpush1.bf16.msra.mxu0 %v8096_v59  ;;  %v3252_v59 = vld [vmem:[%s12685_s6 + $0x258] sm:$0xff] }
 0x5e0   :  { %8099 = vmatprep.subr.bf16.mxu0 %v8098_v18  ;;  %v8010_v53 = vpack.c.bf16 %v3252_v59, %v3250_v32  ;;  %v3259_v59 = vld [vmem:[%s12685_s6 + $0x290] sm:$0xff] }
 0x5e1   :  { %8001 = vmatpush1.bf16.msra.mxu1 %v8000_v46  ;;  %v8008_v46 = vpack.c.bf16 %v3247_v16, %v3245_v41 }
 0x5e2   :  { %8003 = vmatprep.subr.bf16.mxu1 %v8002_v58  ;;  %v6905_v58 = vld [vmem:[%s12685_s6 + $0x570] sm:$0xff] }
 0x5e3   :  { %8101 = vmatpush1.bf16.msra.mxu0 %v8100_v52  ;;  %v3251_v52 = vld [vmem:[%s12685_s6 + $0x250] sm:$0xff] }
 0x5e4   :  { %8103 = vmatprep.subr.bf16.mxu0 %v8102_v54  ;;  %v8012_v31 = vpack.c.bf16 %v3251_v52, %v3249_v51  ;;  %v6916_v51 = vld [vmem:[%s12685_s6 + $0x5c8] sm:$0xff]  ;;  %v6918_v52 = vld [vmem:[%s12685_s6 + $0x5d8] sm:$0xff] }
 0x663   :  { %v2822_v9 = vpop.f32.mrb[40].mxu1 }
 0x664   :  { %v2824_v50 = vpop.f32.mrb[41].mxu1 }
 0x665   :  { %v2917_v0 = vpop.f32.mrb[50].mxu0 }
 0x666   :  { %v2919_v1 = vpop.f32.mrb[51].mxu0 }
 0x667   :  { %v2828_v2 = vpop.f32.mrb[42].mxu1 }
 0x668   :  { %v2830_v55 = vpop.f32.mrb[43].mxu1 }
 0x669   :  { %v10688_v4 = vpop.f32.mrb[52].mxu0 }
 0x66a   :  { %v10692_v7 = vpop.f32.mrb[53].mxu0 }
 0x66b   :  { %v10690_v6 = vpop.f32.mrb[44].mxu1 }
 0x66c   :  { %v10694_v8 = vpop.f32.mrb[45].mxu1 }
 0x66d   :  { %v10696_v10 = vpop.f32.mrb[54].mxu0 }
 0x66e   :  { %v10700_v20 = vpop.f32.mrb[55].mxu0 }
 0x66f   :  { %v10698_v12 = vpop.f32.mrb[46].mxu1 }
 0x670   :  { %v10702_v62 = vpop.f32.mrb[47].mxu1 }
 0x671   :  { %v10704_v17 = vpop.f32.mrb[56].mxu0 }
 0x672   :  { %v10708_v25 = vpop.f32.mrb[57].mxu0 }
 0x673   :  { %v10706_v23 = vpop.f32.mrb[48].mxu1 }
 0x674   :  { %v10710_v24 = vpop.f32.mrb[49].mxu1 }
 0x675   :  { %v10727_v33 = vpop.f32.mrb[58].mxu0 }
 0x676   :  { %v10738_v43 = vpop.f32.mrb[59].mxu0 }
 0x677   :  { %v3033_v34 = vpop.f32.mrb[50].mxu1 }
 0x678   :  { %v3157_v44 = vmax.f32 %v2822_v9, %v3033_v34  ;;  %v3035_v28 = vpop.f32.mrb[51].mxu1  ;;  %v8112_v34 = vpack.c.bf16 %v6905_v58, %v6903_v57  ;;  %v3261_v57 = vld [vmem:[%s12685_s6 + $0x2a0] sm:$0xff]  ;;  %v3263_v58 = vld [vmem:[%s12685_s6 + $0x2b0] sm:$0xff] }
 0x679   :  { %v3158_v13 = vmax.f32 %v2824_v50, %v3035_v28  ;;  %v3128_v5 = vpop.f32.mrb[60].mxu0  ;;  %v3256_v50 = vld [vmem:[%s12685_s6 + $0x278] sm:$0xff] }
 0x67a   :  { %v10764_v39 = vmax.f32 %v2917_v0, %v3128_v5  ;;  %v3130_v40 = vpop.f32.mrb[61].mxu0  ;;  %v6908_v0 = vld [vmem:[%s12685_s6 + $0x588] sm:$0xff]  ;;  %v8014_v37 = vpack.c.bf16 %v3256_v50, %v3254_v61  ;;  %v8122_v50 = vpack.c.bf16 %v6918_v52, %v6916_v51 }
 0x67b   :  { %v3039_v35 = vpop.f32.mrb[52].mxu1  ;;  %3357 = vmatprep.mubr.f32.mxu1 %v3158_v13  ;;  %3648 = vmatprep.mubr.f32.mxu0 %v3158_v13  ;;  %v10766_v15 = vmax.f32 %v2919_v1, %v3130_v40  ;;  %v6910_v1 = vld [vmem:[%s12685_s6 + $0x598] sm:$0xff]  ;;  %v3262_v40 = vld [vmem:[%s12685_s6 + $0x2a8] sm:$0xff] }
 0x67c   :  { %v3161_v11 = vmax.f32 %v2828_v2, %v3039_v35  ;;  %v3041_v14 = vpop.f32.mrb[53].mxu1  ;;  %3358 = vmatmul.mubr.f32.vlgmr.msra.gmra.mrb[60].mxu1 %v3157_v44  ;;  %3649 = vmatmul.mubr.f32.vlgmr.msra.gmra.mrb[70].mxu0 %v3157_v44  ;;  %v8114_v38 = vpack.c.bf16 %v6910_v1, %v6908_v0  ;;  %v3260_v13 = vld [vmem:[%s12685_s6 + $0x298] sm:$0xff]  ;;  %v3266_v61 = vld [vmem:[%s12685_s6 + $0x2c8] sm:$0xff] }
 0x67d   :  { %v3162_v18 = vmax.f32 %v2830_v55, %v3041_v14  ;;  %8005 = vmatpush1.bf16.msra.mxu1 %v8004_v42  ;;  %8105 = vmatpush1.bf16.msra.mxu0 %v8104_v21  ;;  %v3134_v54 = vpop.f32.mrb[62].mxu0  ;;  %v6912_v42 = vld [vmem:[%s12685_s6 + $0x5a8] sm:$0xff]  ;;  %v6914_v21 = vld [vmem:[%s12685_s6 + $0x5b8] sm:$0xff]  ;;  %v8018_v35 = vpack.c.bf16 %v3260_v13, %v3258_v3  ;;  %v3269_v13 = vld [vmem:[%s12685_s6 + $0x2e0] sm:$0xff] }
 0x67e   :  { %8007 = vmatprep.subr.bf16.mxu1 %v8006_v45  ;;  %8107 = vmatprep.subr.bf16.mxu0 %v8106_v47  ;;  %v10793_v2 = vmax.f32 %v10688_v4, %v3134_v54  ;;  %v3136_v55 = vpop.f32.mrb[63].mxu0  ;;  %v3253_v4 = vld [vmem:[%s12685_s6 + $0x260] sm:$0xff]  ;;  %v3268_v0 = vld [vmem:[%s12685_s6 + $0x2d8] sm:$0xff]  ;;  %v6920_v1 = vld [vmem:[%s12685_s6 + $0x5e8] sm:$0xff] }
 0x67f   :  { %v3045_v9 = vpop.f32.mrb[54].mxu1  ;;  %3363 = vmatprep.mubr.f32.mxu1 %v3162_v18  ;;  %3654 = vmatprep.mubr.f32.mxu0 %v3162_v18  ;;  %v10797_v26 = vmax.f32 %v10692_v7, %v3136_v55  ;;  %v6907_v7 = vld [vmem:[%s12685_s6 + $0x580] sm:$0xff]  ;;  %v6922_v55 = vld [vmem:[%s12685_s6 + $0x5f8] sm:$0xff] }
 0x680   :  { %v3165_v29 = vmax.f32 %v10690_v6, %v3045_v9  ;;  %v3047_v30 = vpop.f32.mrb[55].mxu1  ;;  %3364 = vmatmul.mubr.f32.gmra.mrb[62].mxu1 %v3161_v11  ;;  %3655 = vmatmul.mubr.f32.gmra.mrb[72].mxu0 %v3161_v11  ;;  %v3255_v6 = vld [vmem:[%s12685_s6 + $0x270] sm:$0xff]  ;;  %v6926_v3 = vld [vmem:[%s12685_s6 + $0x618] sm:$0xff] }
 0x681   :  { %v3166_v27 = vmax.f32 %v10694_v8, %v3047_v30  ;;  %8009 = vmatpush1.bf16.msra.mxu1 %v8008_v46  ;;  %8109 = vmatpush1.bf16.msra.mxu0 %v8108_v49  ;;  %v6909_v8 = vld [vmem:[%s12685_s6 + $0x590] sm:$0xff]  ;;  %v3140_v44 = vpop.f32.mrb[64].mxu0  ;;  %v8016_v32 = vpack.c.bf16 %v3255_v6, %v3253_v4  ;;  %v3264_v49 = vld [vmem:[%s12685_s6 + $0x2b8] sm:$0xff]  ;;  %v3265_v4 = vld [vmem:[%s12685_s6 + $0x2c0] sm:$0xff] }
 0x682   :  { %8011 = vmatprep.subr.bf16.mxu1 %v8010_v53  ;;  %8111 = vmatprep.subr.bf16.mxu0 %v8110_v56  ;;  %v10825_v41 = vmax.f32 %v10696_v10, %v3140_v44  ;;  %v3142_v16 = vpop.f32.mrb[65].mxu0  ;;  %v8116_v5 = vpack.c.bf16 %v6909_v8, %v6907_v7  ;;  %v3257_v10 = vld [vmem:[%s12685_s6 + $0x280] sm:$0xff]  ;;  %v8022_v9 = vpack.c.bf16 %v3264_v49, %v3262_v40  ;;  %v3267_v6 = vld [vmem:[%s12685_s6 + $0x2d0] sm:$0xff]  ;;  %v3270_v7 = vld [vmem:[%s12685_s6 + $0x2e8] sm:$0xff] }
 0x683   :  { %v3051_v28 = vpop.f32.mrb[56].mxu1  ;;  %3369 = vmatprep.mubr.f32.mxu1 %v3166_v27  ;;  %3660 = vmatprep.mubr.f32.mxu0 %v3166_v27  ;;  %v10829_v48 = vmax.f32 %v10700_v20, %v3142_v16  ;;  %v6911_v20 = vld [vmem:[%s12685_s6 + $0x5a0] sm:$0xff]  ;;  %v8020_v53 = vpack.c.bf16 %v3259_v59, %v3257_v10  ;;  %v6924_v8 = vld [vmem:[%s12685_s6 + $0x608] sm:$0xff]  ;;  %v8028_v44 = vpack.c.bf16 %v3267_v6, %v3265_v4  ;;  %v6930_v10 = vld [vmem:[%s12685_s6 + $0x638] sm:$0xff] }
 0x684   :  { %v3169_v45 = vmax.f32 %v10698_v12, %v3051_v28  ;;  %v3053_v47 = vpop.f32.mrb[57].mxu1  ;;  %3370 = vmatmul.mubr.f32.gmra.mrb[64].mxu1 %v3165_v29  ;;  %3661 = vmatmul.mubr.f32.gmra.mrb[74].mxu0 %v3165_v29  ;;  %v8118_v12 = vpack.c.bf16 %v6914_v21, %v6912_v42  ;;  %v3271_v42 = vld [vmem:[%s12685_s6 + $0x2f0] sm:$0xff]  ;;  %v8130_v16 = vpack.c.bf16 %v6926_v3, %v6924_v8  ;;  %v3273_v59 = vld [vmem:[%s12685_s6 + $0x300] sm:$0xff] }
 0x685   :  { %v3170_v22 = vmax.f32 %v10702_v62, %v3053_v47  ;;  %8013 = vmatpush1.bf16.msra.mxu1 %v8012_v31  ;;  %8113 = vmatpush1.bf16.msra.mxu0 %v8112_v34  ;;  %v6913_v62 = vld [vmem:[%s12685_s6 + $0x5b0] sm:$0xff]  ;;  %v3146_v60 = vpop.f32.mrb[66].mxu0  ;;  %v8024_v31 = vpack.c.bf16 %v3263_v58, %v3261_v57 }
 0x686   :  { %8015 = vmatprep.subr.bf16.mxu1 %v8014_v37  ;;  %8115 = vmatprep.subr.bf16.mxu0 %v8114_v38  ;;  %v10848_v11 = vmax.f32 %v10704_v17, %v3146_v60  ;;  %v3148_v14 = vpop.f32.mrb[67].mxu0  ;;  %v8120_v56 = vpack.c.bf16 %v6913_v62, %v6911_v20  ;;  %v6919_v37 = vld [vmem:[%s12685_s6 + $0x5e0] sm:$0xff]  ;;  %v6921_v38 = vld [vmem:[%s12685_s6 + $0x5f0] sm:$0xff] }
 0x687   :  { %v3057_v36 = vpop.f32.mrb[58].mxu1  ;;  %3375 = vmatprep.mubr.f32.mxu1 %v3170_v22  ;;  %3666 = vmatprep.mubr.f32.mxu0 %v3170_v22  ;;  %v10861_v17 = vmax.f32 %v10708_v25, %v3148_v14  ;;  %v6915_v25 = vld [vmem:[%s12685_s6 + $0x5c0] sm:$0xff]  ;;  %v8128_v28 = vpack.c.bf16 %v6921_v38, %v6919_v37  ;;  %v6925_v47 = vld [vmem:[%s12685_s6 + $0x610] sm:$0xff]  ;;  %v3274_v22 = vld [vmem:[%s12685_s6 + $0x308] sm:$0xff] }
 0x688   :  { %v3173_v18 = vmax.f32 %v10706_v23, %v3057_v36  ;;  %v3059_v46 = vpop.f32.mrb[59].mxu1  ;;  %3376 = vmatmul.mubr.f32.gmra.mrb[66].mxu1 %v3169_v45  ;;  %3667 = vmatmul.mubr.f32.gmra.mrb[76].mxu0 %v3169_v45  ;;  %v6923_v45 = vld [vmem:[%s12685_s6 + $0x600] sm:$0xff]  ;;  %v3275_v60 = vld [vmem:[%s12685_s6 + $0x310] sm:$0xff] }
 0x689   :  { %v3174_v23 = vmax.f32 %v10710_v24, %v3059_v46  ;;  %8017 = vmatpush1.bf16.msra.mxu1 %v8016_v32  ;;  %8117 = vmatpush1.bf16.msra.mxu0 %v8116_v5  ;;  %v6917_v24 = vld [vmem:[%s12685_s6 + $0x5d0] sm:$0xff]  ;;  %v3152_v54 = vpop.f32.mrb[68].mxu0  ;;  %v3276_v32 = vld [vmem:[%s12685_s6 + $0x318] sm:$0xff]  ;;  %v6928_v5 = vld [vmem:[%s12685_s6 + $0x628] sm:$0xff]  ;;  %v8036_v14 = vpack.c.bf16 %v3275_v60, %v3273_v59 }
 0x68a   :  { %8019 = vmatprep.subr.bf16.mxu1 %v8018_v35  ;;  %8119 = vmatprep.subr.bf16.mxu0 %v8118_v12  ;;  %v10889_v29 = vmax.f32 %v10727_v33, %v3152_v54  ;;  %v3154_v30 = vpop.f32.mrb[69].mxu0  ;;  %v8124_v34 = vpack.c.bf16 %v6917_v24, %v6915_v25  ;;  %v8026_v33 = vpack.c.bf16 %v3268_v0, %v3266_v61  ;;  %v6927_v36 = vld [vmem:[%s12685_s6 + $0x620] sm:$0xff]  ;;  %v6929_v40 = vld [vmem:[%s12685_s6 + $0x630] sm:$0xff]  ;;  %v6947_v59 = vld [vmem:[%s12687_s8 + $0xc8] sm:$0xff] }
 0x68b   :  { %3381 = vmatprep.mubr.f32.mxu1 %v3174_v23  ;;  %3672 = vmatprep.mubr.f32.mxu0 %v3174_v23  ;;  %v10892_v27 = vmax.f32 %v10738_v43, %v3154_v30  ;;  %v8126_v43 = vpack.c.bf16 %v6922_v55, %v6920_v1  ;;  %v8032_v35 = vpack.c.bf16 %v3271_v42, %v3269_v13  ;;  %v3957_v60 = vld [vmem:[#allocation11 + $0x28] sm:$0xff] }
 0x68c   :  { %3382 = vmatmul.mubr.f32.gmra.mrb[68].mxu1 %v3173_v18  ;;  %3673 = vmatmul.mubr.f32.gmra.mrb[78].mxu0 %v3173_v18  ;;  %v8132_v12 = vpack.c.bf16 %v6925_v47, %v6923_v45  ;;  %v8034_v20 = vpack.c.bf16 %v3276_v32, %v3274_v22  ;;  %v8134_v62 = vpack.c.bf16 %v6930_v10, %v6928_v5 }
 0x68d   :  { %8021 = vmatpush1.bf16.msra.mxu1 %v8020_v53  ;;  %8121 = vmatpush1.bf16.msra.mxu0 %v8120_v56  ;;  %v8136_v18 = vpack.c.bf16 %v6929_v40, %v6927_v36 }
 0x68e   :  { %6826 = vmatprep.mubr.msk.f32.mxu1 %vm3277_vm14, %v10766_v15  ;;  %6931 = vmatprep.mubr.msk.f32.mxu0 %vm3277_vm14, %v10766_v15  ;;  %v3272_v15 = vld [vmem:[%s12685_s6 + $0x2f8] sm:$0xff]  ;;  %s6936_s6 = sld [smem:[#allocation3 + $0x1]] }
 0x68f   :  { %8023 = vmatprep.subr.bf16.mxu1 %v8022_v9  ;;  %8123 = vmatprep.subr.bf16.mxu0 %v8122_v50  ;;  %v8030_v21 = vpack.c.bf16 %v3272_v15, %v3270_v7 }
 0x691   :  { %8025 = vmatpush1.bf16.msra.mxu1 %v8024_v31  ;;  %8125 = vmatpush1.bf16.msra.mxu0 %v8124_v34 }
 0x692   :  { %8027 = vmatprep.subr.bf16.mxu1 %v8026_v33  ;;  %8127 = vmatprep.subr.bf16.mxu0 %v8126_v43 }
 0x695   :  { %8029 = vmatpush1.bf16.msra.mxu1 %v8028_v44  ;;  %8129 = vmatpush1.bf16.msra.mxu0 %v8128_v28 }
 0x696   :  { %8031 = vmatprep.subr.bf16.mxu1 %v8030_v21  ;;  %8131 = vmatprep.subr.bf16.mxu0 %v8130_v16 }
 0x699   :  { %8033 = vmatpush1.bf16.msra.mxu1 %v8032_v35  ;;  %8133 = vmatpush1.bf16.msra.mxu0 %v8132_v12 }
 0x69a   :  { %8035 = vmatprep.subr.bf16.mxu1 %v8034_v20  ;;  %8135 = vmatprep.subr.bf16.mxu0 %v8134_v62  ;;  %v6948_v20 = vld [vmem:[%s12687_s8 + $0xd0] sm:$0xff]  ;;  %v3816_v62 = vld [vmem:[#allocation11] sm:$0xff] }
 0x69b   :  { %v8155_v40 = vpack.c.bf16 %v6948_v20, %v6947_v59  ;;  %v6964_v20 = vld [vmem:[%s12687_s8 + $0x150] sm:$0xff] }
 0x69d   :  { %8037 = vmatpush1.bf16.msra.mxu1 %v8036_v14  ;;  %8137 = vmatpush1.bf16.msra.mxu0 %v8136_v18  ;;  %v6949_v14 = vld [vmem:[%s12687_s8 + $0xd8] sm:$0xff]  ;;  %v6950_v18 = vld [vmem:[%s12687_s8 + $0xe0] sm:$0xff] }
 0x6a0   :  { %3453 = vmatmul.mubr.f32.vlgmr.msra.gmra.mrb[60].mxu1 %v10764_v39  ;;  %3744 = vmatmul.mubr.f32.vlgmr.msra.gmra.mrb[70].mxu0 %v10764_v39 }
 0x6a1   :  { %6827 = vmatprep.mubr.msk.f32.mxu1 %vm3277_vm14, %v10797_v26  ;;  %6932 = vmatprep.mubr.msk.f32.mxu0 %vm3277_vm14, %v10797_v26 }
 0x6a4   :  { %3459 = vmatmul.mubr.f32.gmra.mrb[62].mxu1 %v10793_v2  ;;  %3750 = vmatmul.mubr.f32.gmra.mrb[72].mxu0 %v10793_v2 }
 0x6a5   :  { %6828 = vmatprep.mubr.msk.f32.mxu1 %vm3277_vm14, %v10829_v48  ;;  %6933 = vmatprep.mubr.msk.f32.mxu0 %vm3277_vm14, %v10829_v48 }
 0x6a8   :  { %3465 = vmatmul.mubr.f32.gmra.mrb[64].mxu1 %v10825_v41  ;;  %3756 = vmatmul.mubr.f32.gmra.mrb[74].mxu0 %v10825_v41 }
 0x6a9   :  { %6829 = vmatprep.mubr.msk.f32.mxu1 %vm3277_vm14, %v10861_v17  ;;  %6934 = vmatprep.mubr.msk.f32.mxu0 %vm3277_vm14, %v10861_v17 }
 0x6ac   :  { %3471 = vmatmul.mubr.f32.gmra.mrb[66].mxu1 %v10848_v11  ;;  %3762 = vmatmul.mubr.f32.gmra.mrb[76].mxu0 %v10848_v11  ;;  %v3795_v11 = vstv %s6936_s6  ;;  %s9048_s6 = smov 60  }
 0x6ad   :  { %6830 = vmatprep.mubr.msk.f32.mxu1 %vm3277_vm14, %v10892_v27  ;;  %6935 = vmatprep.mubr.msk.f32.mxu0 %vm3277_vm14, %v10892_v27 }
 0x6b0   :  { %3477 = vmatmul.mubr.f32.gmra.mrb[68].mxu1 %v10889_v29  ;;  %3768 = vmatmul.mubr.f32.gmra.mrb[78].mxu0 %v10889_v29 }
 0x6b1   :  { %3900 = vmatprep.mubr.f32.mxu1 %v9039_v63  ;;  %4041 = vmatprep.mubr.f32.mxu0 %v9039_v63 }
 0x773   :  { %v3454_v39 = vpop.f32.mrb[60].mxu1  ;;  %v3745_v2 = vpop.f32.mrb[70].mxu0 }
 0x774   :  { %v3774_v26 = vmax.f32 %v3454_v39, %v3745_v2  ;;  %v3456_v41 = vpop.f32.mrb[61].mxu1  ;;  %v3747_v48 = vpop.f32.mrb[71].mxu0  ;;  %v3931_v39 = vld [vmem:[%s12687_s8] sm:$0xff]  ;;  %v3932_v2 = vld [vmem:[%s12687_s8 + $0x8] sm:$0xff] }
 0x775   :  { %v3775_v46 = vmax.f32 %v3456_v41, %v3747_v48  ;;  %v3958_v41 = vld [vmem:[#allocation11 + $0x30] sm:$0xff]  ;;  %v3817_v48 = vld [vmem:[#allocation11 + $0x8] sm:$0xff] }
 0x776   :  { %v3796_v52 = vmul.f32 %v3795_v11, %v3774_v26  ;;  %vm3785_vm15 = vcmp.ge.f32.partialorder %v3774_v26, 0.0 }
 0x777   :  { %v3460_v49 = vpop.f32.mrb[62].mxu1  ;;  %v3751_v51 = vpop.f32.mrb[72].mxu0  ;;  %v3797_v56 = vmul.f32 %v3795_v11, %v3775_v46  ;;  %vm3786_vm2 = vcmp.ge.f32.partialorder %v3775_v46, 0.0 }
 0x778   :  { %v3776_v17 = vmax.f32 %v3460_v49, %v3751_v51  ;;  %v3462_v23 = vpop.f32.mrb[63].mxu1  ;;  %v3753_v53 = vpop.f32.mrb[73].mxu0  ;;  %v3806_v54 = vsel %vm3785_vm15, %v3774_v26, %v3796_v52  ;;  %v9040_v26 = vmov 0.0|0.0   ;;  %v8191_v49 = vpack.c.bf16 %v3932_v2, %v3931_v39  ;;  %v6952_v51 = vld [vmem:[%s12687_s8 + $0xf0] sm:$0xff]  ;;  %v6966_v39 = vld [vmem:[%s12687_s8 + $0x160] sm:$0xff] }
 0x779   :  { %v3777_v57 = vmax.f32 %v3462_v23, %v3753_v53  ;;  %v3807_v55 = vsel %vm3786_vm2, %v3775_v46, %v3797_v56  ;;  %v6951_v46 = vld [vmem:[%s12687_s8 + $0xe8] sm:$0xff]  ;;  %v3933_v52 = vld [vmem:[%s12687_s8 + $0x10] sm:$0xff]  ;;  %v3959_v23 = vld [vmem:[#allocation11 + $0x38] sm:$0xff] }
 0x77a   :  { %vm3787_vm3 = vcmp.ge.f32.partialorder %v3776_v17, 0.0  ;;  %v3798_v58 = vmul.f32 %v3795_v11, %v3776_v17  ;;  %v3818_v53 = vld [vmem:[#allocation11 + $0x10] sm:$0xff]  ;;  %v8161_v56 = vpack.c.bf16 %v6952_v51, %v6951_v46  ;;  %v3947_v2 = vld [vmem:[%s12687_s8 + $0x80] sm:$0xff] }
 0x77b   :  { %vm3788_vm4 = vcmp.ge.f32.partialorder %v3777_v57, 0.0  ;;  %v3799_v25 = vmul.f32 %v3795_v11, %v3777_v57  ;;  %v3466_v24 = vpop.f32.mrb[64].mxu1  ;;  %v3757_v61 = vpop.f32.mrb[74].mxu0  ;;  %v3949_v51 = vld [vmem:[%s12687_s8 + $0x90] sm:$0xff] }
 0x77c   :  { %v3808_v9 = vsel %vm3787_vm3, %v3776_v17, %v3798_v58  ;;  %v3778_v50 = vmax.f32 %v3466_v24, %v3757_v61  ;;  %v3468_v0 = vpop.f32.mrb[65].mxu1  ;;  %v3759_v1 = vpop.f32.mrb[75].mxu0  ;;  %v3934_v17 = vld [vmem:[%s12687_s8 + $0x18] sm:$0xff]  ;;  %v3935_v24 = vld [vmem:[%s12687_s8 + $0x20] sm:$0xff]  ;;  %v3936_v61 = vld [vmem:[%s12687_s8 + $0x28] sm:$0xff]  ;;  %vm5112_vm3 = vcmask 1041184  }
 0x77d   :  { %v10986_v29 = vpack.c.bf16 %v3808_v9, %v3806_v54  ;;  %v3809_v30 = vsel %vm3788_vm4, %v3777_v57, %v3799_v25  ;;  %v3779_v27 = vmax.f32 %v3468_v0, %v3759_v1  ;;  %v6953_v57 = vld [vmem:[%s12687_s8 + $0xf8] sm:$0xff]  ;;  %v8194_v58 = vpack.c.bf16 %v3934_v17, %v3933_v52  ;;  %v6954_v25 = vld [vmem:[%s12687_s8 + $0x100] sm:$0xff]  ;;  %v6955_v0 = vld [vmem:[%s12687_s8 + $0x108] sm:$0xff] }
 0x77e   :  { %v10988_v31 = vpack.c.bf16 %v3809_v30, %v3807_v55  ;;  %v3800_v6 = vmul.f32 %v3795_v11, %v3778_v50  ;;  %vm3789_vm5 = vcmp.ge.f32.partialorder %v3778_v50, 0.0  ;;  %v3960_v54 = vld [vmem:[#allocation11 + $0x40] sm:$0xff]  ;;  %v3819_v9 = vld [vmem:[#allocation11 + $0x18] sm:$0xff]  ;;  %v8197_v1 = vpack.c.bf16 %v3936_v61, %v3935_v24  ;;  %v6956_v55 = vld [vmem:[%s12687_s8 + $0x110] sm:$0xff] }
 0x77f   :  { %v3472_v34 = vpop.f32.mrb[66].mxu1  ;;  %v3763_v4 = vpop.f32.mrb[76].mxu0  ;;  %v3801_v38 = vmul.f32 %v3795_v11, %v3779_v27  ;;  %vm3790_vm6 = vcmp.ge.f32.partialorder %v3779_v27, 0.0  ;;  %v3937_v30 = vld [vmem:[%s12687_s8 + $0x30] sm:$0xff]  ;;  %v3950_v52 = vld [vmem:[%s12687_s8 + $0x98] sm:$0xff]  ;;  %vm5113_vm4 = vcmask 583682  }
 0x780   :  { %v3780_v33 = vmax.f32 %v3472_v34, %v3763_v4  ;;  %v3474_v43 = vpop.f32.mrb[67].mxu1  ;;  %v3765_v37 = vpop.f32.mrb[77].mxu0  ;;  %8139 = vmatprep.subr.bf16.mxu1 %v10988_v31  ;;  %8147 = vmatprep.subr.bf16.mxu0 %v10988_v31  ;;  %v3810_v28 = vsel %vm3789_vm5, %v3778_v50, %v3800_v6  ;;  %v8164_v50 = vpack.c.bf16 %v6954_v25, %v6953_v57  ;;  %v3961_v34 = vld [vmem:[#allocation11 + $0x48] sm:$0xff]  ;;  %v3820_v4 = vld [vmem:[#allocation11 + $0x20] sm:$0xff]  ;;  %vm5122_vm5 = vcmask 1040960  }
 0x781   :  { %v3781_v7 = vmax.f32 %v3474_v43, %v3765_v37  ;;  %8141 = vmatpush1.bf16.msra.mxu1 %v10986_v29  ;;  %8149 = vmatpush1.bf16.msra.mxu0 %v10986_v29  ;;  %v3811_v45 = vsel %vm3790_vm6, %v3779_v27, %v3801_v38  ;;  %v3938_v27 = vld [vmem:[%s12687_s8 + $0x38] sm:$0xff]  ;;  %v8167_v6 = vpack.c.bf16 %v6956_v55, %v6955_v0  ;;  %v6958_v37 = vld [vmem:[%s12687_s8 + $0x120] sm:$0xff]  ;;  %v3953_v61 = vld [vmem:[%s12687_s8 + $0xb0] sm:$0xff]  ;;  %vm5123_vm6 = vcmask 354306  }
 0x782   :  { %vm3791_vm7 = vcmp.ge.f32.partialorder %v3780_v33, 0.0  ;;  %v3802_v15 = vmul.f32 %v3795_v11, %v3780_v33  ;;  %v8200_v43 = vpack.c.bf16 %v3938_v27, %v3937_v30  ;;  %v3939_v38 = vld [vmem:[%s12687_s8 + $0x40] sm:$0xff]  ;;  %v6988_v55 = vld [vmem:[%s12687_s8 + $0x198] sm:$0xff] }
 0x783   :  { %vm3792_vm8 = vcmp.ge.f32.partialorder %v3781_v7, 0.0  ;;  %v3803_v8 = vmul.f32 %v3795_v11, %v3781_v7  ;;  %v3478_v3 = vpop.f32.mrb[68].mxu1  ;;  %v3769_v44 = vpop.f32.mrb[78].mxu0  ;;  %v3951_v57 = vld [vmem:[%s12687_s8 + $0xa0] sm:$0xff] }
 0x784   :  { %v3812_v13 = vsel %vm3791_vm7, %v3780_v33, %v3802_v15  ;;  %v3782_v42 = vmax.f32 %v3478_v3, %v3769_v44  ;;  %v3480_v21 = vpop.f32.mrb[69].mxu1  ;;  %v3771_v16 = vpop.f32.mrb[79].mxu0  ;;  %v6957_v33 = vld [vmem:[%s12687_s8 + $0x118] sm:$0xff]  ;;  %v6960_v44 = vld [vmem:[%s12687_s8 + $0x130] sm:$0xff]  ;;  %v3955_v0 = vld [vmem:[%s12687_s8 + $0xc0] sm:$0xff]  ;;  %vm5109_vm7 = vcmask 818176  }
 0x785   :  { %v10994_v47 = vpack.c.bf16 %v3812_v13, %v3810_v28  ;;  %v3813_v22 = vsel %vm3792_vm8, %v3781_v7, %v3803_v8  ;;  %v3783_v32 = vmax.f32 %v3480_v21, %v3771_v16  ;;  %v3940_v7 = vld [vmem:[%s12687_s8 + $0x48] sm:$0xff]  ;;  %v8170_v15 = vpack.c.bf16 %v6958_v37, %v6957_v33  ;;  %v3941_v28 = vld [vmem:[%s12687_s8 + $0x50] sm:$0xff]  ;;  %v3942_v13 = vld [vmem:[%s12687_s8 + $0x58] sm:$0xff] }
 0x786   :  { %v10996_v5 = vpack.c.bf16 %v3813_v22, %v3811_v45  ;;  %v3804_v35 = vmul.f32 %v3795_v11, %v3782_v42  ;;  %vm3793_vm10 = vcmp.ge.f32.partialorder %v3782_v42, 0.0  ;;  %v6959_v8 = vld [vmem:[%s12687_s8 + $0x128] sm:$0xff]  ;;  %v8203_v3 = vpack.c.bf16 %v3940_v7, %v3939_v38  ;;  %v6961_v21 = vld [vmem:[%s12687_s8 + $0x138] sm:$0xff]  ;;  %v6962_v45 = vld [vmem:[%s12687_s8 + $0x140] sm:$0xff] }
 0x787   :  { %vm3794_vm9 = vcmp.ge.f32.partialorder %v3783_v32, 0.0  ;;  %v3805_v10 = vmul.f32 %v3795_v11, %v3783_v32  ;;  %v8158_v11 = vpack.c.bf16 %v6950_v18, %v6949_v14  ;;  %v8206_v16 = vpack.c.bf16 %v3942_v13, %v3941_v28  ;;  %v3943_v22 = vld [vmem:[%s12687_s8 + $0x60] sm:$0xff]  ;;  %v6965_v14 = vld [vmem:[%s12687_s8 + $0x158] sm:$0xff]  ;;  %vm11829_vm8 = vmor %vm5113_vm4, %vm5112_vm3 }
 0x788   :  { %8143 = vmatprep.subr.bf16.mxu1 %v10996_v5  ;;  %8151 = vmatprep.subr.bf16.mxu0 %v10996_v5  ;;  %v11012_v36 = vsel %vm3793_vm10, %v3782_v42, %v3804_v35  ;;  %v8173_v42 = vpack.c.bf16 %v6960_v44, %v6959_v8  ;;  %v6963_v35 = vld [vmem:[%s12687_s8 + $0x148] sm:$0xff]  ;;  %v6989_v33 = vld [vmem:[%s12687_s8 + $0x1a0] sm:$0xff]  ;;  %v6992_v44 = vld [vmem:[%s12687_s8 + $0x1b8] sm:$0xff]  ;;  %vm5134_vm10 = vcmask 1040736   ;;  %vm5149_vm3 = vcmask 942208  }
 0x789   :  { %v11000_v12 = vsel %vm3794_vm9, %v3783_v32, %v3805_v10  ;;  %8145 = vmatpush1.bf16.msra.mxu1 %v10994_v47  ;;  %8153 = vmatpush1.bf16.msra.mxu0 %v10994_v47  ;;  %v3944_v32 = vld [vmem:[%s12687_s8 + $0x68] sm:$0xff]  ;;  %v8176_v10 = vpack.c.bf16 %v6962_v45, %v6961_v21  ;;  %v6993_v45 = vld [vmem:[%s12687_s8 + $0x1c0] sm:$0xff]  ;;  %vm11833_vm9 = vmor %vm5123_vm6, %vm5122_vm5  ;;  %vm5171_vm5 = vcmask 485378   ;;  %vm5167_vm6 = vcmask 719872  }
 0x78a   :  { %3844 = vmatprep.subr.mxu1 %v11000_v12  ;;  %3985 = vmatprep.subr.mxu0 %v11000_v12  ;;  %v8209_v59 = vpack.c.bf16 %v3944_v32, %v3943_v22  ;;  %v6994_v22 = vld [vmem:[%s12687_s8 + $0x1c8] sm:$0xff] }
 0x78d   :  { %3845 = vmatpush1.msra.mxu1 %v11012_v36  ;;  %3986 = vmatpush1.msra.mxu0 %v11012_v36 }
 0x78e   :  { %6937 = vmatmul.mubr.msk.f32.vlgmr.msra.gmra.mrb[70].mxu1 %vm500_vm1, %v3816_v62  ;;  %6942 = vmatmul.mubr.msk.f32.vlgmr.msra.gmra.mrb[80].mxu0 %vm500_vm1, %v3957_v60  ;;  %v3945_v62 = vld [vmem:[%s12687_s8 + $0x70] sm:$0xff]  ;;  %v3946_v60 = vld [vmem:[%s12687_s8 + $0x78] sm:$0xff] }
 0x78f   :  { %8154 = vmatprep.subr.bf16.mxu1 %v9040_v26  ;;  %4047 = vmatprep.mubr.f32.mxu0 %v9039_v63  ;;  %v8212_v18 = vpack.c.bf16 %v3946_v60, %v3945_v62  ;;  %v6995_v62 = vld [vmem:[%s12687_s8 + $0x1d0] sm:$0xff]  ;;  %v6996_v60 = vld [vmem:[%s12687_s8 + $0x1d8] sm:$0xff] }
 0x790   :  { %8156 = vmatpush1.bf16.msra.mxu1 %v8155_v40  ;;  %3906 = vmatprep.mubr.f32.mxu1 %v9039_v63  ;;  %v8179_v40 = vpack.c.bf16 %v6964_v20, %v6963_v35 }
 0x791   :  { %8157 = vmatprep.subr.bf16.mxu1 %v9040_v26  ;;  %8190 = vmatprep.subr.bf16.mxu0 %v9040_v26 }
 0x792   :  { %6943 = vmatmul.mubr.msk.f32.gmra.mrb[82].mxu0 %vm500_vm1, %v3958_v41  ;;  %6938 = vmatmul.mubr.msk.f32.gmra.mrb[72].mxu1 %vm500_vm1, %v3817_v48  ;;  %v3948_v41 = vld [vmem:[%s12687_s8 + $0x88] sm:$0xff]  ;;  %v8182_v48 = vpack.c.bf16 %v6966_v39, %v6965_v14  ;;  %v8247_v14 = vpack.c.bf16 %v6996_v60, %v6995_v62  ;;  %v7034_v60 = vld [vmem:[%s12687_s8 + $0x2b8] sm:$0xff] }
 0x793   :  { %4053 = vmatprep.mubr.f32.mxu0 %v9039_v63  ;;  %3912 = vmatprep.mubr.f32.mxu1 %v9039_v63  ;;  %v8215_v46 = vpack.c.bf16 %v3948_v41, %v3947_v2  ;;  %v6997_v41 = vld [vmem:[%s12687_s8 + $0x1e0] sm:$0xff] }
 0x794   :  { %8159 = vmatpush1.bf16.msra.mxu1 %v8158_v11  ;;  %8192 = vmatpush1.bf16.msra.mxu0 %v8191_v49  ;;  %v6967_v11 = vld [vmem:[%s12687_s8 + $0x168] sm:$0xff]  ;;  %v6968_v49 = vld [vmem:[%s12687_s8 + $0x170] sm:$0xff] }
 0x795   :  { %8160 = vmatprep.subr.bf16.mxu1 %v9040_v26  ;;  %8193 = vmatprep.subr.bf16.mxu0 %v9040_v26  ;;  %v8185_v17 = vpack.c.bf16 %v6968_v49, %v6967_v11  ;;  %v4310_v11 = vld [vmem:[#allocation11 + $0x50] sm:$0xff] }
 0x796   :  { %6944 = vmatmul.mubr.msk.f32.gmra.mrb[84].mxu0 %vm500_vm1, %v3959_v23  ;;  %6939 = vmatmul.mubr.msk.f32.gmra.mrb[74].mxu1 %vm500_vm1, %v3818_v53  ;;  %v6969_v23 = vld [vmem:[%s12687_s8 + $0x178] sm:$0xff]  ;;  %v8218_v53 = vpack.c.bf16 %v3950_v52, %v3949_v51  ;;  %v6999_v49 = vld [vmem:[%s12687_s8 + $0x1f0] sm:$0xff] }
 0x797   :  { %4059 = vmatprep.mubr.f32.mxu0 %v9039_v63  ;;  %3918 = vmatprep.mubr.f32.mxu1 %v9039_v63  ;;  %v7000_v51 = vld [vmem:[%s12687_s8 + $0x1f8] sm:$0xff] }
 0x798   :  { %8162 = vmatpush1.bf16.msra.mxu1 %v8161_v56  ;;  %8195 = vmatpush1.bf16.msra.mxu0 %v8194_v58  ;;  %v6970_v56 = vld [vmem:[%s12687_s8 + $0x180] sm:$0xff]  ;;  %v3952_v58 = vld [vmem:[%s12687_s8 + $0xa8] sm:$0xff] }
 0x799   :  { %8163 = vmatprep.subr.bf16.mxu1 %v9040_v26  ;;  %8196 = vmatprep.subr.bf16.mxu0 %v9040_v26  ;;  %v8188_v25 = vpack.c.bf16 %v6970_v56, %v6969_v23  ;;  %v8221_v24 = vpack.c.bf16 %v3952_v58, %v3951_v57  ;;  %v4311_v52 = vld [vmem:[#allocation11 + $0x58] sm:$0xff]  ;;  %v4312_v56 = vld [vmem:[#allocation11 + $0x60] sm:$0xff]  ;;  %v7003_v58 = vld [vmem:[%s12687_s8 + $0x210] sm:$0xff] }
 0x79a   :  { %6945 = vmatmul.mubr.msk.f32.gmra.mrb[86].mxu0 %vm500_vm1, %v3960_v54  ;;  %6940 = vmatmul.mubr.msk.f32.gmra.mrb[76].mxu1 %vm500_vm1, %v3819_v9  ;;  %v3954_v54 = vld [vmem:[%s12687_s8 + $0xb8] sm:$0xff]  ;;  %v7001_v23 = vld [vmem:[%s12687_s8 + $0x200] sm:$0xff] }
 0x79b   :  { %4065 = vmatprep.mubr.f32.mxu0 %v9039_v63  ;;  %3924 = vmatprep.mubr.f32.mxu1 %v9039_v63  ;;  %v8224_v9 = vpack.c.bf16 %v3954_v54, %v3953_v61  ;;  %v7005_v54 = vld [vmem:[%s12687_s8 + $0x220] sm:$0xff] }
 0x79c   :  { %8165 = vmatpush1.bf16.msra.mxu1 %v8164_v50  ;;  %8198 = vmatpush1.bf16.msra.mxu0 %v8197_v1  ;;  %v6971_v50 = vld [vmem:[%s12687_s8 + $0x188] sm:$0xff]  ;;  %v6987_v1 = vld [vmem:[%s12687_s8 + $0x190] sm:$0xff] }
 0x79d   :  { %8166 = vmatprep.subr.bf16.mxu1 %v9040_v26  ;;  %8199 = vmatprep.subr.bf16.mxu0 %v9040_v26 }
 0x79e   :  { %6946 = vmatmul.mubr.msk.f32.gmra.mrb[88].mxu0 %vm500_vm1, %v3961_v34  ;;  %6941 = vmatmul.mubr.msk.f32.gmra.mrb[78].mxu1 %vm500_vm1, %v3820_v4  ;;  %v8235_v34 = vpack.c.bf16 %v6988_v55, %v6987_v1  ;;  %v7007_v1 = vld [vmem:[%s12687_s8 + $0x230] sm:$0xff]  ;;  %v7008_v55 = vld [vmem:[%s12687_s8 + $0x238] sm:$0xff] }
 0x7a0   :  { %8168 = vmatpush1.bf16.msra.mxu1 %v8167_v6  ;;  %8201 = vmatpush1.bf16.msra.mxu0 %v8200_v43  ;;  %v6990_v43 = vld [vmem:[%s12687_s8 + $0x1a8] sm:$0xff] }
 0x7a1   :  { %8169 = vmatprep.subr.bf16.mxu1 %v9040_v26  ;;  %8202 = vmatprep.subr.bf16.mxu0 %v9040_v26  ;;  %v8238_v38 = vpack.c.bf16 %v6990_v43, %v6989_v33  ;;  %v7010_v33 = vld [vmem:[%s12687_s8 + $0x248] sm:$0xff] }
 0x7a4   :  { %8171 = vmatpush1.bf16.msra.mxu1 %v8170_v15  ;;  %8204 = vmatpush1.bf16.msra.mxu0 %v8203_v3  ;;  %v6991_v3 = vld [vmem:[%s12687_s8 + $0x1b0] sm:$0xff] }
 0x7a5   :  { %8172 = vmatprep.subr.bf16.mxu1 %v9040_v26  ;;  %8205 = vmatprep.subr.bf16.mxu0 %v9040_v26  ;;  %v8241_v13 = vpack.c.bf16 %v6992_v44, %v6991_v3  ;;  %v7026_v3 = vld [vmem:[%s12687_s8 + $0x278] sm:$0xff]  ;;  %v7027_v44 = vld [vmem:[%s12687_s8 + $0x280] sm:$0xff] }
 0x7a8   :  { %8174 = vmatpush1.bf16.msra.mxu1 %v8173_v42  ;;  %8207 = vmatpush1.bf16.msra.mxu0 %v8206_v16 }
 0x7a9   :  { %8175 = vmatprep.subr.bf16.mxu1 %v9040_v26  ;;  %8208 = vmatprep.subr.bf16.mxu0 %v9040_v26 }
 0x7ac   :  { %8177 = vmatpush1.bf16.msra.mxu1 %v8176_v10  ;;  %8210 = vmatpush1.bf16.msra.mxu0 %v8209_v59  ;;  %v8244_v10 = vpack.c.bf16 %v6994_v22, %v6993_v45  ;;  %v7028_v45 = vld [vmem:[%s12687_s8 + $0x288] sm:$0xff]  ;;  %v7029_v22 = vld [vmem:[%s12687_s8 + $0x290] sm:$0xff] }
 0x7ad   :  { %8178 = vmatprep.subr.bf16.mxu1 %v9040_v26  ;;  %8211 = vmatprep.subr.bf16.mxu0 %v9040_v26 }
 0x7b0   :  { %8180 = vmatpush1.bf16.msra.mxu1 %v8179_v40  ;;  %8213 = vmatpush1.bf16.msra.mxu0 %v8212_v18 }
 0x7b1   :  { %8181 = vmatprep.subr.bf16.mxu1 %v9040_v26  ;;  %8214 = vmatprep.subr.bf16.mxu0 %v9040_v26 }
 0x7b4   :  { %8183 = vmatpush1.bf16.msra.mxu1 %v8182_v48  ;;  %8216 = vmatpush1.bf16.msra.mxu0 %v8215_v46  ;;  %v6998_v48 = vld [vmem:[%s12687_s8 + $0x1e8] sm:$0xff] }
 0x7b5   :  { %8184 = vmatprep.subr.bf16.mxu1 %v9040_v26  ;;  %8217 = vmatprep.subr.bf16.mxu0 %v9040_v26  ;;  %v8250_v46 = vpack.c.bf16 %v6998_v48, %v6997_v41  ;;  %v7038_v41 = vld [vmem:[%s12687_s8 + $0x2d8] sm:$0xff]  ;;  %v7039_v48 = vld [vmem:[%s12687_s8 + $0x2e0] sm:$0xff] }
 0x7b8   :  { %8186 = vmatpush1.bf16.msra.mxu1 %v8185_v17  ;;  %8219 = vmatpush1.bf16.msra.mxu0 %v8218_v53  ;;  %v8253_v17 = vpack.c.bf16 %v7000_v51, %v6999_v49  ;;  %v7002_v53 = vld [vmem:[%s12687_s8 + $0x208] sm:$0xff]  ;;  %v7041_v49 = vld [vmem:[%s12687_s8 + $0x2f0] sm:$0xff] }
 0x7b9   :  { %8187 = vmatprep.subr.bf16.mxu1 %v9040_v26  ;;  %8220 = vmatprep.subr.bf16.mxu0 %v9040_v26  ;;  %v8256_v57 = vpack.c.bf16 %v7002_v53, %v7001_v23  ;;  %v7044_v53 = vld [vmem:[%s12687_s8 + $0x308] sm:$0xff] }
 0x7bc   :  { %8189 = vmatpush1.bf16.msra.mxu1 %v8188_v25  ;;  %8222 = vmatpush1.bf16.msra.mxu0 %v8221_v24  ;;  %v7004_v25 = vld [vmem:[%s12687_s8 + $0x218] sm:$0xff]  ;;  %v4313_v24 = vld [vmem:[#allocation11 + $0x68] sm:$0xff] }
 0x7bd   :  { %4162 = vmatprep.subr.mxu1 %v9039_v63  ;;  %8223 = vmatprep.subr.bf16.mxu0 %v9040_v26  ;;  %v8259_v61 = vpack.c.bf16 %v7004_v25, %v7003_v58  ;;  %v7046_v58 = vld [vmem:[%s12687_s8 + $0x318] sm:$0xff] }
 0x7c0   :  { %4163 = vmatpush1.msra.mxu1 %v6971_v50  ;;  %8225 = vmatpush1.bf16.msra.mxu0 %v8224_v9  ;;  %v7006_v9 = vld [vmem:[%s12687_s8 + $0x228] sm:$0xff]  ;;  %v4314_v50 = vld [vmem:[#allocation11 + $0x70] sm:$0xff] }
 0x7c1   :  { %8227 = vmatprep.subr.bf16.mxu1 %v10988_v31  ;;  %4267 = vmatprep.subr.mxu0 %v9039_v63 }
 0x7c4   :  { %4268 = vmatpush1.msra.mxu0 %v3955_v0  ;;  %v8262_v0 = vpack.c.bf16 %v7006_v9, %v7005_v54 }
 0x7c5   :  { %8234 = vmatprep.subr.bf16.mxu0 %v9040_v26 }
 0x861   :  { %v3902_v30 = vpop.f32.mrb[70].mxu1  ;;  %v4043_v27 = vpop.f32.mrb[80].mxu0 }
 0x862   :  { %v3904_v4 = vpop.f32.mrb[71].mxu1  ;;  %v4045_v6 = vpop.f32.mrb[81].mxu0 }
 0x863   :  { %6972 = vmatprep.mubr.msk.f32.mxu1 %vm4098_vm11, %v4045_v6  ;;  %6977 = vmatprep.mubr.msk.f32.mxu0 %vm4098_vm11, %v3904_v4  ;;  %v4562_v4 = vld [vmem:[#allocation11 + $0x78] sm:$0xff] }
 0x864   :  { %4179 = vmatmul.mubr.f32.vlgmr.msra.gmra.mrb[80].mxu1 %v4043_v27  ;;  %4284 = vmatmul.mubr.f32.vlgmr.msra.gmra.mrb[90].mxu0 %v3902_v30  ;;  %v7022_v30 = vld [vmem:[%s12687_s8 + $0x258] sm:$0xff]  ;;  %v7023_v27 = vld [vmem:[%s12687_s8 + $0x260] sm:$0xff] }
 0x865   :  { %8229 = vmatpush1.bf16.msra.mxu1 %v10986_v29  ;;  %8236 = vmatpush1.bf16.msra.mxu0 %v8235_v34  ;;  %v4049_v37 = vpop.f32.mrb[82].mxu0  ;;  %v3908_v7 = vpop.f32.mrb[72].mxu1  ;;  %v8265_v34 = vpack.c.bf16 %v7008_v55, %v7007_v1  ;;  %v7009_v6 = vld [vmem:[%s12687_s8 + $0x240] sm:$0xff]  ;;  %v8279_v43 = vpack.c.bf16 %v7023_v27, %v7022_v30 }
 0x866   :  { %8231 = vmatprep.subr.bf16.mxu1 %v10996_v5  ;;  %v4051_v15 = vpop.f32.mrb[83].mxu0  ;;  %8237 = vmatprep.subr.bf16.mxu0 %v9040_v26  ;;  %v3910_v8 = vpop.f32.mrb[73].mxu1 }
 0x867   :  { %6973 = vmatprep.mubr.msk.f32.mxu1 %vm4098_vm11, %v4051_v15  ;;  %6978 = vmatprep.mubr.msk.f32.mxu0 %vm4098_vm11, %v3910_v8  ;;  %v4563_v15 = vld [vmem:[#allocation11 + $0x80] sm:$0xff] }
 0x868   :  { %4184 = vmatmul.mubr.f32.gmra.mrb[82].mxu1 %v4049_v37  ;;  %4289 = vmatmul.mubr.f32.gmra.mrb[92].mxu0 %v3908_v7  ;;  %v7024_v37 = vld [vmem:[%s12687_s8 + $0x268] sm:$0xff]  ;;  %v8268_v7 = vpack.c.bf16 %v7010_v33, %v7009_v6 }
 0x869   :  { %8233 = vmatpush1.bf16.msra.mxu1 %v10994_v47  ;;  %8239 = vmatpush1.bf16.msra.mxu0 %v8238_v38  ;;  %v4055_v28 = vpop.f32.mrb[84].mxu0  ;;  %v3914_v42 = vpop.f32.mrb[74].mxu1  ;;  %v7025_v38 = vld [vmem:[%s12687_s8 + $0x270] sm:$0xff] }
 0x86a   :  { %4338 = vmatprep.subr.mxu1 %v11000_v12  ;;  %v4057_v21 = vpop.f32.mrb[85].mxu0  ;;  %8240 = vmatprep.subr.bf16.mxu0 %v9040_v26  ;;  %v3916_v16 = vpop.f32.mrb[75].mxu1  ;;  %v8282_v8 = vpack.c.bf16 %v7025_v38, %v7024_v37 }
 0x86b   :  { %6974 = vmatprep.mubr.msk.f32.mxu1 %vm4098_vm11, %v4057_v21  ;;  %6979 = vmatprep.mubr.msk.f32.mxu0 %vm4098_vm11, %v3916_v16  ;;  %v4565_v21 = vld [vmem:[#allocation11 + $0x90] sm:$0xff]  ;;  %v4566_v16 = vld [vmem:[#allocation11 + $0x98] sm:$0xff] }
 0x86c   :  { %4189 = vmatmul.mubr.f32.gmra.mrb[84].mxu1 %v4055_v28  ;;  %4294 = vmatmul.mubr.f32.gmra.mrb[94].mxu0 %v3914_v42  ;;  %v4564_v28 = vld [vmem:[#allocation11 + $0x88] sm:$0xff]  ;;  %v8285_v42 = vpack.c.bf16 %v7027_v44, %v7026_v3 }
 0x86d   :  { %4339 = vmatpush1.msra.mxu1 %v11012_v36  ;;  %8242 = vmatpush1.bf16.msra.mxu0 %v8241_v13  ;;  %v4061_v32 = vpop.f32.mrb[86].mxu0  ;;  %v3920_v35 = vpop.f32.mrb[76].mxu1  ;;  %v7011_v13 = vld [vmem:[%s12687_s8 + $0x250] sm:$0xff] }
 0x86e   :  { %8271 = vmatprep.subr.bf16.mxu1 %v10988_v31  ;;  %v4063_v59 = vpop.f32.mrb[87].mxu0  ;;  %8243 = vmatprep.subr.bf16.mxu0 %v9040_v26  ;;  %v3922_v20 = vpop.f32.mrb[77].mxu1 }
 0x86f   :  { %6975 = vmatprep.mubr.msk.f32.mxu1 %vm4098_vm11, %v4063_v59  ;;  %6980 = vmatprep.mubr.msk.f32.mxu0 %vm4098_vm11, %v3922_v20  ;;  %v7032_v59 = vld [vmem:[%s12687_s8 + $0x2a8] sm:$0xff]  ;;  %v7033_v20 = vld [vmem:[%s12687_s8 + $0x2b0] sm:$0xff] }
 0x870   :  { %4194 = vmatmul.mubr.f32.gmra.mrb[86].mxu1 %v4061_v32  ;;  %4299 = vmatmul.mubr.f32.gmra.mrb[96].mxu0 %v3920_v35  ;;  %v8288_v32 = vpack.c.bf16 %v7029_v22, %v7028_v45  ;;  %v8294_v62 = vpack.c.bf16 %v7033_v20, %v7032_v59 }
 0x871   :  { %8245 = vmatpush1.bf16.msra.mxu0 %v8244_v10  ;;  %v4067_v40 = vpop.f32.mrb[88].mxu0  ;;  %v3926_v18 = vpop.f32.mrb[78].mxu1  ;;  %v7031_v10 = vld [vmem:[%s12687_s8 + $0x2a0] sm:$0xff] }
 0x872   :  { %v4069_v39 = vpop.f32.mrb[89].mxu0  ;;  %8246 = vmatprep.subr.bf16.mxu0 %v9040_v26  ;;  %v3928_v2 = vpop.f32.mrb[79].mxu1 }
 0x873   :  { %6976 = vmatprep.mubr.msk.f32.mxu1 %vm4098_vm11, %v4069_v39  ;;  %6981 = vmatprep.mubr.msk.f32.mxu0 %vm4098_vm11, %v3928_v2  ;;  %v7037_v39 = vld [vmem:[%s12687_s8 + $0x2d0] sm:$0xff] }
 0x874   :  { %4199 = vmatmul.mubr.f32.gmra.mrb[88].mxu1 %v4067_v40  ;;  %4304 = vmatmul.mubr.f32.gmra.mrb[98].mxu0 %v3926_v18  ;;  %v7035_v40 = vld [vmem:[%s12687_s8 + $0x2c0] sm:$0xff]  ;;  %v7036_v18 = vld [vmem:[%s12687_s8 + $0x2c8] sm:$0xff] }
 0x875   :  { %8248 = vmatpush1.bf16.msra.mxu0 %v8247_v14  ;;  %4394 = vmatprep.mubr.f32.mxu1 %v9039_v63  ;;  %v8297_v14 = vpack.c.bf16 %v7035_v40, %v7034_v60  ;;  %v8300_v2 = vpack.c.bf16 %v7037_v39, %v7036_v18  ;;  %v7060_v60 = vld [vmem:[%s12687_s8 + $0x338] sm:$0xff] }
 0x876   :  { %8249 = vmatprep.subr.bf16.mxu0 %v9040_v26 }
 0x878   :  { %6982 = vmatmul.mubr.msk.f32.vlgmr.msra.gmra.mrb[90].mxu1 %vm500_vm1, %v4310_v11  ;;  %v8303_v11 = vpack.c.bf16 %v7039_v48, %v7038_v41  ;;  %v7062_v41 = vld [vmem:[%s12687_s8 + $0x348] sm:$0xff] }
 0x879   :  { %8251 = vmatpush1.bf16.msra.mxu0 %v8250_v46  ;;  %8273 = vmatpush1.bf16.msra.mxu1 %v10986_v29  ;;  %v7040_v46 = vld [vmem:[%s12687_s8 + $0x2e8] sm:$0xff] }
 0x87a   :  { %8275 = vmatprep.subr.bf16.mxu1 %v10996_v5  ;;  %4400 = vmatprep.mubr.f32.mxu1 %v9039_v63  ;;  %v8306_v51 = vpack.c.bf16 %v7041_v49, %v7040_v46 }
 0x87b   :  { %8252 = vmatprep.subr.bf16.mxu0 %v9040_v26 }
 0x87c   :  { %6983 = vmatmul.mubr.msk.f32.gmra.mrb[92].mxu1 %vm500_vm1, %v4311_v52  ;;  %v7042_v52 = vld [vmem:[%s12687_s8 + $0x2f8] sm:$0xff] }
 0x87d   :  { %8254 = vmatpush1.bf16.msra.mxu0 %v8253_v17  ;;  %8277 = vmatpush1.bf16.msra.mxu1 %v10994_v47  ;;  %v7043_v17 = vld [vmem:[%s12687_s8 + $0x300] sm:$0xff] }
 0x87e   :  { %4590 = vmatprep.subr.mxu1 %v11000_v12  ;;  %4406 = vmatprep.mubr.f32.mxu1 %v9039_v63  ;;  %v8309_v23 = vpack.c.bf16 %v7043_v17, %v7042_v52  ;;  %v7064_v52 = vld [vmem:[%s12687_s8 + $0x358] sm:$0xff] }
 0x87f   :  { %8255 = vmatprep.subr.bf16.mxu0 %v9040_v26 }
 0x880   :  { %6984 = vmatmul.mubr.msk.f32.gmra.mrb[94].mxu1 %vm500_vm1, %v4312_v56  ;;  %v7045_v56 = vld [vmem:[%s12687_s8 + $0x310] sm:$0xff] }
 0x881   :  { %8257 = vmatpush1.bf16.msra.mxu0 %v8256_v57  ;;  %4591 = vmatpush1.msra.mxu1 %v11012_v36  ;;  %v8312_v57 = vpack.c.bf16 %v7045_v56, %v7044_v53 }
 0x882   :  { %4412 = vmatprep.mubr.f32.mxu1 %v9039_v63  ;;  %8258 = vmatprep.subr.bf16.mxu0 %v9040_v26 }
 0x883   :  { %8278 = vmatprep.subr.bf16.mxu1 %v9040_v26 }
 0x884   :  { %6985 = vmatmul.mubr.msk.f32.gmra.mrb[96].mxu1 %vm500_vm1, %v4313_v24 }
 0x885   :  { %8260 = vmatpush1.bf16.msra.mxu0 %v8259_v61  ;;  %4418 = vmatprep.mubr.f32.mxu1 %v9039_v63 }
 0x886   :  { %8261 = vmatprep.subr.bf16.mxu0 %v9040_v26 }
 0x888   :  { %6986 = vmatmul.mubr.msk.f32.gmra.mrb[98].mxu1 %vm500_vm1, %v4314_v50 }
 0x889   :  { %8263 = vmatpush1.bf16.msra.mxu0 %v8262_v0  ;;  %4646 = vmatprep.mubr.f32.mxu1 %v9039_v63 }
 0x88a   :  { %8264 = vmatprep.subr.bf16.mxu0 %v9040_v26 }
 0x88c   :  { %7017 = vmatmul.mubr.msk.f32.vlgmr.msra.gmra.mrb[100].mxu1 %vm500_vm1, %v4562_v4 }
 0x88d   :  { %8266 = vmatpush1.bf16.msra.mxu0 %v8265_v34  ;;  %4652 = vmatprep.mubr.f32.mxu1 %v9039_v63 }
 0x88e   :  { %8267 = vmatprep.subr.bf16.mxu0 %v9040_v26  ;;  %8280 = vmatpush1.bf16.msra.mxu1 %v8279_v43 }
 0x88f   :  { %8281 = vmatprep.subr.bf16.mxu1 %v9040_v26 }
 0x890   :  { %7018 = vmatmul.mubr.msk.f32.gmra.mrb[102].mxu1 %vm500_vm1, %v4563_v15 }
 0x891   :  { %8269 = vmatpush1.bf16.msra.mxu0 %v8268_v7  ;;  %4658 = vmatprep.mubr.f32.mxu1 %v9039_v63 }
 0x892   :  { %4514 = vmatprep.subr.mxu0 %v9039_v63  ;;  %8283 = vmatpush1.bf16.msra.mxu1 %v8282_v8 }
 0x893   :  { %8284 = vmatprep.subr.bf16.mxu1 %v9040_v26 }
 0x894   :  { %7019 = vmatmul.mubr.msk.f32.gmra.mrb[104].mxu1 %vm500_vm1, %v4564_v28 }
 0x895   :  { %4515 = vmatpush1.msra.mxu0 %v7011_v13  ;;  %4664 = vmatprep.mubr.f32.mxu1 %v9039_v63 }
 0x896   :  { %8315 = vmatprep.subr.bf16.mxu0 %v10988_v31  ;;  %8286 = vmatpush1.bf16.msra.mxu1 %v8285_v42  ;;  %v7030_v31 = vld [vmem:[%s12687_s8 + $0x298] sm:$0xff] }
 0x897   :  { %8287 = vmatprep.subr.bf16.mxu1 %v9040_v26  ;;  %v8291_v35 = vpack.c.bf16 %v7031_v10, %v7030_v31 }
 0x898   :  { %7020 = vmatmul.mubr.msk.f32.gmra.mrb[106].mxu1 %vm500_vm1, %v4565_v21 }
 0x899   :  { %4670 = vmatprep.mubr.f32.mxu1 %v9039_v63 }
 0x89a   :  { %8289 = vmatpush1.bf16.msra.mxu1 %v8288_v32 }
 0x89b   :  { %8290 = vmatprep.subr.bf16.mxu1 %v9040_v26 }
 0x89c   :  { %7021 = vmatmul.mubr.msk.f32.gmra.mrb[108].mxu1 %vm500_vm1, %v4566_v16 }
 0x89e   :  { %8292 = vmatpush1.bf16.msra.mxu1 %v8291_v35  ;;  %v4814_v35 = vld [vmem:[#allocation11 + $0xa0] sm:$0xff] }
 0x89f   :  { %8293 = vmatprep.subr.bf16.mxu1 %v9040_v26 }
 0x8a2   :  { %8295 = vmatpush1.bf16.msra.mxu1 %v8294_v62  ;;  %v7059_v62 = vld [vmem:[%s12687_s8 + $0x330] sm:$0xff] }
 0x8a3   :  { %8296 = vmatprep.subr.bf16.mxu1 %v9040_v26  ;;  %v8326_v18 = vpack.c.bf16 %v7060_v60, %v7059_v62 }
 0x8a6   :  { %8298 = vmatpush1.bf16.msra.mxu1 %v8297_v14  ;;  %v4815_v14 = vld [vmem:[#allocation11 + $0xa8] sm:$0xff] }
 0x8a7   :  { %8299 = vmatprep.subr.bf16.mxu1 %v9040_v26 }
 0x8aa   :  { %8301 = vmatpush1.bf16.msra.mxu1 %v8300_v2  ;;  %v7061_v2 = vld [vmem:[%s12687_s8 + $0x340] sm:$0xff] }
 0x8ab   :  { %8302 = vmatprep.subr.bf16.mxu1 %v9040_v26  ;;  %v8329_v46 = vpack.c.bf16 %v7062_v41, %v7061_v2 }
 0x8ae   :  { %8304 = vmatpush1.bf16.msra.mxu1 %v8303_v11  ;;  %v4816_v11 = vld [vmem:[#allocation11 + $0xb0] sm:$0xff] }
 0x8af   :  { %8305 = vmatprep.subr.bf16.mxu1 %v9040_v26 }
 0x8b2   :  { %8307 = vmatpush1.bf16.msra.mxu1 %v8306_v51  ;;  %v7063_v51 = vld [vmem:[%s12687_s8 + $0x350] sm:$0xff] }
 0x8b3   :  { %8308 = vmatprep.subr.bf16.mxu1 %v9040_v26  ;;  %v8332_v53 = vpack.c.bf16 %v7064_v52, %v7063_v51 }
 0x8b6   :  { %8310 = vmatpush1.bf16.msra.mxu1 %v8309_v23  ;;  %v4817_v23 = vld [vmem:[#allocation11 + $0xb8] sm:$0xff] }
 0x8b7   :  { %8311 = vmatprep.subr.bf16.mxu1 %v9040_v26 }
 0x8ba   :  { %8313 = vmatpush1.bf16.msra.mxu1 %v8312_v57  ;;  %v7065_v57 = vld [vmem:[%s12687_s8 + $0x360] sm:$0xff] }
 0x8bb   :  { %4766 = vmatprep.subr.mxu1 %v9039_v63 }
 0x8be   :  { %4767 = vmatpush1.msra.mxu1 %v7046_v58  ;;  %v7066_v58 = vld [vmem:[%s12687_s8 + $0x368] sm:$0xff] }
 0x937   :  { %v4180_v25 = vpop.f32.mrb[80].mxu1  ;;  %v4285_v24 = vpop.f32.mrb[90].mxu0 }
 0x938   :  { %v4182_v61 = vpop.f32.mrb[81].mxu1  ;;  %v11423_v54 = vadd.f32 %v4285_v24, %v4180_v25  ;;  %v4287_v9 = vpop.f32.mrb[91].mxu0  ;;  %v4818_v24 = vld [vmem:[#allocation11 + $0xc0] sm:$0xff] }
 0x939   :  { %v8335_v61 = vpack.c.bf16 %v7066_v58, %v7065_v57 }
 0x93b   :  { %v4185_v50 = vpop.f32.mrb[82].mxu1  ;;  %v4290_v0 = vpop.f32.mrb[92].mxu0 }
 0x93c   :  { %v4187_v1 = vpop.f32.mrb[83].mxu1  ;;  %v11425_v55 = vadd.f32 %v4290_v0, %v4185_v50  ;;  %v4292_v30 = vpop.f32.mrb[93].mxu0  ;;  %v7067_v50 = vld [vmem:[%s12687_s8 + $0x370] sm:$0xff]  ;;  %v7068_v0 = vld [vmem:[%s12687_s8 + $0x378] sm:$0xff] }
 0x93d   :  { %v8338_v1 = vpack.c.bf16 %v7068_v0, %v7067_v50  ;;  %v7069_v30 = vld [vmem:[%s12687_s8 + $0x380] sm:$0xff]  ;;  %v9041_v0 = vmov 1983009808  }
 0x93f   :  { %v4190_v27 = vpop.f32.mrb[84].mxu1  ;;  %v4295_v34 = vpop.f32.mrb[94].mxu0 }
 0x940   :  { %v4192_v4 = vpop.f32.mrb[85].mxu1  ;;  %v11427_v6 = vadd.f32 %v4295_v34, %v4190_v27  ;;  %v4297_v33 = vpop.f32.mrb[95].mxu0  ;;  %v7070_v27 = vld [vmem:[%s12687_s8 + $0x388] sm:$0xff] }
 0x941   :  { %v8341_v34 = vpack.c.bf16 %v7070_v27, %v7069_v30  ;;  %v7071_v4 = vld [vmem:[%s12687_s8 + $0x390] sm:$0xff]  ;;  %v7072_v33 = vld [vmem:[%s12687_s8 + $0x398] sm:$0xff] }
 0x943   :  { %v4195_v43 = vpop.f32.mrb[86].mxu1  ;;  %v4300_v37 = vpop.f32.mrb[96].mxu0 }
 0x944   :  { %v4197_v38 = vpop.f32.mrb[87].mxu1  ;;  %v11429_v7 = vadd.f32 %v4300_v37, %v4195_v43  ;;  %v4302_v15 = vpop.f32.mrb[97].mxu0  ;;  %v8344_v43 = vpack.c.bf16 %v7072_v33, %v7071_v4  ;;  %v7073_v37 = vld [vmem:[%s12687_s8 + $0x3a0] sm:$0xff] }
 0x945   :  { %v7074_v38 = vld [vmem:[%s12687_s8 + $0x3a8] sm:$0xff] }
 0x946   :  { %v8347_v15 = vpack.c.bf16 %v7074_v38, %v7073_v37  ;;  %v5523_v37 = vld [vmem:[%s12689_s10 + $0x80] sm:$0xff]  ;;  %v5524_v38 = vld [vmem:[%s12689_s10 + $0x88] sm:$0xff] }
 0x947   :  { %v4200_v8 = vpop.f32.mrb[88].mxu1  ;;  %v4305_v3 = vpop.f32.mrb[98].mxu0 }
 0x948   :  { %v4202_v44 = vpop.f32.mrb[89].mxu1  ;;  %v11431_v28 = vadd.f32 %v4305_v3, %v4200_v8  ;;  %v4307_v13 = vpop.f32.mrb[99].mxu0  ;;  %v7075_v8 = vld [vmem:[%s12687_s8 + $0x3b0] sm:$0xff]  ;;  %v7076_v3 = vld [vmem:[%s12687_s8 + $0x3b8] sm:$0xff] }
 0x949   :  { %v8350_v44 = vpack.c.bf16 %v7076_v3, %v7075_v8  ;;  %v7077_v13 = vld [vmem:[%s12687_s8 + $0x3c0] sm:$0xff]  ;;  %v8358_v8 = vpack.c.bf16 %v5524_v38, %v5523_v37 }
 0x94b   :  { %v4396_v42 = vpop.f32.mrb[90].mxu1  ;;  %8359 = vmatprep.subr.bf16.mxu1 %v8358_v8  ;;  %v5533_v8 = vld [vmem:[%s12689_s10 + $0xd0] sm:$0xff] }
 0x94c   :  { %v4398_v21 = vpop.f32.mrb[91].mxu1 }
 0x94d   :  { %7012 = vmatprep.mubr.msk.f32.mxu0 %vm4098_vm11, %v4398_v21 }
 0x94e   :  { %4531 = vmatmul.mubr.f32.vlgmr.msra.gmra.mrb[100].mxu0 %v4396_v42  ;;  %v7078_v42 = vld [vmem:[%s12687_s8 + $0x3c8] sm:$0xff] }
 0x94f   :  { %8317 = vmatpush1.bf16.msra.mxu0 %v10986_v29  ;;  %v4402_v16 = vpop.f32.mrb[92].mxu1  ;;  %v8353_v21 = vpack.c.bf16 %v7078_v42, %v7077_v13 }
 0x950   :  { %8319 = vmatprep.subr.bf16.mxu0 %v10996_v5  ;;  %v4404_v45 = vpop.f32.mrb[93].mxu1 }
 0x951   :  { %7013 = vmatprep.mubr.msk.f32.mxu0 %vm4098_vm11, %v4404_v45  ;;  %v7080_v45 = vld [vmem:[%s12687_s8 + $0x3d8] sm:$0xff] }
 0x952   :  { %4536 = vmatmul.mubr.f32.gmra.mrb[102].mxu0 %v4402_v16  ;;  %v7079_v16 = vld [vmem:[%s12687_s8 + $0x3d0] sm:$0xff] }
 0x953   :  { %8321 = vmatpush1.bf16.msra.mxu0 %v10994_v47  ;;  %v4408_v22 = vpop.f32.mrb[94].mxu1  ;;  %v7057_v47 = vld [vmem:[%s12687_s8 + $0x320] sm:$0xff] }
 0x954   :  { %4842 = vmatprep.subr.mxu0 %v11000_v12  ;;  %v4410_v32 = vpop.f32.mrb[95].mxu1  ;;  %v7058_v12 = vld [vmem:[%s12687_s8 + $0x328] sm:$0xff] }
 0x955   :  { %7014 = vmatprep.mubr.msk.f32.mxu0 %vm4098_vm11, %v4410_v32  ;;  %v8323_v59 = vpack.c.bf16 %v7058_v12, %v7057_v47  ;;  %v7081_v32 = vld [vmem:[%s12687_s8 + $0x3e0] sm:$0xff]  ;;  %s7088_s8 = sld [smem:[#allocation3 + $0x2]] }
 0x956   :  { %4541 = vmatmul.mubr.f32.gmra.mrb[104].mxu0 %v4408_v22  ;;  %v8356_v22 = vpack.c.bf16 %v7080_v45, %v7079_v16  ;;  %v5507_v16 = vld [vmem:[%s12689_s10] sm:$0xff]  ;;  %v5508_v45 = vld [vmem:[%s12689_s10 + $0x8] sm:$0xff] }
 0x957   :  { %4843 = vmatpush1.msra.mxu0 %v11012_v36  ;;  %v4414_v31 = vpop.f32.mrb[96].mxu1 }
 0x958   :  { %v4416_v29 = vpop.f32.mrb[97].mxu1  ;;  %8322 = vmatprep.subr.bf16.mxu0 %v9040_v26 }
 0x959   :  { %7015 = vmatprep.mubr.msk.f32.mxu0 %vm4098_vm11, %v4416_v29 }
 0x95a   :  { %4546 = vmatmul.mubr.f32.gmra.mrb[106].mxu0 %v4414_v31 }
 0x95b   :  { %v4420_v5 = vpop.f32.mrb[98].mxu1 }
 0x95c   :  { %v4422_v10 = vpop.f32.mrb[99].mxu1 }
 0x95d   :  { %7016 = vmatprep.mubr.msk.f32.mxu0 %vm4098_vm11, %v4422_v10 }
 0x95e   :  { %4551 = vmatmul.mubr.f32.gmra.mrb[108].mxu0 %v4420_v5 }
 0x95f   :  { %v4648_v36 = vpop.f32.mrb[100].mxu1  ;;  %4898 = vmatprep.mubr.f32.mxu0 %v9039_v63 }
 0x960   :  { %v4650_v20 = vpop.f32.mrb[101].mxu1 }
 0x961   :  { %7047 = vmatprep.mubr.msk.f32.mxu1 %vm4098_vm11, %v4650_v20 }
 0x962   :  { %4783 = vmatmul.mubr.f32.vlgmr.msra.gmra.mrb[110].mxu1 %v4648_v36  ;;  %7052 = vmatmul.mubr.msk.f32.vlgmr.msra.gmra.mrb[110].mxu0 %vm500_vm1, %v4814_v35 }
 0x963   :  { %v4654_v40 = vpop.f32.mrb[102].mxu1  ;;  %4904 = vmatprep.mubr.f32.mxu0 %v9039_v63  ;;  %8324 = vmatpush1.bf16.msra.mxu0 %v8323_v59 }
 0x964   :  { %v4656_v39 = vpop.f32.mrb[103].mxu1  ;;  %8325 = vmatprep.subr.bf16.mxu0 %v9040_v26 }
 0x965   :  { %7048 = vmatprep.mubr.msk.f32.mxu1 %vm4098_vm11, %v4656_v39 }
 0x966   :  { %4788 = vmatmul.mubr.f32.gmra.mrb[112].mxu1 %v4654_v40  ;;  %7053 = vmatmul.mubr.msk.f32.gmra.mrb[112].mxu0 %vm500_vm1, %v4815_v14 }
 0x967   :  { %v4660_v48 = vpop.f32.mrb[104].mxu1  ;;  %4910 = vmatprep.mubr.f32.mxu0 %v9039_v63  ;;  %8327 = vmatpush1.bf16.msra.mxu0 %v8326_v18 }
 0x968   :  { %v4662_v49 = vpop.f32.mrb[105].mxu1  ;;  %8328 = vmatprep.subr.bf16.mxu0 %v9040_v26 }
 0x969   :  { %7049 = vmatprep.mubr.msk.f32.mxu1 %vm4098_vm11, %v4662_v49 }
 0x96a   :  { %4793 = vmatmul.mubr.f32.gmra.mrb[114].mxu1 %v4660_v48  ;;  %7054 = vmatmul.mubr.msk.f32.gmra.mrb[114].mxu0 %vm500_vm1, %v4816_v11 }
 0x96b   :  { %v4666_v17 = vpop.f32.mrb[106].mxu1  ;;  %4916 = vmatprep.mubr.f32.mxu0 %v9039_v63  ;;  %8330 = vmatpush1.bf16.msra.mxu0 %v8329_v46 }
 0x96c   :  { %v4668_v56 = vpop.f32.mrb[107].mxu1  ;;  %8331 = vmatprep.subr.bf16.mxu0 %v9040_v26 }
 0x96d   :  { %7050 = vmatprep.mubr.msk.f32.mxu1 %vm4098_vm11, %v4668_v56 }
 0x96e   :  { %4798 = vmatmul.mubr.f32.gmra.mrb[116].mxu1 %v4666_v17  ;;  %7055 = vmatmul.mubr.msk.f32.gmra.mrb[116].mxu0 %vm500_vm1, %v4817_v23 }
 0x96f   :  { %v4672_v25 = vpop.f32.mrb[108].mxu1  ;;  %4922 = vmatprep.mubr.f32.mxu0 %v9039_v63  ;;  %8333 = vmatpush1.bf16.msra.mxu0 %v8332_v53 }
 0x970   :  { %v4674_v9 = vpop.f32.mrb[109].mxu1  ;;  %8334 = vmatprep.subr.bf16.mxu0 %v9040_v26 }
 0x971   :  { %7051 = vmatprep.mubr.msk.f32.mxu1 %vm4098_vm11, %v4674_v9 }
 0x972   :  { %4803 = vmatmul.mubr.f32.gmra.mrb[118].mxu1 %v4672_v25  ;;  %7056 = vmatmul.mubr.msk.f32.gmra.mrb[118].mxu0 %vm500_vm1, %v4818_v24 }
 0x973   :  { %8336 = vmatpush1.bf16.msra.mxu0 %v8335_v61 }
 0x974   :  { %8337 = vmatprep.subr.bf16.mxu0 %v9040_v26 }
 0x977   :  { %8339 = vmatpush1.bf16.msra.mxu0 %v8338_v1  ;;  %v5098_v1 = vunpack.c.l.s4 %v9041_v0 }
 0x978   :  { %8340 = vmatprep.subr.bf16.mxu0 %v9040_v26 }
 0x979   :  { %v5099_v30 = vunpack.c.0.s8 %v5098_v1 }
 0x97b   :  { %8342 = vmatpush1.bf16.msra.mxu0 %v8341_v34  ;;  %v11558_v34 = vld [vmem:[#allocation13] ss:$0 sm:$0xff]  ;;  %v11570_v3 = vsub.s32 %v5099_v30, %v10023_v19  ;;  %v5525_v19 = vld [vmem:[%s12689_s10 + $0x90] sm:$0xff]  ;;  %v5531_v30 = vld [vmem:[%s12689_s10 + $0xc0] sm:$0xff] }
 0x97c   :  { %8343 = vmatprep.subr.bf16.mxu0 %v9040_v26 }
 0x97f   :  { %8345 = vmatpush1.bf16.msra.mxu0 %v8344_v43  ;;  %v11560_v43 = vstv %s7088_s8 }
 0x980   :  { %8346 = vmatprep.subr.bf16.mxu0 %v9040_v26 }
 0x983   :  { %8348 = vmatpush1.bf16.msra.mxu0 %v8347_v15 }
 0x984   :  { %8349 = vmatprep.subr.bf16.mxu0 %v9040_v26 }
 0x987   :  { %8351 = vmatpush1.bf16.msra.mxu0 %v8350_v44 }
 0x988   :  { %8352 = vmatprep.subr.bf16.mxu0 %v9040_v26 }
 0x98b   :  { %8354 = vmatpush1.bf16.msra.mxu0 %v8353_v21 }
 0x98c   :  { %8355 = vmatprep.subr.bf16.mxu0 %v9040_v26 }
 0x98f   :  { %8357 = vmatpush1.bf16.msra.mxu0 %v8356_v22  ;;  %v8360_v22 = vpack.c.bf16 %v5508_v45, %v5507_v16  ;;  %v5587_v16 = vld [vmem:[%s12689_s10 + $0x280] sm:$0xff]  ;;  %v5588_v45 = vld [vmem:[%s12689_s10 + $0x288] sm:$0xff] }
 0x990   :  { %5018 = vmatprep.subr.mxu0 %v9039_v63 }
 0x991   :  { %8361 = vmatpush3.bf16.msra.mxu1 %v8360_v22  ;;  %v5518_v22 = vld [vmem:[%s12689_s10 + $0x58] sm:$0xff] }
 0x993   :  { %5019 = vmatpush1.msra.mxu0 %v7081_v32  ;;  %v5526_v32 = vld [vmem:[%s12689_s10 + $0x98] sm:$0xff] }
 0xa21   :  { %v4532_v31 = vpop.f32.mrb[100].mxu0 }
 0xa22   :  { %v4556_v29 = vadd.f32 %v4532_v31, %v11423_v54  ;;  %v4534_v5 = vpop.f32.mrb[101].mxu0  ;;  %v5509_v31 = vld [vmem:[%s12689_s10 + $0x10] sm:$0xff] }
 0xa25   :  { %v4537_v10 = vpop.f32.mrb[102].mxu0 }
 0xa26   :  { %v4557_v47 = vadd.f32 %v4537_v10, %v11425_v55  ;;  %v4539_v12 = vpop.f32.mrb[103].mxu0  ;;  %v8362_v10 = vpack.c.bf16 %v5526_v32, %v5525_v19  ;;  %v5517_v19 = vld [vmem:[%s12689_s10 + $0x50] sm:$0xff]  ;;  %v5571_v32 = vld [vmem:[%s12689_s10 + $0x200] sm:$0xff] }
 0xa28   :  { %8363 = vmatprep.subr.bf16.mxu1 %v8362_v10 }
 0xa29   :  { %v4542_v36 = vpop.f32.mrb[104].mxu0 }
 0xa2a   :  { %v4558_v35 = vadd.f32 %v4542_v36, %v11427_v6  ;;  %v4544_v59 = vpop.f32.mrb[105].mxu0 }
 0xa2d   :  { %v4547_v20 = vpop.f32.mrb[106].mxu0 }
 0xa2e   :  { %v4559_v62 = vadd.f32 %v4547_v20, %v11429_v7  ;;  %v4549_v60 = vpop.f32.mrb[107].mxu0 }
 0xa31   :  { %v4552_v40 = vpop.f32.mrb[108].mxu0 }
 0xa32   :  { %v4560_v14 = vadd.f32 %v4552_v40, %v11431_v28  ;;  %v4554_v18 = vpop.f32.mrb[109].mxu0 }
 0xa33   :  { %v5528_v18 = vld [vmem:[%s12689_s10 + $0xa8] sm:$0xff] }
 0xa35   :  { %v4784_v39 = vpop.f32.mrb[110].mxu1  ;;  %v4900_v2 = vpop.f32.mrb[110].mxu0 }
 0xa36   :  { %v4808_v54 = vadd.f32 %v4784_v39, %v4556_v29  ;;  %v4902_v41 = vpop.f32.mrb[111].mxu0  ;;  %v4786_v48 = vpop.f32.mrb[111].mxu1  ;;  %v5510_v29 = vld [vmem:[%s12689_s10 + $0x18] sm:$0xff] }
 0xa37   :  { %7082 = vmatprep.mubr.msk.f32.mxu0 %vm4098_vm11, %v4902_v41  ;;  %v8364_v59 = vpack.c.bf16 %v5510_v29, %v5509_v31  ;;  %v5511_v41 = vld [vmem:[%s12689_s10 + $0x20] sm:$0xff]  ;;  %v5512_v48 = vld [vmem:[%s12689_s10 + $0x28] sm:$0xff]  ;;  %v8422_v29 = vpack.c.bf16 %v5588_v45, %v5587_v16 }
 0xa38   :  { %5035 = vmatmul.mubr.f32.vlgmr.msra.gmra.mrb[120].mxu0 %v4900_v2  ;;  %v5580_v16 = vld [vmem:[%s12689_s10 + $0x248] sm:$0xff] }
 0xa39   :  { %v4789_v55 = vpop.f32.mrb[112].mxu1  ;;  %v4906_v11 = vpop.f32.mrb[112].mxu0  ;;  %8365 = vmatpush3.bf16.msra.mxu1 %v8364_v59  ;;  %8423 = vmatprep.subr.bf16.mxu0 %v8422_v29  ;;  %v5598_v29 = vld [vmem:[%s12689_s10 + $0x2d8] sm:$0xff] }
 0xa3a   :  { %v4809_v6 = vadd.f32 %v4789_v55, %v4557_v47  ;;  %v4908_v46 = vpop.f32.mrb[113].mxu0  ;;  %v4791_v49 = vpop.f32.mrb[113].mxu1 }
 0xa3b   :  { %7083 = vmatprep.mubr.msk.f32.mxu0 %vm4098_vm11, %v4908_v46  ;;  %v8368_v49 = vpack.c.bf16 %v5512_v48, %v5511_v41 }
 0xa3c   :  { %5040 = vmatmul.mubr.f32.gmra.mrb[122].mxu0 %v4906_v11 }
 0xa3d   :  { %v4794_v7 = vpop.f32.mrb[114].mxu1  ;;  %v4912_v51 = vpop.f32.mrb[114].mxu0 }
 0xa3e   :  { %v4810_v28 = vadd.f32 %v4794_v7, %v4558_v35  ;;  %v4914_v52 = vpop.f32.mrb[115].mxu0  ;;  %v4796_v17 = vpop.f32.mrb[115].mxu1 }
 0xa3f   :  { %7084 = vmatprep.mubr.msk.f32.mxu0 %vm4098_vm11, %v4914_v52  ;;  %v5529_v52 = vld [vmem:[%s12689_s10 + $0xb0] sm:$0xff]  ;;  %v5530_v17 = vld [vmem:[%s12689_s10 + $0xb8] sm:$0xff] }
 0xa40   :  { %5045 = vmatmul.mubr.f32.gmra.mrb[124].mxu0 %v4912_v51 }
 0xa41   :  { %v4799_v23 = vpop.f32.mrb[116].mxu1  ;;  %v4918_v53 = vpop.f32.mrb[116].mxu0 }
 0xa42   :  { %v4811_v56 = vadd.f32 %v4799_v23, %v4559_v62  ;;  %v4920_v57 = vpop.f32.mrb[117].mxu0  ;;  %v4801_v58 = vpop.f32.mrb[117].mxu1 }
 0xa43   :  { %7085 = vmatprep.mubr.msk.f32.mxu0 %vm4098_vm11, %v4920_v57  ;;  %v5513_v58 = vld [vmem:[%s12689_s10 + $0x30] sm:$0xff] }
 0xa44   :  { %5050 = vmatmul.mubr.f32.gmra.mrb[126].mxu0 %v4918_v53 }
 0xa45   :  { %v4804_v25 = vpop.f32.mrb[118].mxu1  ;;  %v4924_v24 = vpop.f32.mrb[118].mxu0 }
 0xa46   :  { %v11555_v61 = vadd.f32 %v4804_v25, %v4560_v14  ;;  %v4926_v9 = vpop.f32.mrb[119].mxu0  ;;  %v4806_v50 = vpop.f32.mrb[119].mxu1  ;;  %v5527_v14 = vld [vmem:[%s12689_s10 + $0xa0] sm:$0xff]  ;;  %v5514_v25 = vld [vmem:[%s12689_s10 + $0x38] sm:$0xff] }
 0xa47   :  { %7086 = vmatprep.mubr.msk.f32.mxu0 %vm4098_vm11, %v4926_v9  ;;  %v8366_v11 = vpack.c.bf16 %v5528_v18, %v5527_v14  ;;  %v8372_v1 = vpack.c.bf16 %v5514_v25, %v5513_v58  ;;  %v5573_v18 = vld [vmem:[%s12689_s10 + $0x210] sm:$0xff] }
 0xa48   :  { %5055 = vmatmul.mubr.f32.gmra.mrb[128].mxu0 %v4924_v24  ;;  %v8370_v24 = vpack.c.bf16 %v5530_v17, %v5529_v52  ;;  %v5522_v52 = vld [vmem:[%s12689_s10 + $0x78] sm:$0xff]  ;;  %v5575_v17 = vld [vmem:[%s12689_s10 + $0x220] sm:$0xff] }
 0xa49   :  { %8367 = vmatprep.subr.bf16.mxu1 %v8366_v11  ;;  %v5591_v11 = vld [vmem:[%s12689_s10 + $0x2a0] sm:$0xff] }
 0xa4a   :  { %8369 = vmatpush3.bf16.msra.mxu1 %v8368_v49  ;;  %v5521_v49 = vld [vmem:[%s12689_s10 + $0x70] sm:$0xff] }
 0xa4b   :  { %8371 = vmatprep.subr.bf16.mxu1 %v8370_v24  ;;  %v8388_v24 = vpack.c.bf16 %v5522_v52, %v5521_v49 }
 0xa4e   :  { %8373 = vmatpush3.bf16.msra.mxu1 %v8372_v1 }
 0xb0b   :  { %v5036_v27 = vpop.f32.mrb[120].mxu0 }
 0xb0c   :  { %v5060_v4 = vadd.f32 %v5036_v27, %v4808_v54  ;;  %v5038_v33 = vpop.f32.mrb[121].mxu0  ;;  %v5532_v27 = vld [vmem:[%s12689_s10 + $0xc8] sm:$0xff] }
 0xb0d   :  { %v5516_v33 = vld [vmem:[%s12689_s10 + $0x48] sm:$0xff] }
 0xb0e   :  { %v5072_v15 = vadd.f32 %v11558_v34, %v5060_v4  ;;  %v5515_v4 = vld [vmem:[%s12689_s10 + $0x40] sm:$0xff] }
 0xb0f   :  { %v5041_v44 = vpop.f32.mrb[122].mxu0 }
 0xb10   :  { %vm5078_vm1 = vcmp.ge.f32.partialorder %v5072_v15, 0.0  ;;  %v5084_v13 = vmul.f32 %v11560_v43, %v5072_v15  ;;  %v11573_v42 = vadd.f32 %v5041_v44, %v4809_v6  ;;  %v5043_v21 = vpop.f32.mrb[123].mxu0  ;;  %v5534_v44 = vld [vmem:[%s12689_s10 + $0xd8] sm:$0xff] }
 0xb11   :  { %v8376_v21 = vpack.c.bf16 %v5516_v33, %v5515_v4  ;;  %v8378_v31 = vpack.c.bf16 %v5534_v44, %v5533_v8  ;;  %v5577_v4 = vld [vmem:[%s12689_s10 + $0x230] sm:$0xff]  ;;  %v5578_v33 = vld [vmem:[%s12689_s10 + $0x238] sm:$0xff]  ;;  %v5595_v8 = vld [vmem:[%s12689_s10 + $0x2c0] sm:$0xff] }
 0xb12   :  { %v5089_v5 = vsel %vm5078_vm1, %v5072_v15, %v5084_v13  ;;  %v8374_v13 = vpack.c.bf16 %v5532_v27, %v5531_v30  ;;  %v5073_v59 = vadd.f32 %v11558_v34, %v11573_v42  ;;  %v5520_v42 = vld [vmem:[%s12689_s10 + $0x68] sm:$0xff]  ;;  %vm5135_vm1 = vcmask 124930  }
 0xb13   :  { %v5046_v47 = vpop.f32.mrb[124].mxu0  ;;  %v5103_v12 = vrot.slane %v5089_v5, %v11570_v3  ;;  %5095 = vst.msk [vmem:[#allocation2] sm:$0x1] %vm5094_vm12, %v5089_v5  ;;  %v5138_v51 = vcombine.high %v5089_v5, %v5089_v5  ;;  %v5572_v5 = vld [vmem:[%s12689_s10 + $0x208] sm:$0xff] }
 0xb14   :  { %v5062_v36 = vadd.f32 %v5046_v47, %v4810_v28  ;;  %v5048_v35 = vpop.f32.mrb[125].mxu0  ;;  %8375 = vmatprep.subr.bf16.mxu1 %v8374_v13  ;;  %v8380_v47 = vpack.c.bf16 %v5518_v22, %v5517_v19  ;;  %vm5079_vm15 = vcmp.ge.f32.partialorder %v5073_v59, 0.0  ;;  %v5596_v44 = vld [vmem:[%s12689_s10 + $0x2c8] sm:$0xff] }
 0xb15   :  { %v5116_v20 = vcombine.high %v5103_v12, %v5103_v12  ;;  %v7089_v62 = vrot.slane %v5103_v12, 9  ;;  %v5145_v0 = vrot.slane %v5138_v51, %v11570_v3  ;;  %8377 = vmatpush3.bf16.msra.mxu1 %v8376_v21  ;;  %v8424_v12 = vpack.c.bf16 %v5572_v5, %v5571_v32  ;;  %v5536_v35 = vld [vmem:[%s12689_s10 + $0xe8] sm:$0xff]  ;;  %v5579_v21 = vld [vmem:[%s12689_s10 + $0x240] sm:$0xff]  ;;  %v5597_v32 = vld [vmem:[%s12689_s10 + $0x2d0] sm:$0xff] }
 0xb16   :  { %v5074_v60 = vadd.f32 %v11558_v34, %v5062_v36  ;;  %v5535_v36 = vld [vmem:[%s12689_s10 + $0xe0] sm:$0xff]  ;;  %8379 = vmatprep.subr.bf16.mxu1 %v8378_v31  ;;  %v8438_v13 = vpack.c.bf16 %v5596_v44, %v5595_v8  ;;  %v8440_v45 = vpack.c.bf16 %v5580_v16, %v5579_v21  ;;  %v8442_v5 = vpack.c.bf16 %v5598_v29, %v5597_v32 }
 0xb17   :  { %5117 = vrot.lane.b32.xlu1 %v5116_v20, %s9042_s7  ;;  %5106 = vrot.lane.b32.xlu0 %v7089_v62, %s9043_s13  ;;  %v5051_v40 = vpop.f32.mrb[126].mxu0  ;;  %v7090_v55 = vrot.slane %v5116_v20, 9  ;;  %v7091_v15 = vrot.slane %v5145_v0, 9  ;;  %v5589_v20 = vld [vmem:[%s12689_s10 + $0x290] sm:$0xff]  ;;  %v5590_v62 = vld [vmem:[%s12689_s10 + $0x298] sm:$0xff]  ;;  %v5163_v41 = vcombine.high %v5145_v0, %v5145_v0 }
 0xb18   :  { %vm5080_vm13 = vcmp.ge.f32.partialorder %v5074_v60, 0.0  ;;  %v5086_v39 = vmul.f32 %v11560_v43, %v5074_v60  ;;  %v5063_v2 = vadd.f32 %v5051_v40, %v4811_v56  ;;  %v5053_v54 = vpop.f32.mrb[127].mxu0  ;;  %v8382_v40 = vpack.c.bf16 %v5536_v35, %v5535_v36  ;;  %8425 = vmatpush3.bf16.msra.mxu0 %v8424_v12  ;;  %v5600_v35 = vld [vmem:[%s12689_s10 + $0x2e8] sm:$0xff] }
 0xb19   :  { %v8426_v14 = vpack.c.bf16 %v5590_v62, %v5589_v20  ;;  %v5538_v54 = vld [vmem:[%s12689_s10 + $0xf8] sm:$0xff]  ;;  %8381 = vmatpush3.bf16.msra.mxu1 %v8380_v47  ;;  %v5583_v62 = vld [vmem:[%s12689_s10 + $0x260] sm:$0xff] }
 0xb1a   :  { %v11611_v6 = vsel %vm5080_vm13, %v5074_v60, %v5086_v39  ;;  %v5075_v46 = vadd.f32 %v11558_v34, %v5063_v2  ;;  %v5519_v60 = vld [vmem:[%s12689_s10 + $0x60] sm:$0xff]  ;;  %v5574_v39 = vld [vmem:[%s12689_s10 + $0x218] sm:$0xff]  ;;  %v5537_v2 = vld [vmem:[%s12689_s10 + $0xf0] sm:$0xff]  ;;  %8383 = vmatprep.subr.bf16.mxu1 %v8382_v40 }
 0xb1b   :  { %v5330_v7 = vcombine.high %v11611_v6, %v11611_v6  ;;  %5128 = vrot.lane.b32.xlu0 %v7090_v55, %s9044_s5  ;;  %v5056_v28 = vpop.f32.mrb[128].mxu0  ;;  %8427 = vmatprep.subr.bf16.mxu0 %v8426_v14  ;;  %v8384_v48 = vpack.c.bf16 %v5520_v42, %v5519_v60  ;;  %v8428_v55 = vpack.c.bf16 %v5574_v39, %v5573_v18  ;;  %v5582_v47 = vld [vmem:[%s12689_s10 + $0x258] sm:$0xff]  ;;  %v5584_v60 = vld [vmem:[%s12689_s10 + $0x268] sm:$0xff]  ;;  %v5601_v18 = vld [vmem:[%s12689_s10 + $0x2f0] sm:$0xff] }
 0xb1c   :  { %v5087_v23 = vmul.f32 %v11560_v43, %v5075_v46  ;;  %v11625_v53 = vadd.f32 %v5056_v28, %v11555_v61  ;;  %v5058_v56 = vpop.f32.mrb[129].mxu0  ;;  %vm5081_vm14 = vcmp.ge.f32.partialorder %v5075_v46, 0.0  ;;  %v8386_v51 = vpack.c.bf16 %v5538_v54, %v5537_v2  ;;  %v5602_v2 = vld [vmem:[%s12689_s10 + $0x2f8] sm:$0xff]  ;;  %vm11843_vm13 = vmor %vm5135_vm1, %vm5134_vm10 }
 0xb1d   :  { %v5337_v57 = vrot.slane %v5330_v7, %v11570_v3  ;;  %v5085_v7 = vmul.f32 %v11560_v43, %v5073_v59  ;;  %8429 = vmatpush3.bf16.msra.mxu0 %v8428_v55  ;;  %8385 = vmatpush3.bf16.msra.mxu1 %v8384_v48  ;;  %v8448_v40 = vpack.c.bf16 %v5584_v60, %v5583_v62  ;;  %v5586_v48 = vld [vmem:[%s12689_s10 + $0x278] sm:$0xff]  ;;  %vm5183_vm10 = vcmask 256002  }
 0xb1e   :  { %v11636_v61 = vsel %vm5081_vm14, %v5075_v46, %v5087_v23  ;;  %v5592_v46 = vld [vmem:[%s12689_s10 + $0x2a8] sm:$0xff]  ;;  %8387 = vmatprep.subr.bf16.mxu1 %v8386_v51  ;;  %v5076_v31 = vadd.f32 %v11558_v34, %v11625_v53  ;;  %v5599_v34 = vld [vmem:[%s12689_s10 + $0x2e0] sm:$0xff]  ;;  %v8450_v54 = vpack.c.bf16 %v5602_v2, %v5601_v18  ;;  %vm5159_vm14 = vcmask 1041312  }
 0xb1f   :  { %v5348_v9 = vcombine.high %v5337_v57, %v5337_v57  ;;  %v7099_v50 = vrot.slane %v5337_v57, 9  ;;  %5339 = vst.msk [vmem:[#allocation2 + $0x1] sm:$0x1] %vm5094_vm12, %v5337_v57  ;;  %v11654_v37 = vrot.slane %v11636_v61, %v11570_v3  ;;  %v8430_v28 = vpack.c.bf16 %v5592_v46, %v5591_v11  ;;  %v5576_v23 = vld [vmem:[%s12689_s10 + $0x228] sm:$0xff]  ;;  %v5651_v11 = vld [vmem:[%s12689_s10 + $0x480] sm:$0xff] }
 0xb20   :  { %v8432_v56 = vpack.c.bf16 %v5576_v23, %v5575_v17  ;;  %v7092_v57 = vrot.slane %v5163_v41, 9  ;;  %v5398_v25 = vcombine.high %v11636_v61, %v11636_v61  ;;  %v11747_v1 = vsel %vm5079_vm15, %v5073_v59, %v5085_v7  ;;  %v5594_v61 = vld [vmem:[%s12689_s10 + $0x2b8] sm:$0xff]  ;;  %v5652_v7 = vld [vmem:[%s12689_s10 + $0x488] sm:$0xff] }
 0xb21   :  { %5349 = vrot.lane.b32.xlu1 %v5348_v9, %s9042_s7  ;;  %5342 = vrot.lane.b32.xlu0 %v7099_v50, %s9043_s13  ;;  %v7100_v38 = vrot.slane %v5348_v9, 9  ;;  %v7101_v10 = vrot.slane %v11654_v37, 9  ;;  %v5383_v58 = vcombine.high %v11654_v37, %v11654_v37  ;;  %v5555_v9 = vld [vmem:[%s12689_s10 + $0x180] sm:$0xff]  ;;  %v5556_v50 = vld [vmem:[%s12689_s10 + $0x188] sm:$0xff]  ;;  %v5088_v59 = vmul.f32 %v11560_v43, %v5076_v31  ;;  %s9054_s7 = smov 120   ;;  %s9055_s13 = smov 92  }
 0xb22   :  { %8431 = vmatprep.subr.bf16.mxu0 %v8430_v28  ;;  %v8390_v30 = vpack.c.bf16 %v5556_v50, %v5555_v9  ;;  %8389 = vmatpush3.bf16.msra.mxu1 %v8388_v24  ;;  %v8446_v20 = vpack.c.bf16 %v5600_v35, %v5599_v34  ;;  %vm5082_vm2 = vcmp.ge.f32.partialorder %v5076_v31, 0.0  ;;  %v5234_v43 = vcombine.high %v11747_v1, %v11747_v1 }
 0xb23   :  { %8433 = vmatpush3.bf16.msra.mxu0 %v8432_v56  ;;  %v7102_v22 = vrot.slane %v5383_v58, 9  ;;  %v5093_v39 = vsel %vm5082_vm2, %v5076_v31, %v5088_v59  ;;  %v8486_v51 = vpack.c.bf16 %v5652_v7, %v5651_v11  ;;  %vm5131_vm12 = vcmask 359424   ;;  %v5539_v7 = vld [vmem:[%s12689_s10 + $0x100] sm:$0xff] }
 0xb24   :  { %8391 = vmatprep.subr.bf16.mxu1 %v8390_v30  ;;  %v5241_v46 = vrot.slane %v5234_v43, %v11570_v3  ;;  %v5440_v49 = vrot.slane %v5093_v39, %v11570_v3  ;;  %v5468_v24 = vcombine.high %v5093_v39, %v5093_v39  ;;  %vm5160_vm15 = vcmask 714754  }
 0xb25   :  { %5357 = vrot.lane.b32.xlu1 %v7100_v38, %s9044_s5  ;;  %5153 = vrot.lane.b32.xlu0 %v7091_v15, %s9045_s16  ;;  %v5193_v38 = vrot.slane %v11747_v1, %v11570_v3  ;;  %v5405_v15 = vrot.slane %v5398_v25, %v11570_v3  ;;  %s9052_s5 = smov 76   ;;  %vm5156_vm2 = vcmask 949248   ;;  %vm11857_vm4 = vmor %vm5160_vm15, %vm5159_vm14  ;;  %vm5179_vm1 = vcmask 490496  }
 0xb26   :  { %v5259_v28 = vcombine.high %v5241_v46, %v5241_v46  ;;  %v5453_v23 = vcombine.high %v5440_v49, %v5440_v49  ;;  %v7095_v56 = vrot.slane %v5241_v46, 9  ;;  %v7105_v25 = vrot.slane %v5440_v49, 9 }
 0xb27   :  { %v5211_v19 = vcombine.high %v5193_v38, %v5193_v38  ;;  %v7093_v53 = vrot.slane %v5193_v38, 9  ;;  %v5418_v36 = vcombine.high %v5405_v15, %v5405_v15  ;;  %v7103_v42 = vrot.slane %v5405_v15, 9 }
 0xb28   :  { %v7096_v17 = vrot.slane %v5259_v28, 9  ;;  %v5475_v50 = vrot.slane %v5468_v24, %v11570_v3  ;;  %vm5201_vm14 = vcmask 26626   ;;  %vm5197_vm15 = vcmask 261120  }
 0xb29   :  { %5146 = vrot.lane.b32.xlu0 %v5145_v0, %s9046_s23  ;;  %5377 = vrot.lane.b32.xlu1 %v7101_v10, %s9045_s16  ;;  %v5593_v0 = vld [vmem:[%s12689_s10 + $0x2b0] sm:$0xff]  ;;  %v7094_v14 = vrot.slane %v5211_v19, 9  ;;  %v7104_v52 = vrot.slane %v5418_v36, 9 }
 0xb2a   :  { %v8434_v27 = vpack.c.bf16 %v5594_v61, %v5593_v0  ;;  %v5581_v10 = vld [vmem:[%s12689_s10 + $0x250] sm:$0xff]  ;;  %v7107_v30 = vrot.slane %v5475_v50, 9  ;;  %v5490_v61 = vcombine.high %v5475_v50, %v5475_v50 }
 0xb2b   :  { %v8444_v12 = vpack.c.bf16 %v5582_v47, %v5581_v10 }
 0xb2c   :  { %8435 = vmatprep.subr.bf16.mxu0 %v8434_v27  ;;  %v7108_v27 = vrot.slane %v5490_v61, 9 }
 0xb2d   :  { %5164 = vrot.lane.b32.xlu0 %v5163_v41, %s9047_s9  ;;  %5371 = vrot.lane.b32.xlu1 %v11654_v37, %s9046_s23  ;;  %v8436_v37 = vpack.c.bf16 %v5578_v33, %v5577_v4  ;;  %v5585_v41 = vld [vmem:[%s12689_s10 + $0x270] sm:$0xff]  ;;  %s9056_s23 = smov 20  }
 0xb2e   :  { %v8452_v55 = vpack.c.bf16 %v5586_v48, %v5585_v41 }
 0xb2f   :  { %8437 = vmatpush3.bf16.msra.mxu0 %v8436_v37 }
 0xb30   :  { %8439 = vmatprep.subr.bf16.mxu0 %v8438_v13 }
 0xb31   :  { %5176 = vrot.lane.b32.xlu0 %v7092_v57, %s9048_s6  ;;  %5384 = vrot.lane.b32.xlu1 %v5383_v58, %s9047_s9  ;;  %v7106_v57 = vrot.slane %v5453_v23, 9  ;;  %v5289_v58 = vrot.slane %v11611_v6, %v11570_v3 }
 0xb33   :  { %8441 = vmatpush3.bf16.msra.mxu0 %v8440_v45  ;;  %v7097_v9 = vrot.slane %v5289_v58, 9  ;;  %v5312_v0 = vcombine.high %v5289_v58, %v5289_v58 }
 0xb34   :  { %8443 = vmatprep.subr.bf16.mxu0 %v8442_v5 }
 0xb35   :  { %5194 = vrot.lane.b32.xlu0 %v5193_v38, %s9049_s20  ;;  %5406 = vrot.lane.b32.xlu1 %v5405_v15, %s9049_s20  ;;  %v7098_v1 = vrot.slane %v5312_v0, 9  ;;  %v5560_v15 = vld [vmem:[%s12689_s10 + $0x1a8] sm:$0xff] }
 0xb37   :  { %8445 = vmatpush3.bf16.msra.mxu0 %v8444_v12 }
 0xb38   :  { %8447 = vmatprep.subr.bf16.mxu0 %v8446_v20 }
 0xb39   :  { %5212 = vrot.lane.b32.xlu0 %v5211_v19, %s9050_s21  ;;  %5392 = vrot.lane.b32.xlu1 %v7102_v22, %s9048_s6 }
 0xb3b   :  { %8449 = vmatpush3.bf16.msra.mxu0 %v8448_v40 }
 0xb3c   :  { %8451 = vmatprep.subr.bf16.mxu0 %v8450_v54  ;;  %v5547_v54 = vld [vmem:[%s12689_s10 + $0x140] sm:$0xff] }
 0xb3d   :  { %5206 = vrot.lane.b32.xlu0 %v7093_v53, %s9051_s17  ;;  %5419 = vrot.lane.b32.xlu1 %v5418_v36, %s9050_s21  ;;  %v5553_v36 = vld [vmem:[%s12689_s10 + $0x170] sm:$0xff] }
 0xb3f   :  { %8453 = vmatpush3.bf16.msra.mxu0 %v8452_v55 }
 0xb40   :  { %8487 = vmatprep.subr.bf16.mxu0 %v8486_v51 }
 0xb41   :  { %5224 = vrot.lane.b32.xlu0 %v7094_v14, %s9052_s5  ;;  %5414 = vrot.lane.b32.xlu1 %v7103_v42, %s9051_s17 }
 0xb45   :  { %5242 = vrot.lane.b32.xlu0 %v5241_v46, %s9053_s22  ;;  %5441 = vrot.lane.b32.xlu1 %v5440_v49, %s9053_s22 }
 0xb49   :  { %5260 = vrot.lane.b32.xlu0 %v5259_v28, %s9054_s7  ;;  %5427 = vrot.lane.b32.xlu1 %v7104_v52, %s9052_s5  ;;  %v5540_v52 = vld [vmem:[%s12689_s10 + $0x108] sm:$0xff] }
 0xb4d   :  { %5272 = vrot.lane.b32.xlu0 %v7096_v17, %s9055_s13  ;;  %5454 = vrot.lane.b32.xlu1 %v5453_v23, %s9054_s7  ;;  %v5550_v17 = vld [vmem:[%s12689_s10 + $0x158] sm:$0xff] }
 0xb51   :  { %5254 = vrot.lane.b32.xlu0 %v7095_v56, %s9056_s23  ;;  %5462 = vrot.lane.b32.xlu1 %v7106_v57, %s9055_s13  ;;  %v5557_v57 = vld [vmem:[%s12689_s10 + $0x190] sm:$0xff] }
 0xb55   :  { %5290 = vrot.lane.b32.xlu0 %v5289_v58, %s9057_s24  ;;  %5449 = vrot.lane.b32.xlu1 %v7105_v25, %s9056_s23  ;;  %v5558_v58 = vld [vmem:[%s12689_s10 + $0x198] sm:$0xff] }
 0xb59   :  { %5302 = vrot.lane.b32.xlu0 %v7097_v9, %s9058_s25  ;;  %5476 = vrot.lane.b32.xlu1 %v5475_v50, %s9057_s24 }
 0xb5d   :  { %5320 = vrot.lane.b32.xlu0 %v7098_v1, %s9059_s27  ;;  %5484 = vrot.lane.b32.xlu1 %v7107_v30, %s9058_s25  ;;  %v8392_v1 = vpack.c.bf16 %v5540_v52, %v5539_v7 }
 0xb61   :  { %5313 = vrot.lane.b32.xlu0 %v5312_v0, %s9033_s30  ;;  %5497 = vrot.lane.b32.xlu1 %v7108_v27, %s9059_s27 }
 0xb65   :  { %5491 = vrot.lane.b32.xlu1 %v5490_v61, %s9033_s30 }
 0xb89   :  { %v5118_v6 = vpop.permute.xlu1 %5117  ;;  %v5107_v4 = vpop.permute.xlu0 %5106 }
 0xb8a   :  { %v5119_v33 = vrot.slane %v5118_v6, 6  ;;  %v5108_v38 = vrot.slane %v5107_v4, 6 }
 0xb8c   :  { %v5120_v8 = vsel %vm4098_vm11, %v5119_v33, %v5118_v6  ;;  %v5110_v44 = vsel %vm5109_vm7, %v5108_v38, %v5107_v4  ;;  %v8394_v6 = vpack.c.bf16 %v5558_v58, %v5557_v57  ;;  %v5541_v4 = vld [vmem:[%s12689_s10 + $0x110] sm:$0xff]  ;;  %v5542_v33 = vld [vmem:[%s12689_s10 + $0x118] sm:$0xff]  ;;  %v5559_v38 = vld [vmem:[%s12689_s10 + $0x1a0] sm:$0xff] }
 0xb8d   :  { %5115 = vst.msk [vmem:[#allocation2] sm:$0x5] %vm11829_vm8, %v5110_v44  ;;  %v5129_v13 = vpop.permute.xlu0 %5128  ;;  %v5552_v44 = vld [vmem:[%s12689_s10 + $0x168] sm:$0xff] }
 0xb8e   :  { %v5130_v21 = vrot.slane %v5129_v13, 6  ;;  %5125 = vst.msk [vmem:[#allocation2 + $0x2] sm:$0x5] %vm11833_vm9, %v5120_v8 }
 0xb90   :  { %v5132_v45 = vsel %vm5131_vm12, %v5130_v21, %v5129_v13 }
 0xb91   :  { %5137 = vst.msk [vmem:[#allocation2 + $0x4] sm:$0x5] %vm11843_vm13, %v5132_v45  ;;  %v8396_v45 = vpack.c.bf16 %v5542_v33, %v5541_v4 }
 0xb93   :  { %v5350_v19 = vpop.permute.xlu1 %5349  ;;  %v5343_v22 = vpop.permute.xlu0 %5342 }
 0xb94   :  { %v5351_v32 = vrot.slane %v5350_v19, 6  ;;  %v5344_v31 = vrot.slane %v5343_v22, 6 }
 0xb96   :  { %v5352_v29 = vsel %vm4098_vm11, %v5351_v32, %v5350_v19  ;;  %v5345_v5 = vsel %vm5109_vm7, %v5344_v31, %v5343_v22  ;;  %vm5170_vm11 = vcmask 1041088   ;;  %v8398_v32 = vpack.c.bf16 %v5560_v15, %v5559_v38  ;;  %v5543_v31 = vld [vmem:[%s12689_s10 + $0x120] sm:$0xff] }
 0xb97   :  { %5347 = vst.msk [vmem:[#allocation2 + $0x1] sm:$0x5] %vm11829_vm8, %v5345_v5  ;;  %v5358_v10 = vpop.permute.xlu1 %5357  ;;  %v5154_v47 = vpop.permute.xlu0 %5153  ;;  %vm11868_vm8 = vmor %vm5171_vm5, %vm5170_vm11  ;;  %vm5215_vm11 = vcmask 850944   ;;  %vm5209_vm5 = vcmask 843808   ;;  %v5561_v5 = vld [vmem:[%s12689_s10 + $0x1b0] sm:$0xff] }
 0xb98   :  { %v5359_v12 = vrot.slane %v5358_v10, 6  ;;  %v5155_v34 = vrot.slane %v5154_v47, 6  ;;  %5354 = vst.msk [vmem:[#allocation2 + $0x3] sm:$0x5] %vm11833_vm9, %v5352_v29  ;;  %vm5182_vm9 = vcmask 1040864   ;;  %v5544_v29 = vld [vmem:[%s12689_s10 + $0x128] sm:$0xff] }
 0xb9a   :  { %v5360_v53 = vsel %vm5131_vm12, %v5359_v12, %v5358_v10  ;;  %v5157_v20 = vsel %vm5156_vm2, %v5155_v34, %v5154_v47  ;;  %vm11878_vm12 = vmor %vm5183_vm10, %vm5182_vm9  ;;  %vm5231_vm9 = vcmask 387074   ;;  %v5562_v10 = vld [vmem:[%s12689_s10 + $0x1b8] sm:$0xff]  ;;  %vm5227_vm10 = vcmask 621568  }
 0xb9b   :  { %v5147_v35 = vpop.permute.xlu0 %5146  ;;  %v5378_v59 = vpop.permute.xlu1 %5377  ;;  %5362 = vst.msk [vmem:[#allocation2 + $0x5] sm:$0x5] %vm11843_vm13, %v5360_v53  ;;  %vm5200_vm13 = vcmask 1040640   ;;  %v8400_v34 = vpack.c.bf16 %v5544_v29, %v5543_v31  ;;  %v5655_v31 = vld [vmem:[%s12689_s10 + $0x4a0] sm:$0xff]  ;;  %v5656_v29 = vld [vmem:[%s12689_s10 + $0x4a8] sm:$0xff] }
 0xb9c   :  { %5150 = vst.msk [vmem:[#allocation2 + $0x6] sm:$0x1] %vm5149_vm3, %v5147_v35  ;;  %v5379_v62 = vrot.slane %v5378_v59, 6 }
 0xb9d   :  { %5162 = vst.msk [vmem:[#allocation2 + $0x6] sm:$0x5] %vm11857_vm4, %v5157_v20  ;;  %v5545_v20 = vld [vmem:[%s12689_s10 + $0x130] sm:$0xff] }
 0xb9e   :  { %v5380_v14 = vsel %vm5156_vm2, %v5379_v62, %v5378_v59  ;;  %vm11894_vm2 = vmor %vm5201_vm14, %vm5200_vm13  ;;  %v8402_v59 = vpack.c.bf16 %v5562_v10, %v5561_v5  ;;  %v5546_v62 = vld [vmem:[%s12689_s10 + $0x138] sm:$0xff]  ;;  %vm5249_vm13 = vcmask 157698   ;;  %vm5245_vm14 = vcmask 392192  }
 0xb9f   :  { %v5165_v60 = vpop.permute.xlu0 %5164  ;;  %v5372_v40 = vpop.permute.xlu1 %5371  ;;  %v5662_v5 = vld [vmem:[%s12689_s10 + $0x4d8] sm:$0xff] }
 0xba0   :  { %v5166_v43 = vrot.slane %v5165_v60, 6  ;;  %5374 = vst.msk [vmem:[#allocation2 + $0x7] sm:$0x1] %vm5149_vm3, %v5372_v40  ;;  %vm5218_vm3 = vcmask 1041216   ;;  %v5564_v40 = vld [vmem:[%s12689_s10 + $0x1c8] sm:$0xff] }
 0xba1   :  { %5382 = vst.msk [vmem:[#allocation2 + $0x7] sm:$0x5] %vm11857_vm4, %v5380_v14  ;;  %vm5219_vm4 = vcmask 616450  }
 0xba2   :  { %v5168_v18 = vsel %vm5167_vm6, %v5166_v43, %v5165_v60  ;;  %v5563_v60 = vld [vmem:[%s12689_s10 + $0x1c0] sm:$0xff] }
 0xba3   :  { %5173 = vst.msk [vmem:[#allocation2 + $0x8] sm:$0x5] %vm11868_vm8, %v5168_v18  ;;  %v5177_v39 = vpop.permute.xlu0 %5176  ;;  %v5385_v2 = vpop.permute.xlu1 %5384  ;;  %v8404_v18 = vpack.c.bf16 %v5546_v62, %v5545_v20 }
 0xba4   :  { %v5178_v41 = vrot.slane %v5177_v39, 6  ;;  %v5386_v48 = vrot.slane %v5385_v2, 6 }
 0xba6   :  { %v5180_v55 = vsel %vm5179_vm1, %v5178_v41, %v5177_v39  ;;  %v5387_v11 = vsel %vm5167_vm6, %v5386_v48, %v5385_v2  ;;  %vm11928_vm6 = vmor %vm5219_vm4, %vm5218_vm3  ;;  %v8406_v2 = vpack.c.bf16 %v5564_v40, %v5563_v60  ;;  %v5548_v41 = vld [vmem:[%s12689_s10 + $0x148] sm:$0xff]  ;;  %vm5267_vm3 = vcmask 747522   ;;  %v5639_v40 = vld [vmem:[%s12689_s10 + $0x420] sm:$0xff] }
 0xba7   :  { %5185 = vst.msk [vmem:[#allocation2 + $0xa] sm:$0x5] %vm11878_vm12, %v5180_v55  ;;  %v5195_v46 = vpop.permute.xlu0 %5194  ;;  %v5407_v49 = vpop.permute.xlu1 %5406  ;;  %v5565_v55 = vld [vmem:[%s12689_s10 + $0x1d0] sm:$0xff]  ;;  %v8408_v52 = vpack.c.bf16 %v5548_v41, %v5547_v54  ;;  %vm5278_vm4 = vcmask 1041120   ;;  %v8494_v60 = vpack.c.bf16 %v5656_v29, %v5655_v31  ;;  %v5658_v54 = vld [vmem:[%s12689_s10 + $0x4b8] sm:$0xff] }
 0xba8   :  { %5389 = vst.msk [vmem:[#allocation2 + $0x9] sm:$0x5] %vm11868_vm8, %v5387_v11  ;;  %v5196_v51 = vrot.slane %v5195_v46, 6  ;;  %v5503_v28 = vld [vmem:[#allocation2] sm:$0xff]  ;;  %v5408_v24 = vrot.slane %v5407_v49, 6  ;;  %vm5230_vm8 = vcmask 1040992  }
 0xba9   :  { %v5775_v23 = vrot.slane %v5503_v28, %v11570_v3  ;;  %v5768_v56 = vcombine.high %v5503_v28, %v5503_v28  ;;  %v5566_v11 = vld [vmem:[%s12689_s10 + $0x1d8] sm:$0xff]  ;;  %v5661_v29 = vld [vmem:[%s12689_s10 + $0x4d0] sm:$0xff] }
 0xbaa   :  { %v5198_v25 = vsel %vm5197_vm15, %v5196_v51, %v5195_v46  ;;  %v5409_v13 = vsel %vm5197_vm15, %v5408_v24, %v5407_v49  ;;  %v5549_v49 = vld [vmem:[%s12689_s10 + $0x150] sm:$0xff]  ;;  %v8410_v58 = vpack.c.bf16 %v5566_v11, %v5565_v55  ;;  %v5567_v24 = vld [vmem:[%s12689_s10 + $0x1e0] sm:$0xff] }
 0xbab   :  { %v5213_v9 = vpop.permute.xlu0 %5212  ;;  %v5393_v50 = vpop.permute.xlu1 %5392  ;;  %v5783_v0 = vcombine.high %v5775_v23, %v5775_v23  ;;  %5203 = vst.msk [vmem:[#allocation2 + $0xc] sm:$0x5] %vm11894_vm2, %v5198_v25  ;;  %v11909_v30 = vrot.slane %v5768_v56, %v11570_v3  ;;  %v5636_v56 = vld [vmem:[%s12689_s10 + $0x408] sm:$0xff] }
 0xbac   :  { %v5214_v61 = vrot.slane %v5213_v9, 6  ;;  %v5394_v27 = vrot.slane %v5393_v50, 6 }
 0xbad   :  { %5917 = vmatprep.mubr.f32.mxu1 %v5783_v0  ;;  %v5784_v37 = vcombine.high %v11909_v30, %v11909_v30  ;;  %v5653_v0 = vld [vmem:[%s12689_s10 + $0x490] sm:$0xff] }
 0xbae   :  { %v5395_v8 = vsel %vm5179_vm1, %v5394_v27, %v5393_v50  ;;  %5918 = vmatmul.mubr.f32.vlgmr.msra.gmra.mrb[120].mxu1 %v5775_v23  ;;  %v5216_v19 = vsel %vm5215_vm11, %v5214_v61, %v5213_v9  ;;  %vm11954_vm1 = vmor %vm5231_vm9, %vm5230_vm8  ;;  %v5635_v23 = vld [vmem:[%s12689_s10 + $0x400] sm:$0xff]  ;;  %v5568_v9 = vld [vmem:[%s12689_s10 + $0x1e8] sm:$0xff]  ;;  %v8412_v27 = vpack.c.bf16 %v5550_v17, %v5549_v49  ;;  %vm5275_vm8 = vcmask 752640  }
 0xbaf   :  { %5397 = vst.msk [vmem:[#allocation2 + $0xb] sm:$0x5] %vm11878_vm12, %v5395_v8  ;;  %8393 = vmatpush3.bf16.msra.mxu1 %v8392_v1  ;;  %v5207_v21 = vpop.permute.xlu0 %5206  ;;  %5987 = vmatprep.mubr.f32.mxu1 %v5784_v37  ;;  %v5420_v16 = vpop.permute.xlu1 %5419  ;;  %vm5248_vm12 = vcmask 1040768   ;;  %v5654_v1 = vld [vmem:[%s12689_s10 + $0x498] sm:$0xff]  ;;  %v8488_v38 = vpack.c.bf16 %v5636_v56, %v5635_v23  ;;  %v8414_v15 = vpack.c.bf16 %v5568_v9, %v5567_v24  ;;  %v5551_v8 = vld [vmem:[%s12689_s10 + $0x160] sm:$0xff]  ;;  %v5604_v23 = vld [vmem:[%s12689_s10 + $0x308] sm:$0xff] }
 0xbb0   :  { %5210 = vst.msk [vmem:[#allocation2 + $0xe] sm:$0x1] %vm5209_vm5, %v5207_v21  ;;  %v5421_v22 = vrot.slane %v5420_v16, 6  ;;  %8395 = vmatprep.subr.bf16.mxu1 %v8394_v6  ;;  %vm11982_vm15 = vmor %vm5249_vm13, %vm5248_vm12  ;;  %v8490_v21 = vpack.c.bf16 %v5654_v1, %v5653_v0  ;;  %vm5297_vm12 = vcmask 288770   ;;  %vm5293_vm13 = vcmask 523264   ;;  %v5603_v17 = vld [vmem:[%s12689_s10 + $0x300] sm:$0xff] }
 0xbb1   :  { %5411 = vst.msk [vmem:[#allocation2 + $0xd] sm:$0x5] %vm11894_vm2, %v5409_v13  ;;  %vm5266_vm2 = vcmask 1041344   ;;  %v5641_v56 = vld [vmem:[%s12689_s10 + $0x430] sm:$0xff]  ;;  %v5622_v9 = vld [vmem:[%s12689_s10 + $0x398] sm:$0xff]  ;;  %v5659_v0 = vld [vmem:[%s12689_s10 + $0x4c0] sm:$0xff] }
 0xbb2   :  { %5221 = vst.msk [vmem:[#allocation2 + $0xe] sm:$0x5] %vm11928_vm6, %v5216_v19  ;;  %v5422_v53 = vsel %vm5215_vm11, %v5421_v22, %v5420_v16  ;;  %v5637_v16 = vld [vmem:[%s12689_s10 + $0x410] sm:$0xff]  ;;  %vm5279_vm11 = vcmask 518146   ;;  %vm12057_vm9 = vmor %vm5267_vm3, %vm5266_vm2  ;;  %vm5309_vm2 = vcmask 59394   ;;  %v5660_v1 = vld [vmem:[%s12689_s10 + $0x4c8] sm:$0xff] }
 0xbb3   :  { %8397 = vmatpush3.bf16.msra.mxu1 %v8396_v45  ;;  %v5225_v47 = vpop.permute.xlu0 %5224  ;;  %v5415_v12 = vpop.permute.xlu1 %5414  ;;  %v5638_v45 = vld [vmem:[%s12689_s10 + $0x418] sm:$0xff]  ;;  %v5569_v19 = vld [vmem:[%s12689_s10 + $0x1f0] sm:$0xff]  ;;  %vm5305_vm3 = vcmask 293888  }
 0xbb4   :  { %v5226_v35 = vrot.slane %v5225_v47, 6  ;;  %5417 = vst.msk [vmem:[#allocation2 + $0xf] sm:$0x1] %vm5209_vm5, %v5415_v12  ;;  %8399 = vmatprep.subr.bf16.mxu1 %v8398_v32  ;;  %vm5263_vm5 = vcmask 982016   ;;  %v5570_v32 = vld [vmem:[%s12689_s10 + $0x1f8] sm:$0xff]  ;;  %v8416_v12 = vpack.c.bf16 %v5552_v44, %v5551_v8  ;;  %v5621_v24 = vld [vmem:[%s12689_s10 + $0x390] sm:$0xff] }
 0xbb5   :  { %5424 = vst.msk [vmem:[#allocation2 + $0xf] sm:$0x5] %vm11928_vm6, %v5422_v53  ;;  %vm5257_vm6 = vcmask 975008   ;;  %v8418_v62 = vpack.c.bf16 %v5570_v32, %v5569_v19  ;;  %v5606_v8 = vld [vmem:[%s12689_s10 + $0x318] sm:$0xff]  ;;  %v5643_v44 = vld [vmem:[%s12689_s10 + $0x440] sm:$0xff] }
 0xbb6   :  { %v5228_v14 = vsel %vm5227_vm10, %v5226_v35, %v5225_v47  ;;  %v5554_v35 = vld [vmem:[%s12689_s10 + $0x178] sm:$0xff]  ;;  %v5623_v19 = vld [vmem:[%s12689_s10 + $0x3a0] sm:$0xff] }
 0xbb7   :  { %5233 = vst.msk [vmem:[#allocation2 + $0x10] sm:$0x5] %vm11954_vm1, %v5228_v14  ;;  %8401 = vmatpush3.bf16.msra.mxu1 %v8400_v34  ;;  %v5243_v42 = vpop.permute.xlu0 %5242  ;;  %v5442_v43 = vpop.permute.xlu1 %5441  ;;  %v8492_v34 = vpack.c.bf16 %v5638_v45, %v5637_v16  ;;  %v5640_v14 = vld [vmem:[%s12689_s10 + $0x428] sm:$0xff]  ;;  %v8502_v16 = vpack.c.bf16 %v5660_v1, %v5659_v0 }
 0xbb8   :  { %v5244_v39 = vrot.slane %v5243_v42, 6  ;;  %8403 = vmatprep.subr.bf16.mxu1 %v8402_v59  ;;  %v5443_v7 = vrot.slane %v5442_v43, 6  ;;  %v8496_v49 = vpack.c.bf16 %v5640_v14, %v5639_v40  ;;  %v5644_v45 = vld [vmem:[%s12689_s10 + $0x448] sm:$0xff]  ;;  %v5625_v14 = vld [vmem:[%s12689_s10 + $0x3b0] sm:$0xff] }
 0xbba   :  { %v5246_v46 = vsel %vm5245_vm14, %v5244_v39, %v5243_v42  ;;  %v5444_v6 = vsel %vm5245_vm14, %v5443_v7, %v5442_v43  ;;  %v5619_v42 = vld [vmem:[%s12689_s10 + $0x380] sm:$0xff]  ;;  %v5620_v39 = vld [vmem:[%s12689_s10 + $0x388] sm:$0xff] }
 0xbbb   :  { %8405 = vmatpush3.bf16.msra.mxu1 %v8404_v18  ;;  %v5261_v51 = vpop.permute.xlu0 %5260  ;;  %v5428_v28 = vpop.permute.xlu1 %5427  ;;  %5251 = vst.msk [vmem:[#allocation2 + $0x12] sm:$0x5] %vm11982_vm15, %v5246_v46  ;;  %v8420_v46 = vpack.c.bf16 %v5554_v35, %v5553_v36  ;;  %v8504_v36 = vpack.c.bf16 %v5644_v45, %v5643_v44  ;;  %v5715_v44 = vld [vmem:[%s12689_s10 + $0x680] sm:$0xff] }
 0xbbc   :  { %v5429_v57 = vrot.slane %v5428_v28, 6  ;;  %8407 = vmatprep.subr.bf16.mxu1 %v8406_v2  ;;  %v12007_v25 = vld [vmem:[#allocation2 + $0x8] sm:$0xff]  ;;  %v5262_v13 = vrot.slane %v5261_v51, 6  ;;  %v5657_v2 = vld [vmem:[%s12689_s10 + $0x4b0] sm:$0xff] }
 0xbbd   :  { %v5792_v50 = vrot.slane %v12007_v25, %v11570_v3  ;;  %v5785_v41 = vcombine.high %v12007_v25, %v12007_v25  ;;  %v5642_v25 = vld [vmem:[%s12689_s10 + $0x438] sm:$0xff] }
 0xbbe   :  { %v5430_v61 = vsel %vm5227_vm10, %v5429_v57, %v5428_v28  ;;  %vm12063_vm10 = vmor %vm5279_vm11, %vm5278_vm4  ;;  %v5264_v59 = vsel %vm5263_vm5, %v5262_v13, %v5261_v51  ;;  %v8454_v28 = vpack.c.bf16 %v5620_v39, %v5619_v42  ;;  %vm5326_vm11 = vcmask 1041248   ;;  %v5626_v42 = vld [vmem:[%s12689_s10 + $0x3b8] sm:$0xff]  ;;  %v5716_v13 = vld [vmem:[%s12689_s10 + $0x688] sm:$0xff] }
 0xbbf   :  { %5432 = vst.msk [vmem:[#allocation2 + $0x11] sm:$0x5] %vm11954_vm1, %v5430_v61  ;;  %8409 = vmatpush3.bf16.msra.mxu1 %v8408_v52  ;;  %v5273_v4 = vpop.permute.xlu0 %5272  ;;  %v12027_v33 = vpop.permute.xlu1 %5454  ;;  %v5800_v37 = vcombine.high %v5792_v50, %v5792_v50  ;;  %vm5296_vm1 = vcmask 1040896   ;;  %v8498_v52 = vpack.c.bf16 %v5658_v54, %v5657_v2  ;;  %v5663_v2 = vld [vmem:[%s12689_s10 + $0x4e0] sm:$0xff]  ;;  %v5664_v54 = vld [vmem:[%s12689_s10 + $0x4e8] sm:$0xff] }
 0xbc0   :  { %8411 = vmatprep.subr.bf16.mxu1 %v8410_v58  ;;  %5446 = vst.msk [vmem:[#allocation2 + $0x13] sm:$0x5] %vm11982_vm15, %v5444_v6  ;;  %v5274_v22 = vrot.slane %v5273_v4, 6  ;;  %v5456_v20 = vrot.slane %v12027_v33, 6  ;;  %vm12103_vm14 = vmor %vm5297_vm12, %vm5296_vm1  ;;  %v12123_v58 = vrot.slane %v5785_v41, %v11570_v3  ;;  %vm5308_vm15 = vcmask 1040672  }
 0xbc1   :  { %6057 = vmatprep.mubr.f32.mxu0 %v5800_v37  ;;  %v8456_v6 = vpack.c.bf16 %v5604_v23, %v5603_v17  ;;  %vm12156_vm4 = vmor %vm5309_vm2, %vm5308_vm15  ;;  %v5647_v17 = vld [vmem:[%s12689_s10 + $0x460] sm:$0xff]  ;;  %v8510_v23 = vpack.c.bf16 %v5664_v54, %v5663_v2  ;;  %v5720_v2 = vld [vmem:[%s12689_s10 + $0x6a8] sm:$0xff]  ;;  %vm6515_vm12 = vcmask 254976  }
 0xbc2   :  { %6058 = vmatmul.mubr.f32.vlgmr.msra.gmra.mrb[130].mxu0 %v5792_v50  ;;  %v5276_v43 = vsel %vm5275_vm8, %v5274_v22, %v5273_v4  ;;  %v5457_v7 = vsel %vm5263_vm5, %v5456_v20, %v12027_v33  ;;  %v5605_v4 = vld [vmem:[%s12689_s10 + $0x310] sm:$0xff]  ;;  %v5624_v22 = vld [vmem:[%s12689_s10 + $0x3a8] sm:$0xff]  ;;  %vm5327_vm5 = vcmask 649218  }
 0xbc3   :  { %8413 = vmatpush3.bf16.msra.mxu1 %v8412_v27  ;;  %8489 = vmatpush3.bf16.msra.mxu0 %v8488_v38  ;;  %v5255_v10 = vpop.permute.xlu0 %5254  ;;  %v5463_v47 = vpop.permute.xlu1 %5462  ;;  %v8500_v38 = vpack.c.bf16 %v5642_v25, %v5641_v56  ;;  %v8462_v35 = vpack.c.bf16 %v5624_v22, %v5623_v19  ;;  %v5645_v20 = vld [vmem:[%s12689_s10 + $0x450] sm:$0xff]  ;;  %v5648_v56 = vld [vmem:[%s12689_s10 + $0x468] sm:$0xff]  ;;  %v5614_v22 = vld [vmem:[%s12689_s10 + $0x358] sm:$0xff] }
 0xbc4   :  { %5258 = vst.msk [vmem:[#allocation2 + $0x14] sm:$0x1] %vm5257_vm6, %v5255_v10  ;;  %8415 = vmatprep.subr.bf16.mxu1 %v8414_v15  ;;  %8491 = vmatprep.subr.bf16.mxu0 %v8490_v21  ;;  %v5464_v18 = vrot.slane %v5463_v47, 6  ;;  %v8458_v15 = vpack.c.bf16 %v5622_v9, %v5621_v24  ;;  %v5801_v21 = vcombine.high %v12123_v58, %v12123_v58  ;;  %v5628_v25 = vld [vmem:[%s12689_s10 + $0x3c8] sm:$0xff]  ;;  %v5665_v24 = vld [vmem:[%s12689_s10 + $0x4f0] sm:$0xff]  ;;  %v5666_v9 = vld [vmem:[%s12689_s10 + $0x4f8] sm:$0xff] }
 0xbc5   :  { %5269 = vst.msk [vmem:[#allocation2 + $0x14] sm:$0x5] %vm12057_vm9, %v5264_v59  ;;  %v5608_v59 = vld [vmem:[%s12689_s10 + $0x328] sm:$0xff]  ;;  %v5613_v19 = vld [vmem:[%s12689_s10 + $0x350] sm:$0xff] }
 0xbc6   :  { %5281 = vst.msk [vmem:[#allocation2 + $0x16] sm:$0x5] %vm12063_vm10, %v5276_v43  ;;  %v5465_v57 = vsel %vm5275_vm8, %v5464_v18, %v5463_v47  ;;  %vm5316_vm8 = vcmask 876608   ;;  %v5719_v18 = vld [vmem:[%s12689_s10 + $0x6a0] sm:$0xff] }
 0xbc7   :  { %8417 = vmatpush3.bf16.msra.mxu1 %v8416_v12  ;;  %8493 = vmatpush3.bf16.msra.mxu0 %v8492_v34  ;;  %v5291_v55 = vpop.permute.xlu0 %5290  ;;  %v5450_v11 = vpop.permute.xlu1 %5449  ;;  %v8460_v12 = vpack.c.bf16 %v5606_v8, %v5605_v4  ;;  %v5612_v4 = vld [vmem:[%s12689_s10 + $0x348] sm:$0xff]  ;;  %v5630_v8 = vld [vmem:[%s12689_s10 + $0x3d8] sm:$0xff] }
 0xbc8   :  { %v5292_v51 = vrot.slane %v5291_v55, 6  ;;  %5452 = vst.msk [vmem:[#allocation2 + $0x15] sm:$0x1] %vm5257_vm6, %v5450_v11  ;;  %8419 = vmatprep.subr.bf16.mxu1 %v8418_v62  ;;  %8495 = vmatprep.subr.bf16.mxu0 %v8494_v60  ;;  %v5646_v62 = vld [vmem:[%s12689_s10 + $0x458] sm:$0xff]  ;;  %vm5323_vm6 = vcmask 883712   ;;  %v8506_v60 = vpack.c.bf16 %v5662_v5, %v5661_v29  ;;  %v5700_v29 = vld [vmem:[%s12689_s10 + $0x608] sm:$0xff] }
 0xbc9   :  { %5459 = vst.msk [vmem:[#allocation2 + $0x15] sm:$0x5] %vm12057_vm9, %v5457_v7  ;;  %vm12207_vm9 = vmor %vm5327_vm5, %vm5326_vm11  ;;  %v8508_v11 = vpack.c.bf16 %v5646_v62, %v5645_v20  ;;  %v5631_v5 = vld [vmem:[%s12689_s10 + $0x3e0] sm:$0xff]  ;;  %v5701_v20 = vld [vmem:[%s12689_s10 + $0x610] sm:$0xff] }
 0xbca   :  { %v5294_v50 = vsel %vm5293_vm13, %v5292_v51, %v5291_v55  ;;  %5467 = vst.msk [vmem:[#allocation2 + $0x17] sm:$0x5] %vm12063_vm10, %v5465_v57  ;;  %v8466_v51 = vpack.c.bf16 %v5626_v42, %v5625_v14  ;;  %v5627_v57 = vld [vmem:[%s12689_s10 + $0x3c0] sm:$0xff]  ;;  %v5702_v14 = vld [vmem:[%s12689_s10 + $0x618] sm:$0xff]  ;;  %v5633_v42 = vld [vmem:[%s12689_s10 + $0x3f0] sm:$0xff]  ;;  %vm6441_vm10 = vcmask 1043456  }
 0xbcb   :  { %5299 = vst.msk [vmem:[#allocation2 + $0x18] sm:$0x5] %vm12103_vm14, %v5294_v50  ;;  %8421 = vmatpush3.bf16.msra.mxu1 %v8420_v46  ;;  %8497 = vmatpush3.bf16.msra.mxu0 %v8496_v49  ;;  %v5303_v61 = vpop.permute.xlu0 %5302  ;;  %v5477_v27 = vpop.permute.xlu1 %5476 }
 0xbcc   :  { %v5304_v33 = vrot.slane %v5303_v61, 6  ;;  %v5478_v37 = vrot.slane %v5477_v27, 6  ;;  %8455 = vmatprep.subr.bf16.mxu1 %v8454_v28  ;;  %8499 = vmatprep.subr.bf16.mxu0 %v8498_v52  ;;  %v5609_v28 = vld [vmem:[%s12689_s10 + $0x330] sm:$0xff]  ;;  %v5610_v52 = vld [vmem:[%s12689_s10 + $0x338] sm:$0xff] }
 0xbcd   :  { %v8468_v0 = vpack.c.bf16 %v5610_v52, %v5609_v28  ;;  %v5684_v28 = vld [vmem:[%s12689_s10 + $0x588] sm:$0xff] }
 0xbce   :  { %v5306_v32 = vsel %vm5305_vm3, %v5304_v33, %v5303_v61  ;;  %v5479_v31 = vsel %vm5293_vm13, %v5478_v37, %v5477_v27  ;;  %5988 = vmatmul.mubr.f32.vlgmr.msra.gmra.mrb[122].mxu1 %v11909_v30  ;;  %v5607_v30 = vld [vmem:[%s12689_s10 + $0x320] sm:$0xff]  ;;  %v8512_v61 = vpack.c.bf16 %v5648_v56, %v5647_v17  ;;  %v8470_v27 = vpack.c.bf16 %v5628_v25, %v5627_v57  ;;  %v5649_v33 = vld [vmem:[%s12689_s10 + $0x470] sm:$0xff] }
 0xbcf   :  { %5481 = vst.msk [vmem:[#allocation2 + $0x19] sm:$0x5] %vm12103_vm14, %v5479_v31  ;;  %8457 = vmatpush3.bf16.msra.mxu1 %v8456_v6  ;;  %6127 = vmatprep.mubr.f32.mxu1 %v5801_v21  ;;  %v5321_v10 = vpop.permute.xlu0 %5320  ;;  %v5485_v47 = vpop.permute.xlu1 %5484  ;;  %v8464_v55 = vpack.c.bf16 %v5608_v59, %v5607_v30  ;;  %v5611_v6 = vld [vmem:[%s12689_s10 + $0x340] sm:$0xff]  ;;  %v8514_v37 = vpack.c.bf16 %v5666_v9, %v5665_v24  ;;  %v5616_v59 = vld [vmem:[%s12689_s10 + $0x368] sm:$0xff]  ;;  %v5721_v17 = vld [vmem:[%s12689_s10 + $0x6b0] sm:$0xff] }
 0xbd0   :  { %5311 = vst.msk [vmem:[#allocation2 + $0x1a] sm:$0x5] %vm12156_vm4, %v5306_v32  ;;  %8501 = vmatpush3.bf16.msra.mxu0 %v8500_v38  ;;  %v5322_v34 = vrot.slane %v5321_v10, 6  ;;  %v5486_v53 = vrot.slane %v5485_v47, 6  ;;  %8459 = vmatprep.subr.bf16.mxu1 %v8458_v15  ;;  %v5650_v38 = vld [vmem:[%s12689_s10 + $0x478] sm:$0xff]  ;;  %v5629_v15 = vld [vmem:[%s12689_s10 + $0x3d0] sm:$0xff]  ;;  %v8472_v21 = vpack.c.bf16 %v5612_v4, %v5611_v6  ;;  %v8550_v31 = vpack.c.bf16 %v5716_v13, %v5715_v44 }
 0xbd1   :  { %8503 = vmatprep.subr.bf16.mxu0 %v8502_v16  ;;  %v12196_v40 = vld [vmem:[#allocation2 + $0x10] sm:$0xff]  ;;  %v8516_v16 = vpack.c.bf16 %v5650_v38, %v5649_v33  ;;  %v8474_v45 = vpack.c.bf16 %v5630_v8, %v5629_v15  ;;  %v5699_v32 = vld [vmem:[%s12689_s10 + $0x600] sm:$0xff]  ;;  %v8476_v30 = vpack.c.bf16 %v5614_v22, %v5613_v19  ;;  %v5724_v4 = vld [vmem:[%s12689_s10 + $0x6c8] sm:$0xff] }
 0xbd2   :  { %v5487_v43 = vsel %vm5305_vm3, %v5486_v53, %v5485_v47  ;;  %v12213_v39 = vrot.slane %v12196_v40, %v11570_v3  ;;  %v5324_v46 = vsel %vm5323_vm6, %v5322_v34, %v5321_v10  ;;  %v5632_v10 = vld [vmem:[%s12689_s10 + $0x3e8] sm:$0xff]  ;;  %v5717_v47 = vld [vmem:[%s12689_s10 + $0x690] sm:$0xff]  ;;  %v5615_v34 = vld [vmem:[%s12689_s10 + $0x360] sm:$0xff]  ;;  %v8552_v53 = vpack.c.bf16 %v5700_v29, %v5699_v32 }
 0xbd3   :  { %8461 = vmatpush3.bf16.msra.mxu1 %v8460_v12  ;;  %v5314_v41 = vpop.permute.xlu0 %5313  ;;  %5489 = vst.msk [vmem:[#allocation2 + $0x1b] sm:$0x5] %vm12156_vm4, %v5487_v43  ;;  %v5498_v48 = vpop.permute.xlu1 %5497  ;;  %v5718_v12 = vld [vmem:[%s12689_s10 + $0x698] sm:$0xff]  ;;  %v5802_v52 = vcombine.high %v12196_v40, %v12196_v40  ;;  %v5667_v24 = vld [vmem:[%s12689_s10 + $0x500] sm:$0xff]  ;;  %v5668_v40 = vld [vmem:[%s12689_s10 + $0x508] sm:$0xff] }
 0xbd4   :  { %8505 = vmatpush3.bf16.msra.mxu0 %v8504_v36  ;;  %5317 = vst.msk [vmem:[#allocation2 + $0x1c] sm:$0x1] %vm5316_vm8, %v5314_v41  ;;  %v5499_v49 = vrot.slane %v5498_v48, 6  ;;  %8463 = vmatprep.subr.bf16.mxu1 %v8462_v35  ;;  %v5817_v7 = vcombine.high %v12213_v39, %v12213_v39  ;;  %v8478_v36 = vpack.c.bf16 %v5632_v10, %v5631_v5  ;;  %v5634_v43 = vld [vmem:[%s12689_s10 + $0x3f8] sm:$0xff]  ;;  %v5705_v9 = vld [vmem:[%s12689_s10 + $0x630] sm:$0xff]  ;;  %v5723_v6 = vld [vmem:[%s12689_s10 + $0x6c0] sm:$0xff] }
 0xbd5   :  { %5329 = vst.msk [vmem:[#allocation2 + $0x1c] sm:$0x5] %vm12207_vm9, %v5324_v46  ;;  %8507 = vmatprep.subr.bf16.mxu0 %v8506_v60  ;;  %v8554_v62 = vpack.c.bf16 %v5718_v12, %v5717_v47  ;;  %v8480_v41 = vpack.c.bf16 %v5616_v59, %v5615_v34  ;;  %v5618_v46 = vld [vmem:[%s12689_s10 + $0x378] sm:$0xff]  ;;  %v8520_v33 = vpack.c.bf16 %v5668_v40, %v5667_v24  ;;  %v5669_v15 = vld [vmem:[%s12689_s10 + $0x510] sm:$0xff]  ;;  %v5707_v44 = vld [vmem:[%s12689_s10 + $0x640] sm:$0xff] }
 0xbd6   :  { %6197 = vmatprep.mubr.f32.mxu0 %v5817_v7  ;;  %v5500_v1 = vsel %vm5323_vm6, %v5499_v49, %v5498_v48  ;;  %v8556_v48 = vpack.c.bf16 %v5702_v14, %v5701_v20  ;;  %v8558_v49 = vpack.c.bf16 %v5720_v2, %v5719_v18  ;;  %v5704_v7 = vld [vmem:[%s12689_s10 + $0x628] sm:$0xff]  ;;  %v5670_v8 = vld [vmem:[%s12689_s10 + $0x518] sm:$0xff]  ;;  %v5725_v22 = vld [vmem:[%s12689_s10 + $0x6d0] sm:$0xff] }
 0xbd7   :  { %8465 = vmatpush3.bf16.msra.mxu1 %v8464_v55  ;;  %v5492_v50 = vpop.permute.xlu1 %5491  ;;  %v8482_v55 = vpack.c.bf16 %v5634_v43, %v5633_v42  ;;  %v5688_v19 = vld [vmem:[%s12689_s10 + $0x5a8] sm:$0xff]  ;;  %v5726_v32 = vld [vmem:[%s12689_s10 + $0x6d8] sm:$0xff]  ;;  %v5671_v10 = vld [vmem:[%s12689_s10 + $0x520] sm:$0xff] }
 0xbd8   :  { %8509 = vmatpush3.bf16.msra.mxu0 %v8508_v11  ;;  %5494 = vst.msk [vmem:[#allocation2 + $0x1d] sm:$0x1] %vm5316_vm8, %v5492_v50  ;;  %8467 = vmatprep.subr.bf16.mxu1 %v8466_v51  ;;  %v5617_v11 = vld [vmem:[%s12689_s10 + $0x370] sm:$0xff]  ;;  %v5683_v51 = vld [vmem:[%s12689_s10 + $0x580] sm:$0xff]  ;;  %v8570_v12 = vpack.c.bf16 %v5726_v32, %v5725_v22  ;;  %v5728_v59 = vld [vmem:[%s12689_s10 + $0x6e8] sm:$0xff] }
 0xbd9   :  { %5502 = vst.msk [vmem:[#allocation2 + $0x1d] sm:$0x5] %vm12207_vm9, %v5500_v1  ;;  %8511 = vmatprep.subr.bf16.mxu0 %v8510_v23  ;;  %v5722_v23 = vld [vmem:[%s12689_s10 + $0x6b8] sm:$0xff]  ;;  %v8484_v56 = vpack.c.bf16 %v5618_v46, %v5617_v11  ;;  %v8518_v25 = vpack.c.bf16 %v5684_v28, %v5683_v51  ;;  %v5709_v47 = vld [vmem:[%s12689_s10 + $0x650] sm:$0xff]  ;;  %v5711_v18 = vld [vmem:[%s12689_s10 + $0x660] sm:$0xff] }
 0xbda   :  { %v8562_v50 = vpack.c.bf16 %v5722_v23, %v5721_v17  ;;  %v5706_v1 = vld [vmem:[%s12689_s10 + $0x638] sm:$0xff]  ;;  %v5689_v34 = vld [vmem:[%s12689_s10 + $0x5b0] sm:$0xff]  ;;  %v5676_v51 = vld [vmem:[%s12689_s10 + $0x548] sm:$0xff] }
 0xbdb   :  { %8469 = vmatpush3.bf16.msra.mxu1 %v8468_v0  ;;  %v12374_v0 = vrot.slane %v5802_v52, %v11570_v3  ;;  %v5673_v42 = vld [vmem:[%s12689_s10 + $0x530] sm:$0xff]  ;;  %v5674_v43 = vld [vmem:[%s12689_s10 + $0x538] sm:$0xff] }
 0xbdc   :  { %8513 = vmatpush3.bf16.msra.mxu0 %v8512_v61  ;;  %8471 = vmatprep.subr.bf16.mxu1 %v8470_v27  ;;  %v5685_v61 = vld [vmem:[%s12689_s10 + $0x590] sm:$0xff]  ;;  %v5686_v27 = vld [vmem:[%s12689_s10 + $0x598] sm:$0xff]  ;;  %v8532_v46 = vpack.c.bf16 %v5674_v43, %v5673_v42 }
 0xbdd   :  { %8515 = vmatprep.subr.bf16.mxu0 %v8514_v37  ;;  %v8564_v37 = vpack.c.bf16 %v5706_v1, %v5705_v9  ;;  %v8522_v38 = vpack.c.bf16 %v5686_v27, %v5685_v61  ;;  %v5818_v13 = vcombine.high %v12374_v0, %v12374_v0  ;;  %v5730_v11 = vld [vmem:[%s12689_s10 + $0x6f8] sm:$0xff]  ;;  %v5713_v28 = vld [vmem:[%s12689_s10 + $0x670] sm:$0xff]  ;;  %v5696_v1 = vld [vmem:[%s12689_s10 + $0x5e8] sm:$0xff] }
 0xbde   :  { %v5714_v17 = vld [vmem:[%s12689_s10 + $0x678] sm:$0xff]  ;;  %v5693_v23 = vld [vmem:[%s12689_s10 + $0x5d0] sm:$0xff] }
 0xbdf   :  { %8473 = vmatpush3.bf16.msra.mxu1 %v8472_v21  ;;  %v8566_v21 = vpack.c.bf16 %v5724_v4, %v5723_v6  ;;  %v5677_v40 = vld [vmem:[%s12689_s10 + $0x550] sm:$0xff]  ;;  %v5678_v9 = vld [vmem:[%s12689_s10 + $0x558] sm:$0xff]  ;;  %v5679_v6 = vld [vmem:[%s12689_s10 + $0x560] sm:$0xff] }
 0xbe0   :  { %8517 = vmatpush3.bf16.msra.mxu0 %v8516_v16  ;;  %8475 = vmatprep.subr.bf16.mxu1 %v8474_v45  ;;  %v12308_v35 = vld [vmem:[#allocation2 + $0x18] sm:$0xff]  ;;  %v5708_v16 = vld [vmem:[%s12689_s10 + $0x648] sm:$0xff]  ;;  %v5687_v45 = vld [vmem:[%s12689_s10 + $0x5a0] sm:$0xff]  ;;  %v8540_v61 = vpack.c.bf16 %v5678_v9, %v5677_v40 }
 0xbe1   :  { %8551 = vmatprep.subr.bf16.mxu0 %v8550_v31  ;;  %v12318_v60 = vrot.slane %v12308_v35, %v11570_v3  ;;  %v8524_v31 = vpack.c.bf16 %v5670_v8, %v5669_v15  ;;  %v8568_v29 = vpack.c.bf16 %v5708_v16, %v5707_v44  ;;  %v8526_v5 = vpack.c.bf16 %v5688_v19, %v5687_v45  ;;  %v5680_v4 = vld [vmem:[%s12689_s10 + $0x568] sm:$0xff]  ;;  %v5681_v8 = vld [vmem:[%s12689_s10 + $0x570] sm:$0xff]  ;;  %v5682_v44 = vld [vmem:[%s12689_s10 + $0x578] sm:$0xff] }
 0xbe2   :  { %v5732_v16 = vld [vmem:[%s12689_s10 + $0x708] sm:$0xff]  ;;  %v5734_v22 = vld [vmem:[%s12689_s10 + $0x718] sm:$0xff]  ;;  %v6422_v9 = vld [vmem:[%s12691_s12 + $0x20] sm:$0xff] }
 0xbe3   :  { %6198 = vmatmul.mubr.f32.vlgmr.msra.gmra.mrb[132].mxu0 %v12213_v39  ;;  %8477 = vmatpush3.bf16.msra.mxu1 %v8476_v30  ;;  %v5834_v54 = vcombine.high %v12318_v60, %v12318_v60  ;;  %v5703_v39 = vld [vmem:[%s12689_s10 + $0x620] sm:$0xff]  ;;  %v5710_v30 = vld [vmem:[%s12689_s10 + $0x658] sm:$0xff] }
 0xbe4   :  { %8553 = vmatpush3.bf16.msra.mxu0 %v8552_v53  ;;  %8479 = vmatprep.subr.bf16.mxu1 %v8478_v36  ;;  %v8560_v57 = vpack.c.bf16 %v5704_v7, %v5703_v39  ;;  %v5690_v53 = vld [vmem:[%s12689_s10 + $0x5b8] sm:$0xff]  ;;  %v5727_v36 = vld [vmem:[%s12689_s10 + $0x6e0] sm:$0xff] }
 0xbe5   :  { %8555 = vmatprep.subr.bf16.mxu0 %v8554_v62  ;;  %6337 = vmatprep.mubr.f32.mxu0 %v5834_v54  ;;  %v8572_v62 = vpack.c.bf16 %v5710_v30, %v5709_v47  ;;  %v8530_v14 = vpack.c.bf16 %v5690_v53, %v5689_v34  ;;  %v8574_v2 = vpack.c.bf16 %v5728_v59, %v5727_v36  ;;  %v5712_v54 = vld [vmem:[%s12689_s10 + $0x668] sm:$0xff]  ;;  %v5675_v7 = vld [vmem:[%s12689_s10 + $0x540] sm:$0xff]  ;;  %v5741_v34 = vld [vmem:[%s12689_s10 + $0x750] sm:$0xff] }
 0xbe6   :  { %v8576_v39 = vpack.c.bf16 %v5712_v54, %v5711_v18  ;;  %v5739_v47 = vld [vmem:[%s12689_s10 + $0x740] sm:$0xff]  ;;  %v5742_v53 = vld [vmem:[%s12689_s10 + $0x758] sm:$0xff] }
 0xbe7   :  { %8481 = vmatpush3.bf16.msra.mxu1 %v8480_v41  ;;  %v5691_v41 = vld [vmem:[%s12689_s10 + $0x5c0] sm:$0xff]  ;;  %v8598_v36 = vpack.c.bf16 %v5742_v53, %v5741_v34  ;;  %v5746_v42 = vld [vmem:[%s12689_s10 + $0x778] sm:$0xff] }
 0xbe8   :  { %8557 = vmatpush3.bf16.msra.mxu0 %v8556_v48  ;;  %8483 = vmatprep.subr.bf16.mxu1 %v8482_v55  ;;  %v5692_v48 = vld [vmem:[%s12689_s10 + $0x5c8] sm:$0xff]  ;;  %v5729_v55 = vld [vmem:[%s12689_s10 + $0x6f0] sm:$0xff]  ;;  %v5743_v59 = vld [vmem:[%s12689_s10 + $0x760] sm:$0xff] }
 0xbe9   :  { %8559 = vmatprep.subr.bf16.mxu0 %v8558_v49  ;;  %v8534_v49 = vpack.c.bf16 %v5692_v48, %v5691_v41  ;;  %v8578_v52 = vpack.c.bf16 %v5730_v11, %v5729_v55  ;;  %v5747_v18 = vld [vmem:[%s12689_s10 + $0x780] sm:$0xff]  ;;  %v5749_v41 = vld [vmem:[%s12689_s10 + $0x790] sm:$0xff]  ;;  %v5750_v48 = vld [vmem:[%s12689_s10 + $0x798] sm:$0xff] }
 0xbea   :  { %v8610_v55 = vpack.c.bf16 %v5750_v48, %v5749_v41  ;;  %v5751_v11 = vld [vmem:[%s12689_s10 + $0x7a0] sm:$0xff] }
 0xbeb   :  { %8485 = vmatpush3.bf16.msra.mxu1 %v8484_v56  ;;  %v5694_v56 = vld [vmem:[%s12689_s10 + $0x5d8] sm:$0xff] }
 0xbec   :  { %8561 = vmatpush3.bf16.msra.mxu0 %v8560_v57  ;;  %8519 = vmatprep.subr.bf16.mxu1 %v8518_v25  ;;  %v8536_v57 = vpack.c.bf16 %v5676_v51, %v5675_v7  ;;  %v8580_v25 = vpack.c.bf16 %v5714_v17, %v5713_v28  ;;  %v8538_v24 = vpack.c.bf16 %v5694_v56, %v5693_v23  ;;  %v5754_v7 = vld [vmem:[%s12689_s10 + $0x7b8] sm:$0xff]  ;;  %v5755_v28 = vld [vmem:[%s12689_s10 + $0x7c0] sm:$0xff]  ;;  %v6419_v56 = vld [vmem:[%s12691_s12 + $0x8] sm:$0xff] }
 0xbed   :  { %8563 = vmatprep.subr.bf16.mxu0 %v8562_v50  ;;  %v5695_v50 = vld [vmem:[%s12689_s10 + $0x5e0] sm:$0xff] }
 0xbee   :  { %6128 = vmatmul.mubr.f32.vlgmr.msra.gmra.mrb[124].mxu1 %v12123_v58  ;;  %v5672_v58 = vld [vmem:[%s12689_s10 + $0x528] sm:$0xff]  ;;  %v8542_v27 = vpack.c.bf16 %v5696_v1, %v5695_v50  ;;  %v6418_v23 = vld [vmem:[%s12691_s12] sm:$0xff] }
 0xbef   :  { %8521 = vmatpush3.bf16.msra.mxu1 %v8520_v33  ;;  %6267 = vmatprep.mubr.f32.mxu1 %v5818_v13  ;;  %v8528_v20 = vpack.c.bf16 %v5672_v58, %v5671_v10  ;;  %v5697_v33 = vld [vmem:[%s12689_s10 + $0x5f0] sm:$0xff]  ;;  %v5819_v13 = vcombine.high %v12308_v35, %v12308_v35  ;;  %v5738_v10 = vld [vmem:[%s12689_s10 + $0x738] sm:$0xff]  ;;  %v6423_v50 = vld [vmem:[%s12691_s12 + $0x28] sm:$0xff] }
 0xbf0   :  { %8565 = vmatpush3.bf16.msra.mxu0 %v8564_v37  ;;  %8523 = vmatprep.subr.bf16.mxu1 %v8522_v38  ;;  %v5698_v37 = vld [vmem:[%s12689_s10 + $0x5f8] sm:$0xff]  ;;  %v8544_v38 = vpack.c.bf16 %v5680_v4, %v5679_v6  ;;  %v5733_v35 = vld [vmem:[%s12689_s10 + $0x710] sm:$0xff]  ;;  %v8628_v1 = vpack.c.bf16 %v6423_v50, %v6422_v9  ;;  %v6426_v4 = vld [vmem:[%s12691_s12 + $0x40] sm:$0xff] }
 0xbf1   :  { %8567 = vmatprep.subr.bf16.mxu0 %v8566_v21  ;;  %v8546_v15 = vpack.c.bf16 %v5698_v37, %v5697_v33  ;;  %v8548_v21 = vpack.c.bf16 %v5682_v44, %v5681_v8  ;;  %v12525_v45 = vrot.slane %v5819_v13, %v11570_v3  ;;  %v8586_v3 = vpack.c.bf16 %v5734_v22, %v5733_v35  ;;  %v6427_v33 = vld [vmem:[%s12691_s12 + $0x48] sm:$0xff] }
 0xbf2   :  { %v8634_v37 = vpack.c.bf16 %v6427_v33, %v6426_v4 }
 0xbf3   :  { %8525 = vmatpush3.bf16.msra.mxu1 %v8524_v31  ;;  %v5835_v32 = vcombine.high %v12525_v45, %v12525_v45  ;;  %v5735_v31 = vld [vmem:[%s12689_s10 + $0x720] sm:$0xff] }
 0xbf4   :  { %8569 = vmatpush3.bf16.msra.mxu0 %v8568_v29  ;;  %8527 = vmatprep.subr.bf16.mxu1 %v8526_v5  ;;  %v5736_v29 = vld [vmem:[%s12689_s10 + $0x728] sm:$0xff] }
 0xbf5   :  { %8571 = vmatprep.subr.bf16.mxu0 %v8570_v12  ;;  %v8589_v5 = vpack.c.bf16 %v5736_v29, %v5735_v31  ;;  %v5740_v12 = vld [vmem:[%s12689_s10 + $0x748] sm:$0xff] }
 0xbf6   :  { %v8595_v30 = vpack.c.bf16 %v5740_v12, %v5739_v47 }
 0xbf7   :  { %8529 = vmatpush3.bf16.msra.mxu1 %v8528_v20  ;;  %v5744_v20 = vld [vmem:[%s12689_s10 + $0x768] sm:$0xff] }
 0xbf8   :  { %8573 = vmatpush3.bf16.msra.mxu0 %v8572_v62  ;;  %8531 = vmatprep.subr.bf16.mxu1 %v8530_v14  ;;  %v8601_v62 = vpack.c.bf16 %v5744_v20, %v5743_v59  ;;  %v5745_v14 = vld [vmem:[%s12689_s10 + $0x770] sm:$0xff] }
 0xbf9   :  { %8575 = vmatprep.subr.bf16.mxu0 %v8574_v2  ;;  %v8604_v43 = vpack.c.bf16 %v5746_v42, %v5745_v14  ;;  %v5748_v2 = vld [vmem:[%s12689_s10 + $0x788] sm:$0xff] }
 0xbfa   :  { %v8607_v54 = vpack.c.bf16 %v5748_v2, %v5747_v18 }
 0xbfb   :  { %8533 = vmatpush3.bf16.msra.mxu1 %v8532_v46  ;;  %v5752_v46 = vld [vmem:[%s12689_s10 + $0x7a8] sm:$0xff] }
 0xbfc   :  { %8577 = vmatpush3.bf16.msra.mxu0 %v8576_v39  ;;  %8535 = vmatprep.subr.bf16.mxu1 %v8534_v49  ;;  %v8613_v39 = vpack.c.bf16 %v5752_v46, %v5751_v11  ;;  %v5753_v49 = vld [vmem:[%s12689_s10 + $0x7b0] sm:$0xff] }
 0xbfd   :  { %8579 = vmatprep.subr.bf16.mxu0 %v8578_v52  ;;  %v8616_v51 = vpack.c.bf16 %v5754_v7, %v5753_v49  ;;  %v5756_v52 = vld [vmem:[%s12689_s10 + $0x7c8] sm:$0xff] }
 0xbfe   :  { %v8619_v17 = vpack.c.bf16 %v5756_v52, %v5755_v28 }
 0xbff   :  { %8537 = vmatpush3.bf16.msra.mxu1 %v8536_v57  ;;  %v6420_v57 = vld [vmem:[%s12691_s12 + $0x10] sm:$0xff] }
 0xc00   :  { %8581 = vmatpush3.bf16.msra.mxu0 %v8580_v25  ;;  %8539 = vmatprep.subr.bf16.mxu1 %v8538_v24  ;;  %v8622_v25 = vpack.c.bf16 %v6419_v56, %v6418_v23  ;;  %v6421_v24 = vld [vmem:[%s12691_s12 + $0x18] sm:$0xff] }
 0xc01   :  { %8621 = vmatprep.subr.bf16.mxu0 %v9040_v26  ;;  %v8625_v40 = vpack.c.bf16 %v6421_v24, %v6420_v57 }
 0xc03   :  { %6338 = vmatmul.mubr.f32.vlgmr.msra.gmra.mrb[134].mxu0 %v12318_v60  ;;  %8541 = vmatpush3.bf16.msra.mxu1 %v8540_v61  ;;  %v5731_v60 = vld [vmem:[%s12689_s10 + $0x700] sm:$0xff]  ;;  %v6424_v61 = vld [vmem:[%s12691_s12 + $0x30] sm:$0xff] }
 0xc04   :  { %8543 = vmatprep.subr.bf16.mxu1 %v8542_v27  ;;  %v8583_v19 = vpack.c.bf16 %v5732_v16, %v5731_v60  ;;  %8623 = vmatpush3.bf16.msra.mxu0 %v8622_v25  ;;  %v6425_v27 = vld [vmem:[%s12691_s12 + $0x38] sm:$0xff]  ;;  %v6428_v60 = vld [vmem:[%s12691_s12 + $0x50] sm:$0xff] }
 0xc05   :  { %8624 = vmatprep.subr.bf16.mxu0 %v9040_v26  ;;  %v8631_v6 = vpack.c.bf16 %v6425_v27, %v6424_v61  ;;  %v6429_v16 = vld [vmem:[%s12691_s12 + $0x58] sm:$0xff] }
 0xc07   :  { %8545 = vmatpush3.bf16.msra.mxu1 %v8544_v38 }
 0xc08   :  { %8547 = vmatprep.subr.bf16.mxu1 %v8546_v15  ;;  %8626 = vmatpush3.bf16.msra.mxu0 %v8625_v40 }
 0xc09   :  { %8627 = vmatprep.subr.bf16.mxu0 %v9040_v26 }
 0xc0b   :  { %8549 = vmatpush3.bf16.msra.mxu1 %v8548_v21 }
 0xc0c   :  { %8582 = vmatprep.subr.bf16.mxu1 %v9040_v26  ;;  %8629 = vmatpush3.bf16.msra.mxu0 %v8628_v1 }
 0xc0d   :  { %8630 = vmatprep.subr.bf16.mxu0 %v9040_v26 }
 0xc0e   :  { %6268 = vmatmul.mubr.f32.vlgmr.msra.gmra.mrb[126].mxu1 %v12374_v0  ;;  %v5737_v0 = vld [vmem:[%s12689_s10 + $0x730] sm:$0xff] }
 0xc0f   :  { %8584 = vmatpush1.bf16.msra.mxu1 %v8583_v19  ;;  %7110 = vmatprep.mubr.msk.f32.mxu1 %vm157_vm0, %v5835_v32  ;;  %v8592_v58 = vpack.c.bf16 %v5738_v10, %v5737_v0  ;;  %vm9060_vm0 = vmmov 0   ;;  %v7109_v19 = vld [vmem:[%s12690_s11] ss:$0 sm:$0xff]  ;;  %s7111_s11 = sld [smem:[#allocation3 + $0x3]] }
 0xc10   :  { %8585 = vmatprep.subr.bf16.mxu1 %v9040_v26  ;;  %8632 = vmatpush3.bf16.msra.mxu0 %v8631_v6 }
 0xc11   :  { %8633 = vmatprep.subr.bf16.mxu0 %v9040_v26  ;;  %7675 = vmatprep.mubr.msk.f32.mxu0 %vm9060_vm0, %v9039_v63 }
 0xc13   :  { %8587 = vmatpush1.bf16.msra.mxu1 %v8586_v3 }
 0xc14   :  { %8588 = vmatprep.subr.bf16.mxu1 %v9040_v26  ;;  %8635 = vmatpush3.bf16.msra.mxu0 %v8634_v37 }
 0xc15   :  { %8636 = vmatprep.subr.bf16.mxu0 %v9040_v26  ;;  %v6415_v18 = vstv %s7111_s11 }
 0xc17   :  { %8590 = vmatpush1.bf16.msra.mxu1 %v8589_v5 }
 0xc18   :  { %8591 = vmatprep.subr.bf16.mxu1 %v9040_v26 }
 0xc1b   :  { %8593 = vmatpush1.bf16.msra.mxu1 %v8592_v58 }
 0xc1c   :  { %8594 = vmatprep.subr.bf16.mxu1 %v9040_v26 }
 0xc1f   :  { %8596 = vmatpush1.bf16.msra.mxu1 %v8595_v30 }
 0xc20   :  { %8597 = vmatprep.subr.bf16.mxu1 %v9040_v26 }
 0xc23   :  { %8599 = vmatpush1.bf16.msra.mxu1 %v8598_v36 }
 0xc24   :  { %8600 = vmatprep.subr.bf16.mxu1 %v9040_v26 }
 0xc27   :  { %8602 = vmatpush1.bf16.msra.mxu1 %v8601_v62 }
 0xc28   :  { %8603 = vmatprep.subr.bf16.mxu1 %v9040_v26 }
 0xc2b   :  { %8605 = vmatpush1.bf16.msra.mxu1 %v8604_v43 }
 0xc2c   :  { %8606 = vmatprep.subr.bf16.mxu1 %v9040_v26 }
 0xc2f   :  { %8608 = vmatpush1.bf16.msra.mxu1 %v8607_v54 }
 0xc30   :  { %8609 = vmatprep.subr.bf16.mxu1 %v9040_v26 }
 0xc33   :  { %8611 = vmatpush1.bf16.msra.mxu1 %v8610_v55  ;;  %v7112_v55 = vld [vmem:[#allocation14] ss:$0 sm:$0xff] }
 0xc34   :  { %8612 = vmatprep.subr.bf16.mxu1 %v9040_v26 }
 0xc37   :  { %8614 = vmatpush1.bf16.msra.mxu1 %v8613_v39 }
 0xc38   :  { %8615 = vmatprep.subr.bf16.mxu1 %v9040_v26 }
 0xc3b   :  { %8617 = vmatpush1.bf16.msra.mxu1 %v8616_v51 }
 0xc3c   :  { %8618 = vmatprep.subr.bf16.mxu1 %v9040_v26  ;;  %v6430_v26 = vld [vmem:[%s12691_s12 + $0x60] sm:$0xf]  ;;  %s9061_s12 = smov [#allocation16]  }
 0xc3d   :  { %s6523_s28 = sshll.u32 %s9061_s12, 4  ;;  %s6524_s28 = int_to_ptr.vmem [resolvable:$true] %s6523_s28 }
 0xc3e   :  { %s8996_s20 = scalar_lea.vmem %s6524_s28, 32  ;;  %p9001_p12 = scmp.lt.s32.totalorder %s6524_s28, %s6524_s28 }
 0xc3f   :  { %8620 = vmatpush1.bf16.msra.mxu1 %v8619_v17  ;;  %p8997_p11 = scmp.ne.s32.totalorder %s6524_s28, %s8996_s20  ;;  %p9002_p13 = scmp.lt.s32.totalorder %s8996_s20, %s8996_s20 }
 0xc41   :  { %p9003_p0 = por %p9002_p13, %p9001_p12 }
 0xc42   :  { %6408 = vmatmul.mubr.f32.vlgmr.msra.gmra.mrb[128].mxu1 %v12525_v45  ;;  %v8637_v45 = vpack.c.bf16 %v6429_v16, %v6428_v60 }
 0xc43   :  { %p9004_p1 = pnand %p9003_p0, %p8997_p11 }
 0xc44   :  { %8638 = vmatpush3.bf16.msra.mxu0 %v8637_v45 }
 0xc45   :  { %7673 = vmatprep.subr.mxu0 %v9039_v63 }
 0xc48   :  { %7674 = vmatpush3.msk.msra.mxu0 %vm6441_vm10, %v6430_v26 }
 0xc81   :  { %v7247_v38 = vpop.f32.mrb[120].mxu1 }
 0xc82   :  { %v7248_v15 = vpop.f32.mrb[121].mxu1 }
 0xc83   :  { %v7249_v8 = vadd.f32 %v7248_v15, %v7247_v38 }
 0xc85   :  { %v5920_v32 = vadd.f32 %v7249_v8, %v7109_v19 }
 0xc95   :  { %v7317_v44 = vpop.f32.mrb[130].mxu0 }
 0xc96   :  { %v7318_v13 = vpop.f32.mrb[131].mxu0 }
 0xc97   :  { %v7319_v21 = vadd.f32 %v7318_v13, %v7317_v44 }
 0xca1   :  { %v7282_v35 = vpop.f32.mrb[122].mxu1 }
 0xca2   :  { %v7283_v22 = vpop.f32.mrb[123].mxu1 }
 0xca3   :  { %v7284_v3 = vadd.f32 %v7283_v22, %v7282_v35 }
 0xca5   :  { %v5990_v31 = vadd.f32 %v7284_v3, %v5920_v32 }
 0xca7   :  { %v6060_v29 = vadd.f32 %v7319_v21, %v5990_v31 }
 0xcb6   :  { %v7387_v5 = vpop.f32.mrb[132].mxu0 }
 0xcb7   :  { %v7388_v0 = vpop.f32.mrb[133].mxu0 }
 0xcb8   :  { %v7389_v10 = vadd.f32 %v7388_v0, %v7387_v5 }
 0xcc1   :  { %v7352_v63 = vpop.f32.mrb[124].mxu1 }
 0xcc2   :  { %v7353_v58 = vpop.f32.mrb[125].mxu1 }
 0xcc3   :  { %v7354_v47 = vadd.f32 %v7353_v58, %v7352_v63 }
 0xcc5   :  { %v6130_v12 = vadd.f32 %v7354_v47, %v6060_v29 }
 0xcc7   :  { %v6200_v30 = vadd.f32 %v7389_v10, %v6130_v12 }
 0xcd6   :  { %v7457_v34 = vpop.f32.mrb[134].mxu0 }
 0xcd7   :  { %v7458_v53 = vpop.f32.mrb[135].mxu0 }
 0xcd8   :  { %v7459_v36 = vadd.f32 %v7458_v53, %v7457_v34 }
 0xce1   :  { %v7422_v59 = vpop.f32.mrb[126].mxu1 }
 0xce2   :  { %v7423_v20 = vpop.f32.mrb[127].mxu1 }
 0xce3   :  { %v7424_v62 = vadd.f32 %v7423_v20, %v7422_v59 }
 0xce5   :  { %v6270_v14 = vadd.f32 %v7424_v62, %v6200_v30 }
 0xce7   :  { %v6340_v42 = vadd.f32 %v7459_v36, %v6270_v14 }
 0xd15   :  { %v6409_v43 = vpop.f32.mrb[128].mxu1 }
 0xd16   :  { %v6410_v2 = vadd.f32 %v6409_v43, %v6340_v42  ;;  %v6411_v54 = vpop.f32.mrb[129].mxu1 }
 0xd18   :  { %vm6414_vm1 = vcmp.ge.f32.partialorder %v6410_v2, 0.0  ;;  %v6416_v41 = vmul.f32 %v6415_v18, %v6410_v2 }
 0xd1a   :  { %v6417_v48 = vsel %vm6414_vm1, %v6410_v2, %v6416_v41 }
 0xd1b   :  { %7676 = vmatmul.mubr.msk.f32.vlgmr.msra.gmra.mrb[136].mxu0 %vm5109_vm7, %v6417_v48 }
 0xdee   :  { %v6511_v11 = vpop.f32.mrb[136].mxu0 }
 0xdef   :  { %v6512_v46 = vadd.f32 %v7112_v55, %v6511_v11  ;;  %v7677_v39 = vpop.f32.mrb[137].mxu0 }
 0xdf1   :  { %6516 = vst.msk [vmem:[#allocation16] sm:$0x3] %vm6515_vm12, %v6512_v46 }
 0xdf2   :  { %9007 = shalt.err (!%p9004_p1)
}
 0xdf3   :  { %s9008_s4 = scalar_lea.hbm %s12693_s14, 32 }
 0xdf4   :  { %p9009_p2 = scmp.ne.s32.totalorder %s12693_s14, %s9008_s4  ;;  %p9012_p3 = scmp.lt.u32.totalorder %s9008_s4, %s12693_s14 }
 0xdf6   :  { %p9014_p4 = pnand %p9012_p3, %p9009_p2 }
 0xdf8   :  { %9017 = shalt.err (!%p9014_p4)
}
 0xdf9   :  { %6526 = dma.vmem_to_hbm [thread:$0]  %s6524_s28, 32, %s12693_s14, [#allocation5]  }
 0xdfa   :  { %9028 = dma.done.wait [#allocation5], 32  }
 0xdfb   :  { %9029 = vsyncadd [#allocation5], 4294967264 }
 0xdfc   :  { %6530 = vsyncpa [#allocation4], 1 }
 0xdfd   :  { %6531 = vsyncpa [#allocation9], 1 }
 0xdfe   :  { %6532 = vsyncpa [#allocation12], 1 }
 0xdff   :  { %6533 = vsyncpa [#allocation15], 1 }
 0xe00   :  { %6534 = vsyncpa [#allocation5], 1 }
 0xe01   :  { %6535 = vsyncpa [#allocation6], 1 }

</bundles_post_ra>
